<compile_context>
chip_gen: v5e
topology: v5e:2x2
jax: 0.10.0
libtpu: 0.0.40
codegen_flags: <defaults>
</compile_context>

<pallas_src>
import numpy as np

import jax
import jax.numpy as jnp
from jax.experimental import pallas as pl
from jax.experimental.pallas import tpu as pltpu


# ----------------------------------------------------------------------------
# Configuration (small synthetic shapes consistent with the module)
# ----------------------------------------------------------------------------
B = 2            # batch
HID = 32         # transformer.d_model / hidden_dim
STATE = 14       # state_dim (qpos / action dim)
NQ = 8           # num_queries
LAT = 32         # latent_dim (fixed at 32 in the module)
NCAM = 2         # number of cameras
IMG_C = 3        # raw image channels
NUM_CH = 8       # backbones[0].num_channels (backbone feature channels)
IMGH = IMGW = 8  # backbone feature-map spatial size
FFN = 64         # stand-in feed-forward width
HEAD_PAD = 128   # lane-dense padded width of fused action/is_pad head output

ENC_KEYS = ("wqk", "bqk", "wv", "bv", "wo", "bo", "w1", "b1", "w2", "b2")
DEC_KEYS = ("wq", "bq", "wk", "bk", "wv", "bv", "wo", "bo", "w1", "b1", "w2", "b2")


# ----------------------------------------------------------------------------
# Shared math (used both inside the Pallas kernels [MXU_OPS] and by the pure-JAX
# reference [REF_OPS] so structure is identical and only precision differs).
# ----------------------------------------------------------------------------
def _dot_mxu(a, b):
    # bf16 MXU operands, f32 accumulation.
    return jnp.dot(a.astype(jnp.bfloat16), b.astype(jnp.bfloat16),
                   preferred_element_type=jnp.float32)


def _dot_nt_mxu(a, b):
    # a @ b.T without an explicit transpose (contract dim 1 with dim 1).
    return jax.lax.dot_general(
        a.astype(jnp.bfloat16), b.astype(jnp.bfloat16),
        dimension_numbers=(((1,), (1,)), ((), ())),
        preferred_element_type=jnp.float32)


def _softmax_mxu(s):
    m = jnp.max(s, axis=-1, keepdims=True)
    p = jnp.exp(s - m)
    return p * pl.reciprocal(jnp.sum(p, axis=-1, keepdims=True), approx=True)


def _dot_ref(a, b):
    return jnp.dot(a.astype(jnp.float32), b.astype(jnp.float32),
                   preferred_element_type=jnp.float32)


def _dot_nt_ref(a, b):
    return jax.lax.dot_general(
        a.astype(jnp.float32), b.astype(jnp.float32),
        dimension_numbers=(((1,), (1,)), ((), ())),
        preferred_element_type=jnp.float32)


def _softmax_ref(s):
    m = jnp.max(s, axis=-1, keepdims=True)
    p = jnp.exp(s - m)
    return p / jnp.sum(p, axis=-1, keepdims=True)


MXU_OPS = dict(dot=_dot_mxu, dot_nt=_dot_nt_mxu, softmax=_softmax_mxu)
REF_OPS = dict(dot=_dot_ref, dot_nt=_dot_nt_ref, softmax=_softmax_ref)


def _layer_norm(x, eps=1e-5):
    # TODO(synk): torch nn.LayerNorm has learnable gamma/beta; stand-in omits them.
    m = jnp.mean(x, axis=-1, keepdims=True)
    v = jnp.mean(jnp.square(x - m), axis=-1, keepdims=True)
    return (x - m) * jax.lax.rsqrt(v + eps)


def _self_attn_layer(x, pos, key_bias, w, ops):
    """Single-head encoder layer: fused-QK attn + out proj + residual + LN + FFN + LN.
    x, pos: (S, H); key_bias: (1, S) additive (-1e9 on padded keys) or None."""
    wqk, bqk, wv, bv, wo, bo, w1, b1, w2, b2 = w
    h = x.shape[-1]
    scale = 1.0 / float(h) ** 0.5
    xp = x + pos
    qk = ops["dot"](xp, wqk) + bqk                 # (S, 2H) fused Q/K projection
    q = qk[:, :h]
    k = qk[:, h:]
    v = ops["dot"](x, wv) + bv                     # V uses src without pos (DETR semantics)
    s = ops["dot_nt"](q, k) * scale                # (S, S)
    if key_bias is not None:
        s = s + key_bias
    p = ops["softmax"](s)
    a = ops["dot"](p, v)
    a = ops["dot"](a, wo) + bo
    x1 = _layer_norm(x + a)
    f = jnp.maximum(ops["dot"](x1, w1) + b1, 0.0)
    f = ops["dot"](f, w2) + b2
    return _layer_norm(x1 + f)


def _cross_attn_layer(tgt, query_pos, mem, mem_pos, w, ops):
    """Single-head decoder layer (cross-attention only, no mask)."""
    wq, bq, wk, bk, wv, bv, wo, bo, w1, b1, w2, b2 = w
    h = tgt.shape[-1]
    scale = 1.0 / float(h) ** 0.5
    q = ops["dot"](tgt + query_pos, wq) + bq       # (NQ, H)
    k = ops["dot"](mem + mem_pos, wk) + bk         # (T, H)
    v = ops["dot"](mem, wv) + bv                   # (T, H)
    s = ops["dot_nt"](q, k) * scale                # (NQ, T)
    p = ops["softmax"](s)
    a = ops["dot"](p, v)
    a = ops["dot"](a, wo) + bo
    x1 = _layer_norm(tgt + a)
    f = jnp.maximum(ops["dot"](x1, w1) + b1, 0.0)
    f = ops["dot"](f, w2) + b2
    return _layer_norm(x1 + f)


def _image_single(x, wb, bb, wp, bp, ops):
    """Fused backbone 1x1 conv + ReLU + input_proj (1x1 conv) for one camera.
    x: (B*H*W, IMG_C) channels-last."""
    f = jnp.maximum(ops["dot"](x, wb) + bb, 0.0)   # (B*H*W, NUM_CH)
    return ops["dot"](f, wp) + bp                  # (B*H*W, HID)


def _cvae_single(actions_b, qpos_b, bias_b, cls_e, pos_t, eps_b,
                 wa, ba, wj, bj, enc_w, wlat, blat, wlo, blo, ops):
    """Whole CVAE branch for one batch element; returns a lane-dense (1, 128) row:
    [mu (32) | logvar (32) | latent_input (32) | zeros (32)]."""
    a_emb = ops["dot"](actions_b, wa) + ba                      # (NQ, H)
    j_emb = ops["dot"](qpos_b, wj) + bj                         # (1, H)
    x = jnp.concatenate([cls_e, j_emb, a_emb], axis=0)          # (2+NQ, H)
    y = _self_attn_layer(x, pos_t, bias_b, enc_w, ops)          # encoder layer
    cls_out = y[0:1, :]                                         # CLS token (1, H)
    li = ops["dot"](cls_out, wlat) + blat                       # (1, 2*LAT)
    mu = li[:, :LAT]
    logvar = li[:, LAT:]
    z = mu + jnp.exp(0.5 * logvar) * eps_b                      # reparametrize
    lat_in = ops["dot"](z, wlo) + blo                           # latent_out_proj (1, H)
    pad = jnp.zeros((1, HEAD_PAD - 2 * LAT - HID), jnp.float32)
    return jnp.concatenate([mu, logvar, lat_in, pad], axis=1)   # (1, 128)


def _memory_single(qpos_b, lat_b, src_b, mem_pos, wp, bp, enc_w, ops):
    """Proprio proj + memory assembly + transformer-encoder layer; one batch element."""
    prop = ops["dot"](qpos_b, wp) + bp                          # (1, H)
    x = jnp.concatenate([lat_b, prop, src_b], axis=0)           # (T, H)
    return _self_attn_layer(x, mem_pos, None, enc_w, ops)       # (T, H)


def _decode_single(mem_b, mem_pos, query_pos, dec_w, wh, bh, ops):
    """Decoder layer + fused (lane-padded) action/is_pad heads; one batch element."""
    nq, h = query_pos.shape
    tgt = jnp.zeros((nq, h), jnp.float32)
    hs = _cross_attn_layer(tgt, query_pos, mem_b, mem_pos, dec_w, ops)   # (NQ, H)
    return ops["dot"](hs, wh) + bh                                       # (NQ, 128)


# ----------------------------------------------------------------------------
# Pallas kernels (thin wrappers around the shared math)
# ----------------------------------------------------------------------------
def _image_kernel(img_ref, wb_ref, bb_ref, wp_ref, bp_ref, o_ref):
    t = _image_single(img_ref[...], wb_ref[...], bb_ref[...],
                      wp_ref[...], bp_ref[...], MXU_OPS)        # (B*HW, HID)
    bs, hw, _ = o_ref.shape
    for b in range(bs):                                          # static unroll
        o_ref[b] = t[b * hw:(b + 1) * hw, :]


def _cvae_kernel(*refs):
    act_ref, qpos_ref, bias_ref, eps_ref = refs[0:4]
    cls_ref, pos_ref = refs[4:6]
    wa_ref, ba_ref, wj_ref, bj_ref = refs[6:10]
    enc_w = tuple(r[...] for r in refs[10:20])
    wlat_ref, blat_ref, wlo_ref, blo_ref = refs[20:24]
    out_ref = refs[24]
    out_ref[...] = _cvae_single(
        act_ref[...], qpos_ref[...], bias_ref[...],
        cls_ref[...], pos_ref[...], eps_ref[...],
        wa_ref[...], ba_ref[...], wj_ref[...], bj_ref[...],
        enc_w, wlat_ref[...], blat_ref[...], wlo_ref[...], blo_ref[...],
        MXU_OPS)


def _memory_kernel(*refs):
    qpos_ref, lat_ref, src_ref, pos_ref, wp_ref, bp_ref = refs[0:6]
    enc_w = tuple(r[...] for r in refs[6:16])
    out_ref = refs[16]
    out_ref[...] = _memory_single(
        qpos_ref[...], lat_ref[...], src_ref[...], pos_ref[...],
        wp_ref[...], bp_ref[...], enc_w, MXU_OPS)


def _decoder_kernel(*refs):
    mem_ref, pos_ref, qe_ref = refs[0:3]
    dec_w = tuple(r[...] for r in refs[3:15])
    wh_ref, bh_ref = refs[15:17]
    out_ref = refs[17]
    out_ref[...] = _decode_single(
        mem_ref[...], pos_ref[...], qe_ref[...], dec_w,
        wh_ref[...], bh_ref[...], MXU_OPS)


# ----------------------------------------------------------------------------
# BlockSpec helpers + pallas_call wrappers
# ----------------------------------------------------------------------------
def _rep_spec(a):
    """Whole-array block, identical for every grid step (weights / tables)."""
    zero_idx = (0,) * a.ndim
    return pl.BlockSpec(a.shape, lambda b, _z=zero_idx: _z)


def _bat_spec(a):
    """Per-grid-step block: leading (batch/camera) dim squeezed, trailing dims full."""
    rest = a.ndim - 1
    return pl.BlockSpec((None,) + tuple(a.shape[1:]),
                        lambda b, _r=rest: (b,) + (0,) * _r)


def run_image(packed, img_cl, bs):
    """img_cl: (NCAM, B*H*W, IMG_C) channels-last -> (bs, NCAM, H*W, HID)."""
    ncam, m, cin = img_cl.shape
    hw = m // bs
    nch = packed["bb_w"].shape[2]
    return pl.pallas_call(
        _image_kernel,
        out_shape=jax.ShapeDtypeStruct((bs, ncam, hw, HID), jnp.float32),
        grid=(ncam,),
        in_specs=[
            pl.BlockSpec((None, m, cin), lambda c: (c, 0, 0)),
            pl.BlockSpec((None, cin, nch), lambda c: (c, 0, 0)),
            pl.BlockSpec((None, 1, nch), lambda c: (c, 0, 0)),
            pl.BlockSpec((nch, HID), lambda c: (0, 0)),
            pl.BlockSpec((1, HID), lambda c: (0, 0)),
        ],
        out_specs=pl.BlockSpec((bs, None, hw, HID), lambda c: (0, c, 0, 0)),
        compiler_params=pltpu.CompilerParams(dimension_semantics=("parallel",)),
    )(img_cl, packed["bb_w"], packed["bb_b"], packed["proj_w"], packed["proj_b"])


def run_cvae(packed, actions, qpos3, bias3, eps3):
    bs = qpos3.shape[0]
    per = [actions, qpos3, bias3, eps3]
    shared = [packed["cls_embed"], packed["pos_table"],
              packed["enc_act_w"], packed["enc_act_b"],
              packed["enc_joint_w"], packed["enc_joint_b"],
              *[packed["cvae_enc"][k] for k in ENC_KEYS],
              packed["lat_w"], packed["lat_b"], packed["lout_w"], packed["lout_b"]]
    in_specs = [_bat_spec(a) for a in per] + [_rep_spec(a) for a in shared]
    return pl.pallas_call(
        _cvae_kernel,
        out_shape=jax.ShapeDtypeStruct((bs, 1, HEAD_PAD), jnp.float32),
        grid=(bs,),
        in_specs=in_specs,
        out_specs=pl.BlockSpec((None, 1, HEAD_PAD), lambda b: (b, 0, 0)),
        compiler_params=pltpu.CompilerParams(dimension_semantics=("parallel",)),
    )(*per, *shared)


def run_memory(packed, qpos3, lat3, src):
    bs, t_src, hid = src.shape
    t_total = t_src + 2
    per = [qpos3, lat3, src]
    shared = [packed["mem_pos"], packed["prop_w"], packed["prop_b"],
              *[packed["t_enc"][k] for k in ENC_KEYS]]
    in_specs = [_bat_spec(a) for a in per] + [_rep_spec(a) for a in shared]
    return pl.pallas_call(
        _memory_kernel,
        out_shape=jax.ShapeDtypeStruct((bs, t_total, hid), jnp.float32),
        grid=(bs,),
        in_specs=in_specs,
        out_specs=pl.BlockSpec((None, t_total, hid), lambda b: (b, 0, 0)),
        compiler_params=pltpu.CompilerParams(dimension_semantics=("parallel",)),
    )(*per, *shared)


def run_decoder(packed, memory):
    bs = memory.shape[0]
    shared = [packed["mem_pos"], packed["query_embed"],
              *[packed["t_dec"][k] for k in DEC_KEYS],
              packed["head_w"], packed["head_b"]]
    in_specs = [_bat_spec(memory)] + [_rep_spec(a) for a in shared]
    return pl.pallas_call(
        _decoder_kernel,
        out_shape=jax.ShapeDtypeStruct((bs, NQ, HEAD_PAD), jnp.float32),
        grid=(bs,),
        in_specs=in_specs,
        out_specs=pl.BlockSpec((None, NQ, HEAD_PAD), lambda b: (b, 0, 0)),
        compiler_params=pltpu.CompilerParams(dimension_semantics=("parallel",)),
    )(memory, *shared)


# ----------------------------------------------------------------------------
# Parameters (deterministic init, packed for the fused kernels: fused QK weights,
# bf16 MXU operands, (1, N) biases, lane-padded fused heads)
# ----------------------------------------------------------------------------
def get_sinusoid_encoding_table(n_position, d_hid):
    pos = np.arange(n_position, dtype=np.float64)[:, None]
    hid = np.arange(d_hid, dtype=np.float64)[None, :]
    angle = pos / np.power(10000.0, 2.0 * (hid // 2) / d_hid)
    table = np.array(angle)
    table[:, 0::2] = np.sin(angle[:, 0::2])
    table[:, 1::2] = np.cos(angle[:, 1::2])
    return jnp.asarray(table, dtype=jnp.float32)[None]          # (1, n_position, d_hid)


def init_linear(key, d_in, d_out):
    return (0.02 * jax.random.normal(key, (d_in, d_out), jnp.float32),
            jnp.zeros((d_out,), jnp.float32))


def init_attn_block(key, d_model, d_ffn):
    ks = jax.random.split(key, 6)
    p = {}
    p["wq"], p["bq"] = init_linear(ks[0], d_model, d_model)
    p["wk"], p["bk"] = init_linear(ks[1], d_model, d_model)
    p["wv"], p["bv"] = init_linear(ks[2], d_model, d_model)
    p["wo"], p["bo"] = init_linear(ks[3], d_model, d_model)
    p["w1"], p["b1"] = init_linear(ks[4], d_model, d_ffn)
    p["w2"], p["b2"] = init_linear(ks[5], d_ffn, d_model)
    return p


def pack_self_attn(p):
    d = {"wqk": jnp.concatenate([p["wq"], p["wk"]], axis=1).astype(jnp.bfloat16),
         "bqk": jnp.concatenate([p["bq"], p["bk"]], axis=0).reshape(1, -1)}
    for nm in ("wv", "wo", "w1", "w2"):
        d[nm] = p[nm].astype(jnp.bfloat16)
    for nm in ("bv", "bo", "b1", "b2"):
        d[nm] = p[nm].reshape(1, -1)
    return d


def pack_cross_attn(p):
    d = {}
    for nm in ("wq", "wk", "wv", "wo", "w1", "w2"):
        d[nm] = p[nm].astype(jnp.bfloat16)
    for nm in ("bq", "bk", "bv", "bo", "b1", "b2"):
        d[nm] = p[nm].reshape(1, -1)
    return d


def init_packed_params(key):
    ks = jax.random.split(key, 20)
    P = {}

    # fused action_head (HID->STATE) + is_pad_head (HID->1), lane-padded to 128
    aw, ab = init_linear(ks[0], HID, STATE)
    pw, pb = init_linear(ks[1], HID, 1)
    head_w = jnp.zeros((HID, HEAD_PAD), jnp.float32)
    head_w = head_w.at[:, :STATE].set(aw).at[:, STATE:STATE + 1].set(pw)
    head_b = jnp.zeros((1, HEAD_PAD), jnp.float32)
    head_b = head_b.at[:, :STATE].set(ab.reshape(1, -1)).at[:, STATE:STATE + 1].set(pb.reshape(1, -1))
    P["head_w"] = head_w.astype(jnp.bfloat16)
    P["head_b"] = head_b

    P["query_embed"] = 0.02 * jax.random.normal(ks[2], (NQ, HID), jnp.float32)

    w, b = init_linear(ks[3], NUM_CH, HID)                       # input_proj (1x1 conv)
    P["proj_w"], P["proj_b"] = w.astype(jnp.bfloat16), b.reshape(1, -1)
    w, b = init_linear(ks[4], STATE, HID)                        # input_proj_robot_state
    P["prop_w"], P["prop_b"] = w.astype(jnp.bfloat16), b.reshape(1, -1)

    P["cls_embed"] = 0.02 * jax.random.normal(ks[5], (1, HID), jnp.float32)
    w, b = init_linear(ks[6], STATE, HID)                        # encoder_action_proj
    P["enc_act_w"], P["enc_act_b"] = w.astype(jnp.bfloat16), b.reshape(1, -1)
    w, b = init_linear(ks[7], STATE, HID)                        # encoder_joint_proj
    P["enc_joint_w"], P["enc_joint_b"] = w.astype(jnp.bfloat16), b.reshape(1, -1)
    w, b = init_linear(ks[8], HID, 2 * LAT)                      # latent_proj
    P["lat_w"], P["lat_b"] = w.astype(jnp.bfloat16), b.reshape(1, -1)
    w, b = init_linear(ks[9], LAT, HID)                          # latent_out_proj
    P["lout_w"], P["lout_b"] = w.astype(jnp.bfloat16), b.reshape(1, -1)

    addl_pos = 0.02 * jax.random.normal(ks[10], (2, HID), jnp.float32)   # additional_pos_embed
    P["pos_table"] = get_sinusoid_encoding_table(1 + 1 + NQ, HID)[0]     # (2+NQ, HID)

    # stand-in CVAE encoder layer + transformer encoder/decoder layers
    P["cvae_enc"] = pack_self_attn(init_attn_block(ks[11], HID, FFN))
    P["t_enc"] = pack_self_attn(init_attn_block(ks[12], HID, FFN))
    P["t_dec"] = pack_cross_attn(init_attn_block(ks[13], HID, FFN))

    # per-camera backbone stand-in (1x1 conv), stacked for the camera-gridded kernel
    bw, bb = [], []
    for c in range(NCAM):
        w, b = init_linear(ks[14 + c], IMG_C, NUM_CH)
        bw.append(w)
        bb.append(b.reshape(1, -1))
    P["bb_w"] = jnp.stack(bw, axis=0).astype(jnp.bfloat16)       # (NCAM, IMG_C, NUM_CH)
    P["bb_b"] = jnp.stack(bb, axis=0)                            # (NCAM, 1, NUM_CH)

    # memory positional embedding: [additional_pos_embed (2) | per-camera spatial sinusoid]
    spatial = get_sinusoid_encoding_table(IMGH * IMGW, HID)[0]   # (HW, HID)
    P["mem_pos"] = jnp.concatenate([addl_pos, jnp.tile(spatial, (NCAM, 1))], axis=0)
    return P


# ----------------------------------------------------------------------------
# G_img_ACT forward (Pallas path: 4 fused pallas_calls)
# ----------------------------------------------------------------------------
def g_img_act_forward(packed, qpos, image, env_state, actions, is_pad, eps):
    """qpos: (B,14); image: (B,NCAM,3,H,W); actions: (B,NQ,14); is_pad: (B,NQ) bool."""
    is_training = actions is not None
    bs = qpos.shape[0]
    ncam = image.shape[1]
    hw = IMGH * IMGW

    # --- image branch: fused backbone 1x1 conv + ReLU + input_proj, per camera ---
    # (the transpose is pure NCHW->channels-last layout glue on a tiny tensor)
    img_cl = jnp.transpose(image, (1, 0, 3, 4, 2)).reshape(ncam, bs * hw, IMG_C)
    src_tok = run_image(packed, img_cl, bs)                       # (bs, ncam, hw, HID)
    src = src_tok.reshape(bs, ncam * hw, HID)

    qpos3 = qpos.reshape(bs, 1, STATE)

    if is_training:
        # --- CVAE branch: projections + encoder layer + latent_proj + reparam + out_proj ---
        is_pad_full = jnp.concatenate([jnp.zeros((bs, 2), dtype=bool), is_pad], axis=1)
        pad_bias3 = jnp.where(is_pad_full, -1e9, 0.0).astype(jnp.float32)[:, None, :]
        eps3 = eps.reshape(bs, 1, LAT)
        cv = run_cvae(packed, actions, qpos3, pad_bias3, eps3)[:, 0, :]   # (bs, 128)
        mu = cv[:, :LAT]
        logvar = cv[:, LAT:2 * LAT]
        latent_input = cv[:, 2 * LAT:2 * LAT + HID]
    else:
        mu = logvar = None
        # latent_sample = 0  =>  latent_out_proj(0) = bias
        latent_input = jnp.broadcast_to(packed["lout_b"], (bs, HID))

    # --- transformer stand-in: encoder over [latent | proprio | image tokens], then decoder ---
    memory = run_memory(packed, qpos3, latent_input.reshape(bs, 1, HID), src)   # (bs, T, HID)
    heads = run_decoder(packed, memory)                                         # (bs, NQ, 128)
    a_hat = heads[..., :STATE]
    is_pad_hat = heads[..., STATE:STATE + 1]
    return a_hat, is_pad_hat, [mu, logvar]


# ----------------------------------------------------------------------------
# Pure-JAX reference (same shared math, f32 everywhere) for correctness checking
# ----------------------------------------------------------------------------
def g_img_act_forward_ref(packed, qpos, image, env_state, actions, is_pad, eps):
    is_training = actions is not None
    bs = qpos.shape[0]
    ncam = image.shape[1]
    hw = IMGH * IMGW

    img_cl = jnp.transpose(image, (1, 0, 3, 4, 2)).reshape(ncam, bs * hw, IMG_C)
    cams = []
    for c in range(ncam):
        t = _image_single(img_cl[c], packed["bb_w"][c], packed["bb_b"][c],
                          packed["proj_w"], packed["proj_b"], REF_OPS)
        cams.append(t.reshape(bs, hw, HID))
    src = jnp.stack(cams, axis=1).reshape(bs, ncam * hw, HID)

    if is_training:
        is_pad_full = jnp.concatenate([jnp.zeros((bs, 2), dtype=bool), is_pad], axis=1)
        pad_bias = jnp.where(is_pad_full, -1e9, 0.0).astype(jnp.float32)
        enc_w = tuple(packed["cvae_enc"][k] for k in ENC_KEYS)
        rows = []
        for b in range(bs):
            rows.append(_cvae_single(
                actions[b], qpos[b:b + 1], pad_bias[b:b + 1],
                packed["cls_embed"], packed["pos_table"], eps[b:b + 1],
                packed["enc_act_w"], packed["enc_act_b"],
                packed["enc_joint_w"], packed["enc_joint_b"],
                enc_w, packed["lat_w"], packed["lat_b"],
                packed["lout_w"], packed["lout_b"], REF_OPS))
        cv = jnp.concatenate(rows, axis=0)
        mu = cv[:, :LAT]
        logvar = cv[:, LAT:2 * LAT]
        latent_input = cv[:, 2 * LAT:2 * LAT + HID]
    else:
        mu = logvar = None
        latent_input = jnp.broadcast_to(packed["lout_b"], (bs, HID))

    t_enc_w = tuple(packed["t_enc"][k] for k in ENC_KEYS)
    t_dec_w = tuple(packed["t_dec"][k] for k in DEC_KEYS)
    heads = []
    for b in range(bs):
        mem_b = _memory_single(qpos[b:b + 1], latent_input[b:b + 1], src[b],
                               packed["mem_pos"], packed["prop_w"], packed["prop_b"],
                               t_enc_w, REF_OPS)
        heads.append(_decode_single(mem_b, packed["mem_pos"], packed["query_embed"],
                                    t_dec_w, packed["head_w"], packed["head_b"],
                                    REF_OPS)[None])
    heads = jnp.concatenate(heads, axis=0)
    a_hat = heads[..., :STATE]
    is_pad_hat = heads[..., STATE:STATE + 1]
    return a_hat, is_pad_hat, [mu, logvar]


# ----------------------------------------------------------------------------
# Main
# ----------------------------------------------------------------------------
if __name__ == "__main__":
    key = jax.random.PRNGKey(0)
    k_p, k_q, k_i, k_a, k_eps = jax.random.split(key, 5)

    packed = init_packed_params(k_p)
    qpos = jax.random.normal(k_q, (B, STATE), jnp.float32)
    image = jax.random.normal(k_i, (B, NCAM, IMG_C, IMGH, IMGW), jnp.float32)
    actions = jax.random.normal(k_a, (B, NQ, STATE), jnp.float32)
    is_pad = jnp.zeros((B, NQ), dtype=bool)
    eps = jax.random.normal(k_eps, (B, LAT), jnp.float32)        # deterministic reparam noise
    env_state = None

    fwd = jax.jit(g_img_act_forward)
    a_hat, is_pad_hat, (mu, logvar) = fwd(packed, qpos, image, env_state, actions, is_pad, eps)
    jax.block_until_ready(a_hat)
    jax.block_until_ready(is_pad_hat)
    jax.block_until_ready(mu)
    jax.block_until_ready(logvar)

    # correctness: compare against the structurally-identical pure-JAX f32 reference
    a_ref, p_ref, (mu_ref, lv_ref) = g_img_act_forward_ref(
        packed, qpos, image, env_state, actions, is_pad, eps)

    assert a_hat.shape == (B, NQ, STATE)
    assert is_pad_hat.shape == (B, NQ, 1)
    assert mu.shape == (B, LAT) and logvar.shape == (B, LAT)
    assert bool(jnp.all(jnp.isfinite(a_hat))) and bool(jnp.all(jnp.isfinite(is_pad_hat)))
    assert float(jnp.max(jnp.abs(a_hat - a_ref))) < 5e-2
    assert float(jnp.max(jnp.abs(is_pad_hat - p_ref))) < 5e-2
    assert float(jnp.max(jnp.abs(mu - mu_ref))) < 5e-2
    assert float(jnp.max(jnp.abs(logvar - lv_ref))) < 5e-2

    print("KERNEL_OK")
</pallas_src>

<mosaic_0001>
module attributes {stable_mosaic.version = 11 : i64} {
  func.func @_cvae_kernel(%arg0: i32, %arg1: memref<1x8x14xf32, #tpu.memory_space<vmem>>, %arg2: memref<1x1x14xf32, #tpu.memory_space<vmem>>, %arg3: memref<1x1x10xf32, #tpu.memory_space<vmem>>, %arg4: memref<1x1x32xf32, #tpu.memory_space<vmem>>, %arg5: memref<1x32xf32, #tpu.memory_space<vmem>>, %arg6: memref<10x32xf32, #tpu.memory_space<vmem>>, %arg7: memref<14x32xbf16, #tpu.memory_space<vmem>>, %arg8: memref<1x32xf32, #tpu.memory_space<vmem>>, %arg9: memref<14x32xbf16, #tpu.memory_space<vmem>>, %arg10: memref<1x32xf32, #tpu.memory_space<vmem>>, %arg11: memref<32x64xbf16, #tpu.memory_space<vmem>>, %arg12: memref<1x64xf32, #tpu.memory_space<vmem>>, %arg13: memref<32x32xbf16, #tpu.memory_space<vmem>>, %arg14: memref<1x32xf32, #tpu.memory_space<vmem>>, %arg15: memref<32x32xbf16, #tpu.memory_space<vmem>>, %arg16: memref<1x32xf32, #tpu.memory_space<vmem>>, %arg17: memref<32x64xbf16, #tpu.memory_space<vmem>>, %arg18: memref<1x64xf32, #tpu.memory_space<vmem>>, %arg19: memref<64x32xbf16, #tpu.memory_space<vmem>>, %arg20: memref<1x32xf32, #tpu.memory_space<vmem>>, %arg21: memref<32x64xbf16, #tpu.memory_space<vmem>>, %arg22: memref<1x64xf32, #tpu.memory_space<vmem>>, %arg23: memref<32x32xbf16, #tpu.memory_space<vmem>>, %arg24: memref<1x32xf32, #tpu.memory_space<vmem>>, %arg25: memref<1x1x128xf32, #tpu.memory_space<vmem>>) attributes {dimension_semantics = [#tpu.dimension_semantics<parallel>], iteration_bounds = array<i64: 2>, scalar_prefetch = 0 : i64, scratch_operands = 0 : i64, tpu.core_type = #tpu.core_type<tc>, window_params = [{transform_indices = @transform_0, window_bounds = array<i64: 1, 8, 14>}, {transform_indices = @transform_1, window_bounds = array<i64: 1, 1, 14>}, {transform_indices = @transform_2, window_bounds = array<i64: 1, 1, 10>}, {transform_indices = @transform_3, window_bounds = array<i64: 1, 1, 32>}, {pipeline_mode = #tpu.pipeline_mode<synchronous>, transform_indices = @transform_4, window_bounds = array<i64: 1, 32>}, {pipeline_mode = #tpu.pipeline_mode<synchronous>, transform_indices = @transform_5, window_bounds = array<i64: 10, 32>}, {pipeline_mode = #tpu.pipeline_mode<synchronous>, transform_indices = @transform_6, window_bounds = array<i64: 14, 32>}, {pipeline_mode = #tpu.pipeline_mode<synchronous>, transform_indices = @transform_7, window_bounds = array<i64: 1, 32>}, {pipeline_mode = #tpu.pipeline_mode<synchronous>, transform_indices = @transform_8, window_bounds = array<i64: 14, 32>}, {pipeline_mode = #tpu.pipeline_mode<synchronous>, transform_indices = @transform_9, window_bounds = array<i64: 1, 32>}, {pipeline_mode = #tpu.pipeline_mode<synchronous>, transform_indices = @transform_10, window_bounds = array<i64: 32, 64>}, {pipeline_mode = #tpu.pipeline_mode<synchronous>, transform_indices = @transform_11, window_bounds = array<i64: 1, 64>}, {pipeline_mode = #tpu.pipeline_mode<synchronous>, transform_indices = @transform_12, window_bounds = array<i64: 32, 32>}, {pipeline_mode = #tpu.pipeline_mode<synchronous>, transform_indices = @transform_13, window_bounds = array<i64: 1, 32>}, {pipeline_mode = #tpu.pipeline_mode<synchronous>, transform_indices = @transform_14, window_bounds = array<i64: 32, 32>}, {pipeline_mode = #tpu.pipeline_mode<synchronous>, transform_indices = @transform_15, window_bounds = array<i64: 1, 32>}, {pipeline_mode = #tpu.pipeline_mode<synchronous>, transform_indices = @transform_16, window_bounds = array<i64: 32, 64>}, {pipeline_mode = #tpu.pipeline_mode<synchronous>, transform_indices = @transform_17, window_bounds = array<i64: 1, 64>}, {pipeline_mode = #tpu.pipeline_mode<synchronous>, transform_indices = @transform_18, window_bounds = array<i64: 64, 32>}, {pipeline_mode = #tpu.pipeline_mode<synchronous>, transform_indices = @transform_19, window_bounds = array<i64: 1, 32>}, {pipeline_mode = #tpu.pipeline_mode<synchronous>, transform_indices = @transform_20, window_bounds = array<i64: 32, 64>}, {pipeline_mode = #tpu.pipeline_mode<synchronous>, transform_indices = @transform_21, window_bounds = array<i64: 1, 64>}, {pipeline_mode = #tpu.pipeline_mode<synchronous>, transform_indices = @transform_22, window_bounds = array<i64: 32, 32>}, {pipeline_mode = #tpu.pipeline_mode<synchronous>, transform_indices = @transform_23, window_bounds = array<i64: 1, 32>}, {transform_indices = @transform_24, window_bounds = array<i64: 1, 1, 128>}]} {
    %c0 = arith.constant 0 : index
    %c0_0 = arith.constant 0 : index
    %0 = vector.load %arg11[%c0, %c0_0] : memref<32x64xbf16, #tpu.memory_space<vmem>>, vector<32x64xbf16>
    %c0_1 = arith.constant 0 : index
    %c0_2 = arith.constant 0 : index
    %1 = vector.load %arg12[%c0_1, %c0_2] : memref<1x64xf32, #tpu.memory_space<vmem>>, vector<1x64xf32>
    %c0_3 = arith.constant 0 : index
    %c0_4 = arith.constant 0 : index
    %2 = vector.load %arg13[%c0_3, %c0_4] : memref<32x32xbf16, #tpu.memory_space<vmem>>, vector<32x32xbf16>
    %c0_5 = arith.constant 0 : index
    %c0_6 = arith.constant 0 : index
    %3 = vector.load %arg14[%c0_5, %c0_6] : memref<1x32xf32, #tpu.memory_space<vmem>>, vector<1x32xf32>
    %c0_7 = arith.constant 0 : index
    %c0_8 = arith.constant 0 : index
    %4 = vector.load %arg15[%c0_7, %c0_8] : memref<32x32xbf16, #tpu.memory_space<vmem>>, vector<32x32xbf16>
    %c0_9 = arith.constant 0 : index
    %c0_10 = arith.constant 0 : index
    %5 = vector.load %arg16[%c0_9, %c0_10] : memref<1x32xf32, #tpu.memory_space<vmem>>, vector<1x32xf32>
    %c0_11 = arith.constant 0 : index
    %c0_12 = arith.constant 0 : index
    %6 = vector.load %arg17[%c0_11, %c0_12] : memref<32x64xbf16, #tpu.memory_space<vmem>>, vector<32x64xbf16>
    %c0_13 = arith.constant 0 : index
    %c0_14 = arith.constant 0 : index
    %7 = vector.load %arg18[%c0_13, %c0_14] : memref<1x64xf32, #tpu.memory_space<vmem>>, vector<1x64xf32>
    %c0_15 = arith.constant 0 : index
    %c0_16 = arith.constant 0 : index
    %8 = vector.load %arg19[%c0_15, %c0_16] : memref<64x32xbf16, #tpu.memory_space<vmem>>, vector<64x32xbf16>
    %c0_17 = arith.constant 0 : index
    %c0_18 = arith.constant 0 : index
    %9 = vector.load %arg20[%c0_17, %c0_18] : memref<1x32xf32, #tpu.memory_space<vmem>>, vector<1x32xf32>
    %c0_19 = arith.constant 0 : index
    %c0_20 = arith.constant 0 : index
    %c0_21 = arith.constant 0 : index
    %10 = vector.load %arg1[%c0_19, %c0_20, %c0_21] : memref<1x8x14xf32, #tpu.memory_space<vmem>>, vector<1x8x14xf32>
    %11 = vector.shape_cast %10 : vector<1x8x14xf32> to vector<8x14xf32>
    %c0_22 = arith.constant 0 : index
    %c0_23 = arith.constant 0 : index
    %c0_24 = arith.constant 0 : index
    %12 = vector.load %arg2[%c0_22, %c0_23, %c0_24] : memref<1x1x14xf32, #tpu.memory_space<vmem>>, vector<1x1x14xf32>
    %13 = vector.shape_cast %12 : vector<1x1x14xf32> to vector<1x14xf32>
    %c0_25 = arith.constant 0 : index
    %c0_26 = arith.constant 0 : index
    %c0_27 = arith.constant 0 : index
    %14 = vector.load %arg3[%c0_25, %c0_26, %c0_27] : memref<1x1x10xf32, #tpu.memory_space<vmem>>, vector<1x1x10xf32>
    %15 = vector.shape_cast %14 : vector<1x1x10xf32> to vector<1x10xf32>
    %c0_28 = arith.constant 0 : index
    %c0_29 = arith.constant 0 : index
    %16 = vector.load %arg5[%c0_28, %c0_29] : memref<1x32xf32, #tpu.memory_space<vmem>>, vector<1x32xf32>
    %c0_30 = arith.constant 0 : index
    %c0_31 = arith.constant 0 : index
    %17 = vector.load %arg6[%c0_30, %c0_31] : memref<10x32xf32, #tpu.memory_space<vmem>>, vector<10x32xf32>
    %c0_32 = arith.constant 0 : index
    %c0_33 = arith.constant 0 : index
    %c0_34 = arith.constant 0 : index
    %18 = vector.load %arg4[%c0_32, %c0_33, %c0_34] : memref<1x1x32xf32, #tpu.memory_space<vmem>>, vector<1x1x32xf32>
    %19 = vector.shape_cast %18 : vector<1x1x32xf32> to vector<1x32xf32>
    %c0_35 = arith.constant 0 : index
    %c0_36 = arith.constant 0 : index
    %20 = vector.load %arg7[%c0_35, %c0_36] : memref<14x32xbf16, #tpu.memory_space<vmem>>, vector<14x32xbf16>
    %c0_37 = arith.constant 0 : index
    %c0_38 = arith.constant 0 : index
    %21 = vector.load %arg8[%c0_37, %c0_38] : memref<1x32xf32, #tpu.memory_space<vmem>>, vector<1x32xf32>
    %c0_39 = arith.constant 0 : index
    %c0_40 = arith.constant 0 : index
    %22 = vector.load %arg9[%c0_39, %c0_40] : memref<14x32xbf16, #tpu.memory_space<vmem>>, vector<14x32xbf16>
    %c0_41 = arith.constant 0 : index
    %c0_42 = arith.constant 0 : index
    %23 = vector.load %arg10[%c0_41, %c0_42] : memref<1x32xf32, #tpu.memory_space<vmem>>, vector<1x32xf32>
    %c0_43 = arith.constant 0 : index
    %c0_44 = arith.constant 0 : index
    %24 = vector.load %arg21[%c0_43, %c0_44] : memref<32x64xbf16, #tpu.memory_space<vmem>>, vector<32x64xbf16>
    %c0_45 = arith.constant 0 : index
    %c0_46 = arith.constant 0 : index
    %25 = vector.load %arg22[%c0_45, %c0_46] : memref<1x64xf32, #tpu.memory_space<vmem>>, vector<1x64xf32>
    %c0_47 = arith.constant 0 : index
    %c0_48 = arith.constant 0 : index
    %26 = vector.load %arg23[%c0_47, %c0_48] : memref<32x32xbf16, #tpu.memory_space<vmem>>, vector<32x32xbf16>
    %c0_49 = arith.constant 0 : index
    %c0_50 = arith.constant 0 : index
    %27 = vector.load %arg24[%c0_49, %c0_50] : memref<1x32xf32, #tpu.memory_space<vmem>>, vector<1x32xf32>
    %28 = arith.truncf %11 : vector<8x14xf32> to vector<8x14xbf16>
    %cst = arith.constant dense<0.000000e+00> : vector<8x32xf32>
    %29 = tpu.matmul %28, %20, %cst {dimension_numbers = #tpu.dot_dimension_numbers<[1], [0], [0], [1], [0, 0, 1, 1], [], []>} : vector<8x14xbf16>, vector<14x32xbf16>, vector<8x32xf32> -> vector<8x32xf32>
    %30 = vector.broadcast %21 : vector<1x32xf32> to vector<8x32xf32>
    %31 = arith.addf %29, %30 : vector<8x32xf32>
    %32 = arith.truncf %13 : vector<1x14xf32> to vector<1x14xbf16>
    %cst_51 = arith.constant dense<0.000000e+00> : vector<1x32xf32>
    %33 = tpu.matmul %32, %22, %cst_51 {dimension_numbers = #tpu.dot_dimension_numbers<[1], [0], [0], [1], [0, 0, 1, 1], [], []>} : vector<1x14xbf16>, vector<14x32xbf16>, vector<1x32xf32> -> vector<1x32xf32>
    %34 = arith.addf %33, %23 : vector<1x32xf32>
    %35 = tpu.concatenate %16, %34, %31 in 0 : vector<1x32xf32>, vector<1x32xf32>, vector<8x32xf32> -> vector<10x32xf32>
    %36 = arith.addf %35, %17 : vector<10x32xf32>
    %37 = arith.truncf %36 : vector<10x32xf32> to vector<10x32xbf16>
    %cst_52 = arith.constant dense<0.000000e+00> : vector<10x64xf32>
    %38 = tpu.matmul %37, %0, %cst_52 {dimension_numbers = #tpu.dot_dimension_numbers<[1], [0], [0], [1], [0, 0, 1, 1], [], []>} : vector<10x32xbf16>, vector<32x64xbf16>, vector<10x64xf32> -> vector<10x64xf32>
    %39 = vector.broadcast %1 : vector<1x64xf32> to vector<10x64xf32>
    %40 = arith.addf %38, %39 : vector<10x64xf32>
    %41 = vector.extract_strided_slice %40 {offsets = [0, 0], sizes = [10, 32], strides = [1, 1]} : vector<10x64xf32> to vector<10x32xf32>
    %42 = vector.extract_strided_slice %40 {offsets = [0, 32], sizes = [10, 32], strides = [1, 1]} : vector<10x64xf32> to vector<10x32xf32>
    %43 = arith.truncf %35 : vector<10x32xf32> to vector<10x32xbf16>
    %cst_53 = arith.constant dense<0.000000e+00> : vector<10x32xf32>
    %44 = tpu.matmul %43, %2, %cst_53 {dimension_numbers = #tpu.dot_dimension_numbers<[1], [0], [0], [1], [0, 0, 1, 1], [], []>} : vector<10x32xbf16>, vector<32x32xbf16>, vector<10x32xf32> -> vector<10x32xf32>
    %45 = vector.broadcast %3 : vector<1x32xf32> to vector<10x32xf32>
    %46 = arith.addf %44, %45 : vector<10x32xf32>
    %47 = arith.truncf %41 : vector<10x32xf32> to vector<10x32xbf16>
    %48 = arith.truncf %42 : vector<10x32xf32> to vector<10x32xbf16>
    %cst_54 = arith.constant dense<0.000000e+00> : vector<10x10xf32>
    %49 = tpu.matmul %47, %48, %cst_54 {dimension_numbers = #tpu.dot_dimension_numbers<[1], [1], [0], [0], [0, 0, 1, 0], [], []>} : vector<10x32xbf16>, vector<10x32xbf16>, vector<10x10xf32> -> vector<10x10xf32>
    %cst_55 = arith.constant 0.176776692 : f32
    %50 = vector.broadcast %cst_55 : f32 to vector<10x10xf32>
    %51 = arith.mulf %49, %50 : vector<10x10xf32>
    %52 = vector.broadcast %15 : vector<1x10xf32> to vector<10x10xf32>
    %53 = arith.addf %51, %52 : vector<10x10xf32>
    %cst_56 = arith.constant dense<0xFF800000> : vector<10xf32>
    %54 = vector.multi_reduction <maximumf>, %53, %cst_56 [1] : vector<10x10xf32> to vector<10xf32>
    %55 = vector.shape_cast %54 : vector<10xf32> to vector<10x1xf32>
    %56 = vector.broadcast %55 : vector<10x1xf32> to vector<10x10xf32>
    %57 = arith.subf %53, %56 : vector<10x10xf32>
    %58 = math.exp %57 : vector<10x10xf32>
    %cst_57 = arith.constant dense<0.000000e+00> : vector<10xf32>
    %59 = vector.multi_reduction <add>, %58, %cst_57 [1] : vector<10x10xf32> to vector<10xf32>
    %60 = vector.shape_cast %59 : vector<10xf32> to vector<10x1xf32>
    %61 = tpu.reciprocal %60 {approx = true} : vector<10x1xf32> -> vector<10x1xf32>
    %62 = vector.broadcast %61 : vector<10x1xf32> to vector<10x10xf32>
    %63 = arith.mulf %58, %62 : vector<10x10xf32>
    %64 = arith.truncf %63 : vector<10x10xf32> to vector<10x10xbf16>
    %65 = arith.truncf %46 : vector<10x32xf32> to vector<10x32xbf16>
    %cst_58 = arith.constant dense<0.000000e+00> : vector<10x32xf32>
    %66 = tpu.matmul %64, %65, %cst_58 {dimension_numbers = #tpu.dot_dimension_numbers<[1], [0], [0], [1], [0, 0, 1, 1], [], []>} : vector<10x10xbf16>, vector<10x32xbf16>, vector<10x32xf32> -> vector<10x32xf32>
    %67 = arith.truncf %66 : vector<10x32xf32> to vector<10x32xbf16>
    %cst_59 = arith.constant dense<0.000000e+00> : vector<10x32xf32>
    %68 = tpu.matmul %67, %4, %cst_59 {dimension_numbers = #tpu.dot_dimension_numbers<[1], [0], [0], [1], [0, 0, 1, 1], [], []>} : vector<10x32xbf16>, vector<32x32xbf16>, vector<10x32xf32> -> vector<10x32xf32>
    %69 = vector.broadcast %5 : vector<1x32xf32> to vector<10x32xf32>
    %70 = arith.addf %68, %69 : vector<10x32xf32>
    %71 = arith.addf %35, %70 : vector<10x32xf32>
    %cst_60 = arith.constant dense<0.000000e+00> : vector<10xf32>
    %72 = vector.multi_reduction <add>, %71, %cst_60 [1] : vector<10x32xf32> to vector<10xf32>
    %73 = vector.shape_cast %72 : vector<10xf32> to vector<10x1xf32>
    %cst_61 = arith.constant 3.200000e+01 : f32
    %74 = vector.broadcast %cst_61 : f32 to vector<10x1xf32>
    %75 = arith.divf %73, %74 : vector<10x1xf32>
    %76 = vector.broadcast %75 : vector<10x1xf32> to vector<10x32xf32>
    %77 = arith.subf %71, %76 : vector<10x32xf32>
    %78 = arith.mulf %77, %77 : vector<10x32xf32>
    %cst_62 = arith.constant dense<0.000000e+00> : vector<10xf32>
    %79 = vector.multi_reduction <add>, %78, %cst_62 [1] : vector<10x32xf32> to vector<10xf32>
    %80 = vector.shape_cast %79 : vector<10xf32> to vector<10x1xf32>
    %cst_63 = arith.constant 3.200000e+01 : f32
    %81 = vector.broadcast %cst_63 : f32 to vector<10x1xf32>
    %82 = arith.divf %80, %81 : vector<10x1xf32>
    %83 = vector.broadcast %75 : vector<10x1xf32> to vector<10x32xf32>
    %84 = arith.subf %71, %83 : vector<10x32xf32>
    %cst_64 = arith.constant 9.99999974E-6 : f32
    %85 = vector.broadcast %cst_64 : f32 to vector<10x1xf32>
    %86 = arith.addf %82, %85 : vector<10x1xf32>
    %87 = math.rsqrt %86 : vector<10x1xf32>
    %88 = vector.broadcast %87 : vector<10x1xf32> to vector<10x32xf32>
    %89 = arith.mulf %84, %88 : vector<10x32xf32>
    %90 = arith.truncf %89 : vector<10x32xf32> to vector<10x32xbf16>
    %cst_65 = arith.constant dense<0.000000e+00> : vector<10x64xf32>
    %91 = tpu.matmul %90, %6, %cst_65 {dimension_numbers = #tpu.dot_dimension_numbers<[1], [0], [0], [1], [0, 0, 1, 1], [], []>} : vector<10x32xbf16>, vector<32x64xbf16>, vector<10x64xf32> -> vector<10x64xf32>
    %92 = vector.broadcast %7 : vector<1x64xf32> to vector<10x64xf32>
    %93 = arith.addf %91, %92 : vector<10x64xf32>
    %cst_66 = arith.constant 0.000000e+00 : f32
    %94 = vector.broadcast %cst_66 : f32 to vector<10x64xf32>
    %95 = arith.maximumf %93, %94 : vector<10x64xf32>
    %96 = arith.truncf %95 : vector<10x64xf32> to vector<10x64xbf16>
    %cst_67 = arith.constant dense<0.000000e+00> : vector<10x32xf32>
    %97 = tpu.matmul %96, %8, %cst_67 {dimension_numbers = #tpu.dot_dimension_numbers<[1], [0], [0], [1], [0, 0, 1, 1], [], []>} : vector<10x64xbf16>, vector<64x32xbf16>, vector<10x32xf32> -> vector<10x32xf32>
    %98 = vector.broadcast %9 : vector<1x32xf32> to vector<10x32xf32>
    %99 = arith.addf %97, %98 : vector<10x32xf32>
    %100 = arith.addf %89, %99 : vector<10x32xf32>
    %cst_68 = arith.constant dense<0.000000e+00> : vector<10xf32>
    %101 = vector.multi_reduction <add>, %100, %cst_68 [1] : vector<10x32xf32> to vector<10xf32>
    %102 = vector.shape_cast %101 : vector<10xf32> to vector<10x1xf32>
    %cst_69 = arith.constant 3.200000e+01 : f32
    %103 = vector.broadcast %cst_69 : f32 to vector<10x1xf32>
    %104 = arith.divf %102, %103 : vector<10x1xf32>
    %105 = vector.broadcast %104 : vector<10x1xf32> to vector<10x32xf32>
    %106 = arith.subf %100, %105 : vector<10x32xf32>
    %107 = arith.mulf %106, %106 : vector<10x32xf32>
    %cst_70 = arith.constant dense<0.000000e+00> : vector<10xf32>
    %108 = vector.multi_reduction <add>, %107, %cst_70 [1] : vector<10x32xf32> to vector<10xf32>
    %109 = vector.shape_cast %108 : vector<10xf32> to vector<10x1xf32>
    %cst_71 = arith.constant 3.200000e+01 : f32
    %110 = vector.broadcast %cst_71 : f32 to vector<10x1xf32>
    %111 = arith.divf %109, %110 : vector<10x1xf32>
    %112 = vector.broadcast %104 : vector<10x1xf32> to vector<10x32xf32>
    %113 = arith.subf %100, %112 : vector<10x32xf32>
    %cst_72 = arith.constant 9.99999974E-6 : f32
    %114 = vector.broadcast %cst_72 : f32 to vector<10x1xf32>
    %115 = arith.addf %111, %114 : vector<10x1xf32>
    %116 = math.rsqrt %115 : vector<10x1xf32>
    %117 = vector.broadcast %116 : vector<10x1xf32> to vector<10x32xf32>
    %118 = arith.mulf %113, %117 : vector<10x32xf32>
    %119 = vector.extract_strided_slice %118 {offsets = [0, 0], sizes = [1, 32], strides = [1, 1]} : vector<10x32xf32> to vector<1x32xf32>
    %120 = arith.truncf %119 : vector<1x32xf32> to vector<1x32xbf16>
    %cst_73 = arith.constant dense<0.000000e+00> : vector<1x64xf32>
    %121 = tpu.matmul %120, %24, %cst_73 {dimension_numbers = #tpu.dot_dimension_numbers<[1], [0], [0], [1], [0, 0, 1, 1], [], []>} : vector<1x32xbf16>, vector<32x64xbf16>, vector<1x64xf32> -> vector<1x64xf32>
    %122 = arith.addf %121, %25 : vector<1x64xf32>
    %123 = vector.extract_strided_slice %122 {offsets = [0, 0], sizes = [1, 32], strides = [1, 1]} : vector<1x64xf32> to vector<1x32xf32>
    %124 = vector.extract_strided_slice %122 {offsets = [0, 32], sizes = [1, 32], strides = [1, 1]} : vector<1x64xf32> to vector<1x32xf32>
    %cst_74 = arith.constant 5.000000e-01 : f32
    %125 = vector.broadcast %cst_74 : f32 to vector<1x32xf32>
    %126 = arith.mulf %125, %124 : vector<1x32xf32>
    %127 = math.exp %126 : vector<1x32xf32>
    %128 = arith.mulf %127, %19 : vector<1x32xf32>
    %129 = arith.addf %123, %128 : vector<1x32xf32>
    %130 = arith.truncf %129 : vector<1x32xf32> to vector<1x32xbf16>
    %cst_75 = arith.constant dense<0.000000e+00> : vector<1x32xf32>
    %131 = tpu.matmul %130, %26, %cst_75 {dimension_numbers = #tpu.dot_dimension_numbers<[1], [0], [0], [1], [0, 0, 1, 1], [], []>} : vector<1x32xbf16>, vector<32x32xbf16>, vector<1x32xf32> -> vector<1x32xf32>
    %132 = arith.addf %131, %27 : vector<1x32xf32>
    %cst_76 = arith.constant 0.000000e+00 : f32
    %133 = vector.broadcast %cst_76 : f32 to vector<1x32xf32>
    %134 = tpu.concatenate %123, %124, %132, %133 in 1 : vector<1x32xf32>, vector<1x32xf32>, vector<1x32xf32>, vector<1x32xf32> -> vector<1x128xf32>
    %c0_77 = arith.constant 0 : index
    %c0_78 = arith.constant 0 : index
    %c0_79 = arith.constant 0 : index
    %135 = vector.load %arg25[%c0_77, %c0_78, %c0_79] : memref<1x1x128xf32, #tpu.memory_space<vmem>>, vector<1x1x128xf32>
    %136 = vector.shape_cast %135 : vector<1x1x128xf32> to vector<1x128xf32>
    %137 = vector.shape_cast %134 : vector<1x128xf32> to vector<1x1x128xf32>
    tpu.vector_store %arg25[%c0_77, %c0_78, %c0_79], %137 {strides = array<i32>} : memref<1x1x128xf32, #tpu.memory_space<vmem>>, vector<1x1x128xf32>,
    return
  }
  func.func @transform_0(%arg0: i32) -> (i32, i32, i32) {
    %c0_i32 = arith.constant 0 : i32
    %c0_i32_0 = arith.constant 0 : i32
    %c0_i32_1 = arith.constant 0 : i32
    return %arg0, %c0_i32, %c0_i32_0 : i32, i32, i32
  }
  func.func @transform_1(%arg0: i32) -> (i32, i32, i32) {
    %c0_i32 = arith.constant 0 : i32
    %c0_i32_0 = arith.constant 0 : i32
    %c0_i32_1 = arith.constant 0 : i32
    return %arg0, %c0_i32, %c0_i32_0 : i32, i32, i32
  }
  func.func @transform_2(%arg0: i32) -> (i32, i32, i32) {
    %c0_i32 = arith.constant 0 : i32
    %c0_i32_0 = arith.constant 0 : i32
    %c0_i32_1 = arith.constant 0 : i32
    return %arg0, %c0_i32, %c0_i32_0 : i32, i32, i32
  }
  func.func @transform_3(%arg0: i32) -> (i32, i32, i32) {
    %c0_i32 = arith.constant 0 : i32
    %c0_i32_0 = arith.constant 0 : i32
    %c0_i32_1 = arith.constant 0 : i32
    return %arg0, %c0_i32, %c0_i32_0 : i32, i32, i32
  }
  func.func @transform_4(%arg0: i32) -> (i32, i32) {
    %c0_i32 = arith.constant 0 : i32
    %c0_i32_0 = arith.constant 0 : i32
    %c0_i32_1 = arith.constant 0 : i32
    return %c0_i32, %c0_i32_0 : i32, i32
  }
  func.func @transform_5(%arg0: i32) -> (i32, i32) {
    %c0_i32 = arith.constant 0 : i32
    %c0_i32_0 = arith.constant 0 : i32
    %c0_i32_1 = arith.constant 0 : i32
    return %c0_i32, %c0_i32_0 : i32, i32
  }
  func.func @transform_6(%arg0: i32) -> (i32, i32) {
    %c0_i32 = arith.constant 0 : i32
    %c0_i32_0 = arith.constant 0 : i32
    %c0_i32_1 = arith.constant 0 : i32
    return %c0_i32, %c0_i32_0 : i32, i32
  }
  func.func @transform_7(%arg0: i32) -> (i32, i32) {
    %c0_i32 = arith.constant 0 : i32
    %c0_i32_0 = arith.constant 0 : i32
    %c0_i32_1 = arith.constant 0 : i32
    return %c0_i32, %c0_i32_0 : i32, i32
  }
  func.func @transform_8(%arg0: i32) -> (i32, i32) {
    %c0_i32 = arith.constant 0 : i32
    %c0_i32_0 = arith.constant 0 : i32
    %c0_i32_1 = arith.constant 0 : i32
    return %c0_i32, %c0_i32_0 : i32, i32
  }
  func.func @transform_9(%arg0: i32) -> (i32, i32) {
    %c0_i32 = arith.constant 0 : i32
    %c0_i32_0 = arith.constant 0 : i32
    %c0_i32_1 = arith.constant 0 : i32
    return %c0_i32, %c0_i32_0 : i32, i32
  }
  func.func @transform_10(%arg0: i32) -> (i32, i32) {
    %c0_i32 = arith.constant 0 : i32
    %c0_i32_0 = arith.constant 0 : i32
    %c0_i32_1 = arith.constant 0 : i32
    return %c0_i32, %c0_i32_0 : i32, i32
  }
  func.func @transform_11(%arg0: i32) -> (i32, i32) {
    %c0_i32 = arith.constant 0 : i32
    %c0_i32_0 = arith.constant 0 : i32
    %c0_i32_1 = arith.constant 0 : i32
    return %c0_i32, %c0_i32_0 : i32, i32
  }
  func.func @transform_12(%arg0: i32) -> (i32, i32) {
    %c0_i32 = arith.constant 0 : i32
    %c0_i32_0 = arith.constant 0 : i32
    %c0_i32_1 = arith.constant 0 : i32
    return %c0_i32, %c0_i32_0 : i32, i32
  }
  func.func @transform_13(%arg0: i32) -> (i32, i32) {
    %c0_i32 = arith.constant 0 : i32
    %c0_i32_0 = arith.constant 0 : i32
    %c0_i32_1 = arith.constant 0 : i32
    return %c0_i32, %c0_i32_0 : i32, i32
  }
  func.func @transform_14(%arg0: i32) -> (i32, i32) {
    %c0_i32 = arith.constant 0 : i32
    %c0_i32_0 = arith.constant 0 : i32
    %c0_i32_1 = arith.constant 0 : i32
    return %c0_i32, %c0_i32_0 : i32, i32
  }
  func.func @transform_15(%arg0: i32) -> (i32, i32) {
    %c0_i32 = arith.constant 0 : i32
    %c0_i32_0 = arith.constant 0 : i32
    %c0_i32_1 = arith.constant 0 : i32
    return %c0_i32, %c0_i32_0 : i32, i32
  }
  func.func @transform_16(%arg0: i32) -> (i32, i32) {
    %c0_i32 = arith.constant 0 : i32
    %c0_i32_0 = arith.constant 0 : i32
    %c0_i32_1 = arith.constant 0 : i32
    return %c0_i32, %c0_i32_0 : i32, i32
  }
  func.func @transform_17(%arg0: i32) -> (i32, i32) {
    %c0_i32 = arith.constant 0 : i32
    %c0_i32_0 = arith.constant 0 : i32
    %c0_i32_1 = arith.constant 0 : i32
    return %c0_i32, %c0_i32_0 : i32, i32
  }
  func.func @transform_18(%arg0: i32) -> (i32, i32) {
    %c0_i32 = arith.constant 0 : i32
    %c0_i32_0 = arith.constant 0 : i32
    %c0_i32_1 = arith.constant 0 : i32
    return %c0_i32, %c0_i32_0 : i32, i32
  }
  func.func @transform_19(%arg0: i32) -> (i32, i32) {
    %c0_i32 = arith.constant 0 : i32
    %c0_i32_0 = arith.constant 0 : i32
    %c0_i32_1 = arith.constant 0 : i32
    return %c0_i32, %c0_i32_0 : i32, i32
  }
  func.func @transform_20(%arg0: i32) -> (i32, i32) {
    %c0_i32 = arith.constant 0 : i32
    %c0_i32_0 = arith.constant 0 : i32
    %c0_i32_1 = arith.constant 0 : i32
    return %c0_i32, %c0_i32_0 : i32, i32
  }
  func.func @transform_21(%arg0: i32) -> (i32, i32) {
    %c0_i32 = arith.constant 0 : i32
    %c0_i32_0 = arith.constant 0 : i32
    %c0_i32_1 = arith.constant 0 : i32
    return %c0_i32, %c0_i32_0 : i32, i32
  }
  func.func @transform_22(%arg0: i32) -> (i32, i32) {
    %c0_i32 = arith.constant 0 : i32
    %c0_i32_0 = arith.constant 0 : i32
    %c0_i32_1 = arith.constant 0 : i32
    return %c0_i32, %c0_i32_0 : i32, i32
  }
  func.func @transform_23(%arg0: i32) -> (i32, i32) {
    %c0_i32 = arith.constant 0 : i32
    %c0_i32_0 = arith.constant 0 : i32
    %c0_i32_1 = arith.constant 0 : i32
    return %c0_i32, %c0_i32_0 : i32, i32
  }
  func.func @transform_24(%arg0: i32) -> (i32, i32, i32) {
    %c0_i32 = arith.constant 0 : i32
    %c0_i32_0 = arith.constant 0 : i32
    %c0_i32_1 = arith.constant 0 : i32
    return %arg0, %c0_i32, %c0_i32_0 : i32, i32, i32
  }
}

module attributes {stable_mosaic.version = 11 : i64} {
  func.func @_image_kernel(%arg0: i32, %arg1: memref<1x128x3xf32, #tpu.memory_space<vmem>>, %arg2: memref<1x3x8xbf16, #tpu.memory_space<vmem>>, %arg3: memref<1x1x8xf32, #tpu.memory_space<vmem>>, %arg4: memref<8x32xbf16, #tpu.memory_space<vmem>>, %arg5: memref<1x32xf32, #tpu.memory_space<vmem>>, %arg6: memref<2x1x64x32xf32, #tpu.memory_space<vmem>>) attributes {dimension_semantics = [#tpu.dimension_semantics<parallel>], iteration_bounds = array<i64: 2>, scalar_prefetch = 0 : i64, scratch_operands = 0 : i64, tpu.core_type = #tpu.core_type<tc>, window_params = [{transform_indices = @transform_0, window_bounds = array<i64: 1, 128, 3>}, {transform_indices = @transform_1, window_bounds = array<i64: 1, 3, 8>}, {transform_indices = @transform_2, window_bounds = array<i64: 1, 1, 8>}, {pipeline_mode = #tpu.pipeline_mode<synchronous>, transform_indices = @transform_3, window_bounds = array<i64: 8, 32>}, {pipeline_mode = #tpu.pipeline_mode<synchronous>, transform_indices = @transform_4, window_bounds = array<i64: 1, 32>}, {transform_indices = @transform_5, window_bounds = array<i64: 2, 1, 64, 32>}]} {
    %c0 = arith.constant 0 : index
    %c0_0 = arith.constant 0 : index
    %c0_1 = arith.constant 0 : index
    %0 = vector.load %arg1[%c0, %c0_0, %c0_1] : memref<1x128x3xf32, #tpu.memory_space<vmem>>, vector<1x128x3xf32>
    %1 = vector.shape_cast %0 : vector<1x128x3xf32> to vector<128x3xf32>
    %c0_2 = arith.constant 0 : index
    %c0_3 = arith.constant 0 : index
    %c0_4 = arith.constant 0 : index
    %2 = vector.load %arg2[%c0_2, %c0_3, %c0_4] : memref<1x3x8xbf16, #tpu.memory_space<vmem>>, vector<1x3x8xbf16>
    %3 = vector.shape_cast %2 : vector<1x3x8xbf16> to vector<3x8xbf16>
    %c0_5 = arith.constant 0 : index
    %c0_6 = arith.constant 0 : index
    %c0_7 = arith.constant 0 : index
    %4 = vector.load %arg3[%c0_5, %c0_6, %c0_7] : memref<1x1x8xf32, #tpu.memory_space<vmem>>, vector<1x1x8xf32>
    %5 = vector.shape_cast %4 : vector<1x1x8xf32> to vector<1x8xf32>
    %c0_8 = arith.constant 0 : index
    %c0_9 = arith.constant 0 : index
    %6 = vector.load %arg4[%c0_8, %c0_9] : memref<8x32xbf16, #tpu.memory_space<vmem>>, vector<8x32xbf16>
    %c0_10 = arith.constant 0 : index
    %c0_11 = arith.constant 0 : index
    %7 = vector.load %arg5[%c0_10, %c0_11] : memref<1x32xf32, #tpu.memory_space<vmem>>, vector<1x32xf32>
    %8 = arith.truncf %1 : vector<128x3xf32> to vector<128x3xbf16>
    %cst = arith.constant dense<0.000000e+00> : vector<128x8xf32>
    %9 = tpu.matmul %8, %3, %cst {dimension_numbers = #tpu.dot_dimension_numbers<[1], [0], [0], [1], [0, 0, 1, 1], [], []>} : vector<128x3xbf16>, vector<3x8xbf16>, vector<128x8xf32> -> vector<128x8xf32>
    %10 = vector.broadcast %5 : vector<1x8xf32> to vector<128x8xf32>
    %11 = arith.addf %9, %10 : vector<128x8xf32>
    %cst_12 = arith.constant 0.000000e+00 : f32
    %12 = vector.broadcast %cst_12 : f32 to vector<128x8xf32>
    %13 = arith.maximumf %11, %12 : vector<128x8xf32>
    %14 = arith.truncf %13 : vector<128x8xf32> to vector<128x8xbf16>
    %cst_13 = arith.constant dense<0.000000e+00> : vector<128x32xf32>
    %15 = tpu.matmul %14, %6, %cst_13 {dimension_numbers = #tpu.dot_dimension_numbers<[1], [0], [0], [1], [0, 0, 1, 1], [], []>} : vector<128x8xbf16>, vector<8x32xbf16>, vector<128x32xf32> -> vector<128x32xf32>
    %16 = vector.broadcast %7 : vector<1x32xf32> to vector<128x32xf32>
    %17 = arith.addf %15, %16 : vector<128x32xf32>
    %18 = vector.extract_strided_slice %17 {offsets = [0, 0], sizes = [64, 32], strides = [1, 1]} : vector<128x32xf32> to vector<64x32xf32>
    %c0_14 = arith.constant 0 : index
    %c0_15 = arith.constant 0 : index
    %c0_16 = arith.constant 0 : index
    %c0_17 = arith.constant 0 : index
    %19 = vector.load %arg6[%c0_14, %c0_15, %c0_16, %c0_17] : memref<2x1x64x32xf32, #tpu.memory_space<vmem>>, vector<1x1x64x32xf32>
    %20 = vector.shape_cast %19 : vector<1x1x64x32xf32> to vector<64x32xf32>
    %21 = vector.shape_cast %18 : vector<64x32xf32> to vector<1x1x64x32xf32>
    tpu.vector_store %arg6[%c0_14, %c0_15, %c0_16, %c0_17], %21 {strides = array<i32>} : memref<2x1x64x32xf32, #tpu.memory_space<vmem>>, vector<1x1x64x32xf32>,
    %22 = vector.extract_strided_slice %17 {offsets = [64, 0], sizes = [64, 32], strides = [1, 1]} : vector<128x32xf32> to vector<64x32xf32>
    %c1 = arith.constant 1 : index
    %c0_18 = arith.constant 0 : index
    %c0_19 = arith.constant 0 : index
    %c0_20 = arith.constant 0 : index
    %23 = vector.load %arg6[%c1, %c0_18, %c0_19, %c0_20] : memref<2x1x64x32xf32, #tpu.memory_space<vmem>>, vector<1x1x64x32xf32>
    %24 = vector.shape_cast %23 : vector<1x1x64x32xf32> to vector<64x32xf32>
    %25 = vector.shape_cast %22 : vector<64x32xf32> to vector<1x1x64x32xf32>
    tpu.vector_store %arg6[%c1, %c0_18, %c0_19, %c0_20], %25 {strides = array<i32>} : memref<2x1x64x32xf32, #tpu.memory_space<vmem>>, vector<1x1x64x32xf32>,
    return
  }
  func.func @transform_0(%arg0: i32) -> (i32, i32, i32) {
    %c0_i32 = arith.constant 0 : i32
    %c0_i32_0 = arith.constant 0 : i32
    %c0_i32_1 = arith.constant 0 : i32
    return %arg0, %c0_i32, %c0_i32_0 : i32, i32, i32
  }
  func.func @transform_1(%arg0: i32) -> (i32, i32, i32) {
    %c0_i32 = arith.constant 0 : i32
    %c0_i32_0 = arith.constant 0 : i32
    %c0_i32_1 = arith.constant 0 : i32
    return %arg0, %c0_i32, %c0_i32_0 : i32, i32, i32
  }
  func.func @transform_2(%arg0: i32) -> (i32, i32, i32) {
    %c0_i32 = arith.constant 0 : i32
    %c0_i32_0 = arith.constant 0 : i32
    %c0_i32_1 = arith.constant 0 : i32
    return %arg0, %c0_i32, %c0_i32_0 : i32, i32, i32
  }
  func.func @transform_3(%arg0: i32) -> (i32, i32) {
    %c0_i32 = arith.constant 0 : i32
    %c0_i32_0 = arith.constant 0 : i32
    %c0_i32_1 = arith.constant 0 : i32
    return %c0_i32, %c0_i32_0 : i32, i32
  }
  func.func @transform_4(%arg0: i32) -> (i32, i32) {
    %c0_i32 = arith.constant 0 : i32
    %c0_i32_0 = arith.constant 0 : i32
    %c0_i32_1 = arith.constant 0 : i32
    return %c0_i32, %c0_i32_0 : i32, i32
  }
  func.func @transform_5(%arg0: i32) -> (i32, i32, i32, i32) {
    %c0_i32 = arith.constant 0 : i32
    %c0_i32_0 = arith.constant 0 : i32
    %c0_i32_1 = arith.constant 0 : i32
    %c0_i32_2 = arith.constant 0 : i32
    return %c0_i32, %arg0, %c0_i32_0, %c0_i32_1 : i32, i32, i32, i32
  }
}

module attributes {stable_mosaic.version = 11 : i64} {
  func.func @_memory_kernel(%arg0: i32, %arg1: memref<1x1x14xf32, #tpu.memory_space<vmem>>, %arg2: memref<1x1x32xf32, #tpu.memory_space<vmem>>, %arg3: memref<1x128x32xf32, #tpu.memory_space<vmem>>, %arg4: memref<130x32xf32, #tpu.memory_space<vmem>>, %arg5: memref<14x32xbf16, #tpu.memory_space<vmem>>, %arg6: memref<1x32xf32, #tpu.memory_space<vmem>>, %arg7: memref<32x64xbf16, #tpu.memory_space<vmem>>, %arg8: memref<1x64xf32, #tpu.memory_space<vmem>>, %arg9: memref<32x32xbf16, #tpu.memory_space<vmem>>, %arg10: memref<1x32xf32, #tpu.memory_space<vmem>>, %arg11: memref<32x32xbf16, #tpu.memory_space<vmem>>, %arg12: memref<1x32xf32, #tpu.memory_space<vmem>>, %arg13: memref<32x64xbf16, #tpu.memory_space<vmem>>, %arg14: memref<1x64xf32, #tpu.memory_space<vmem>>, %arg15: memref<64x32xbf16, #tpu.memory_space<vmem>>, %arg16: memref<1x32xf32, #tpu.memory_space<vmem>>, %arg17: memref<1x130x32xf32, #tpu.memory_space<vmem>>) attributes {dimension_semantics = [#tpu.dimension_semantics<parallel>], iteration_bounds = array<i64: 2>, scalar_prefetch = 0 : i64, scratch_operands = 0 : i64, tpu.core_type = #tpu.core_type<tc>, window_params = [{transform_indices = @transform_0, window_bounds = array<i64: 1, 1, 14>}, {transform_indices = @transform_1, window_bounds = array<i64: 1, 1, 32>}, {transform_indices = @transform_2, window_bounds = array<i64: 1, 128, 32>}, {pipeline_mode = #tpu.pipeline_mode<synchronous>, transform_indices = @transform_3, window_bounds = array<i64: 130, 32>}, {pipeline_mode = #tpu.pipeline_mode<synchronous>, transform_indices = @transform_4, window_bounds = array<i64: 14, 32>}, {pipeline_mode = #tpu.pipeline_mode<synchronous>, transform_indices = @transform_5, window_bounds = array<i64: 1, 32>}, {pipeline_mode = #tpu.pipeline_mode<synchronous>, transform_indices = @transform_6, window_bounds = array<i64: 32, 64>}, {pipeline_mode = #tpu.pipeline_mode<synchronous>, transform_indices = @transform_7, window_bounds = array<i64: 1, 64>}, {pipeline_mode = #tpu.pipeline_mode<synchronous>, transform_indices = @transform_8, window_bounds = array<i64: 32, 32>}, {pipeline_mode = #tpu.pipeline_mode<synchronous>, transform_indices = @transform_9, window_bounds = array<i64: 1, 32>}, {pipeline_mode = #tpu.pipeline_mode<synchronous>, transform_indices = @transform_10, window_bounds = array<i64: 32, 32>}, {pipeline_mode = #tpu.pipeline_mode<synchronous>, transform_indices = @transform_11, window_bounds = array<i64: 1, 32>}, {pipeline_mode = #tpu.pipeline_mode<synchronous>, transform_indices = @transform_12, window_bounds = array<i64: 32, 64>}, {pipeline_mode = #tpu.pipeline_mode<synchronous>, transform_indices = @transform_13, window_bounds = array<i64: 1, 64>}, {pipeline_mode = #tpu.pipeline_mode<synchronous>, transform_indices = @transform_14, window_bounds = array<i64: 64, 32>}, {pipeline_mode = #tpu.pipeline_mode<synchronous>, transform_indices = @transform_15, window_bounds = array<i64: 1, 32>}, {transform_indices = @transform_16, window_bounds = array<i64: 1, 130, 32>}]} {
    %c0 = arith.constant 0 : index
    %c0_0 = arith.constant 0 : index
    %0 = vector.load %arg7[%c0, %c0_0] : memref<32x64xbf16, #tpu.memory_space<vmem>>, vector<32x64xbf16>
    %c0_1 = arith.constant 0 : index
    %c0_2 = arith.constant 0 : index
    %1 = vector.load %arg8[%c0_1, %c0_2] : memref<1x64xf32, #tpu.memory_space<vmem>>, vector<1x64xf32>
    %c0_3 = arith.constant 0 : index
    %c0_4 = arith.constant 0 : index
    %2 = vector.load %arg9[%c0_3, %c0_4] : memref<32x32xbf16, #tpu.memory_space<vmem>>, vector<32x32xbf16>
    %c0_5 = arith.constant 0 : index
    %c0_6 = arith.constant 0 : index
    %3 = vector.load %arg10[%c0_5, %c0_6] : memref<1x32xf32, #tpu.memory_space<vmem>>, vector<1x32xf32>
    %c0_7 = arith.constant 0 : index
    %c0_8 = arith.constant 0 : index
    %4 = vector.load %arg11[%c0_7, %c0_8] : memref<32x32xbf16, #tpu.memory_space<vmem>>, vector<32x32xbf16>
    %c0_9 = arith.constant 0 : index
    %c0_10 = arith.constant 0 : index
    %5 = vector.load %arg12[%c0_9, %c0_10] : memref<1x32xf32, #tpu.memory_space<vmem>>, vector<1x32xf32>
    %c0_11 = arith.constant 0 : index
    %c0_12 = arith.constant 0 : index
    %6 = vector.load %arg13[%c0_11, %c0_12] : memref<32x64xbf16, #tpu.memory_space<vmem>>, vector<32x64xbf16>
    %c0_13 = arith.constant 0 : index
    %c0_14 = arith.constant 0 : index
    %7 = vector.load %arg14[%c0_13, %c0_14] : memref<1x64xf32, #tpu.memory_space<vmem>>, vector<1x64xf32>
    %c0_15 = arith.constant 0 : index
    %c0_16 = arith.constant 0 : index
    %8 = vector.load %arg15[%c0_15, %c0_16] : memref<64x32xbf16, #tpu.memory_space<vmem>>, vector<64x32xbf16>
    %c0_17 = arith.constant 0 : index
    %c0_18 = arith.constant 0 : index
    %9 = vector.load %arg16[%c0_17, %c0_18] : memref<1x32xf32, #tpu.memory_space<vmem>>, vector<1x32xf32>
    %c0_19 = arith.constant 0 : index
    %c0_20 = arith.constant 0 : index
    %c0_21 = arith.constant 0 : index
    %10 = vector.load %arg1[%c0_19, %c0_20, %c0_21] : memref<1x1x14xf32, #tpu.memory_space<vmem>>, vector<1x1x14xf32>
    %11 = vector.shape_cast %10 : vector<1x1x14xf32> to vector<1x14xf32>
    %c0_22 = arith.constant 0 : index
    %c0_23 = arith.constant 0 : index
    %c0_24 = arith.constant 0 : index
    %12 = vector.load %arg2[%c0_22, %c0_23, %c0_24] : memref<1x1x32xf32, #tpu.memory_space<vmem>>, vector<1x1x32xf32>
    %13 = vector.shape_cast %12 : vector<1x1x32xf32> to vector<1x32xf32>
    %c0_25 = arith.constant 0 : index
    %c0_26 = arith.constant 0 : index
    %c0_27 = arith.constant 0 : index
    %14 = vector.load %arg3[%c0_25, %c0_26, %c0_27] : memref<1x128x32xf32, #tpu.memory_space<vmem>>, vector<1x128x32xf32>
    %15 = vector.shape_cast %14 : vector<1x128x32xf32> to vector<128x32xf32>
    %c0_28 = arith.constant 0 : index
    %c0_29 = arith.constant 0 : index
    %16 = vector.load %arg4[%c0_28, %c0_29] : memref<130x32xf32, #tpu.memory_space<vmem>>, vector<130x32xf32>
    %c0_30 = arith.constant 0 : index
    %c0_31 = arith.constant 0 : index
    %17 = vector.load %arg5[%c0_30, %c0_31] : memref<14x32xbf16, #tpu.memory_space<vmem>>, vector<14x32xbf16>
    %c0_32 = arith.constant 0 : index
    %c0_33 = arith.constant 0 : index
    %18 = vector.load %arg6[%c0_32, %c0_33] : memref<1x32xf32, #tpu.memory_space<vmem>>, vector<1x32xf32>
    %19 = arith.truncf %11 : vector<1x14xf32> to vector<1x14xbf16>
    %cst = arith.constant dense<0.000000e+00> : vector<1x32xf32>
    %20 = tpu.matmul %19, %17, %cst {dimension_numbers = #tpu.dot_dimension_numbers<[1], [0], [0], [1], [0, 0, 1, 1], [], []>} : vector<1x14xbf16>, vector<14x32xbf16>, vector<1x32xf32> -> vector<1x32xf32>
    %21 = arith.addf %20, %18 : vector<1x32xf32>
    %22 = tpu.concatenate %13, %21, %15 in 0 : vector<1x32xf32>, vector<1x32xf32>, vector<128x32xf32> -> vector<130x32xf32>
    %23 = arith.addf %22, %16 : vector<130x32xf32>
    %24 = arith.truncf %23 : vector<130x32xf32> to vector<130x32xbf16>
    %cst_34 = arith.constant dense<0.000000e+00> : vector<130x64xf32>
    %25 = tpu.matmul %24, %0, %cst_34 {dimension_numbers = #tpu.dot_dimension_numbers<[1], [0], [0], [1], [0, 0, 1, 1], [], []>} : vector<130x32xbf16>, vector<32x64xbf16>, vector<130x64xf32> -> vector<130x64xf32>
    %26 = vector.broadcast %1 : vector<1x64xf32> to vector<130x64xf32>
    %27 = arith.addf %25, %26 : vector<130x64xf32>
    %28 = vector.extract_strided_slice %27 {offsets = [0, 0], sizes = [130, 32], strides = [1, 1]} : vector<130x64xf32> to vector<130x32xf32>
    %29 = vector.extract_strided_slice %27 {offsets = [0, 32], sizes = [130, 32], strides = [1, 1]} : vector<130x64xf32> to vector<130x32xf32>
    %30 = arith.truncf %22 : vector<130x32xf32> to vector<130x32xbf16>
    %cst_35 = arith.constant dense<0.000000e+00> : vector<130x32xf32>
    %31 = tpu.matmul %30, %2, %cst_35 {dimension_numbers = #tpu.dot_dimension_numbers<[1], [0], [0], [1], [0, 0, 1, 1], [], []>} : vector<130x32xbf16>, vector<32x32xbf16>, vector<130x32xf32> -> vector<130x32xf32>
    %32 = vector.broadcast %3 : vector<1x32xf32> to vector<130x32xf32>
    %33 = arith.addf %31, %32 : vector<130x32xf32>
    %34 = arith.truncf %28 : vector<130x32xf32> to vector<130x32xbf16>
    %35 = arith.truncf %29 : vector<130x32xf32> to vector<130x32xbf16>
    %cst_36 = arith.constant dense<0.000000e+00> : vector<130x130xf32>
    %36 = tpu.matmul %34, %35, %cst_36 {dimension_numbers = #tpu.dot_dimension_numbers<[1], [1], [0], [0], [0, 0, 1, 0], [], []>} : vector<130x32xbf16>, vector<130x32xbf16>, vector<130x130xf32> -> vector<130x130xf32>
    %cst_37 = arith.constant 0.176776692 : f32
    %37 = vector.broadcast %cst_37 : f32 to vector<130x130xf32>
    %38 = arith.mulf %36, %37 : vector<130x130xf32>
    %cst_38 = arith.constant dense<0xFF800000> : vector<130xf32>
    %39 = vector.multi_reduction <maximumf>, %38, %cst_38 [1] : vector<130x130xf32> to vector<130xf32>
    %40 = vector.shape_cast %39 : vector<130xf32> to vector<130x1xf32>
    %41 = vector.broadcast %40 : vector<130x1xf32> to vector<130x130xf32>
    %42 = arith.subf %38, %41 : vector<130x130xf32>
    %43 = math.exp %42 : vector<130x130xf32>
    %cst_39 = arith.constant dense<0.000000e+00> : vector<130xf32>
    %44 = vector.multi_reduction <add>, %43, %cst_39 [1] : vector<130x130xf32> to vector<130xf32>
    %45 = vector.shape_cast %44 : vector<130xf32> to vector<130x1xf32>
    %46 = tpu.reciprocal %45 {approx = true} : vector<130x1xf32> -> vector<130x1xf32>
    %47 = vector.broadcast %46 : vector<130x1xf32> to vector<130x130xf32>
    %48 = arith.mulf %43, %47 : vector<130x130xf32>
    %49 = arith.truncf %48 : vector<130x130xf32> to vector<130x130xbf16>
    %50 = arith.truncf %33 : vector<130x32xf32> to vector<130x32xbf16>
    %cst_40 = arith.constant dense<0.000000e+00> : vector<130x32xf32>
    %51 = tpu.matmul %49, %50, %cst_40 {dimension_numbers = #tpu.dot_dimension_numbers<[1], [0], [0], [1], [0, 0, 1, 1], [], []>} : vector<130x130xbf16>, vector<130x32xbf16>, vector<130x32xf32> -> vector<130x32xf32>
    %52 = arith.truncf %51 : vector<130x32xf32> to vector<130x32xbf16>
    %cst_41 = arith.constant dense<0.000000e+00> : vector<130x32xf32>
    %53 = tpu.matmul %52, %4, %cst_41 {dimension_numbers = #tpu.dot_dimension_numbers<[1], [0], [0], [1], [0, 0, 1, 1], [], []>} : vector<130x32xbf16>, vector<32x32xbf16>, vector<130x32xf32> -> vector<130x32xf32>
    %54 = vector.broadcast %5 : vector<1x32xf32> to vector<130x32xf32>
    %55 = arith.addf %53, %54 : vector<130x32xf32>
    %56 = arith.addf %22, %55 : vector<130x32xf32>
    %cst_42 = arith.constant dense<0.000000e+00> : vector<130xf32>
    %57 = vector.multi_reduction <add>, %56, %cst_42 [1] : vector<130x32xf32> to vector<130xf32>
    %58 = vector.shape_cast %57 : vector<130xf32> to vector<130x1xf32>
    %cst_43 = arith.constant 3.200000e+01 : f32
    %59 = vector.broadcast %cst_43 : f32 to vector<130x1xf32>
    %60 = arith.divf %58, %59 : vector<130x1xf32>
    %61 = vector.broadcast %60 : vector<130x1xf32> to vector<130x32xf32>
    %62 = arith.subf %56, %61 : vector<130x32xf32>
    %63 = arith.mulf %62, %62 : vector<130x32xf32>
    %cst_44 = arith.constant dense<0.000000e+00> : vector<130xf32>
    %64 = vector.multi_reduction <add>, %63, %cst_44 [1] : vector<130x32xf32> to vector<130xf32>
    %65 = vector.shape_cast %64 : vector<130xf32> to vector<130x1xf32>
    %cst_45 = arith.constant 3.200000e+01 : f32
    %66 = vector.broadcast %cst_45 : f32 to vector<130x1xf32>
    %67 = arith.divf %65, %66 : vector<130x1xf32>
    %68 = vector.broadcast %60 : vector<130x1xf32> to vector<130x32xf32>
    %69 = arith.subf %56, %68 : vector<130x32xf32>
    %cst_46 = arith.constant 9.99999974E-6 : f32
    %70 = vector.broadcast %cst_46 : f32 to vector<130x1xf32>
    %71 = arith.addf %67, %70 : vector<130x1xf32>
    %72 = math.rsqrt %71 : vector<130x1xf32>
    %73 = vector.broadcast %72 : vector<130x1xf32> to vector<130x32xf32>
    %74 = arith.mulf %69, %73 : vector<130x32xf32>
    %75 = arith.truncf %74 : vector<130x32xf32> to vector<130x32xbf16>
    %cst_47 = arith.constant dense<0.000000e+00> : vector<130x64xf32>
    %76 = tpu.matmul %75, %6, %cst_47 {dimension_numbers = #tpu.dot_dimension_numbers<[1], [0], [0], [1], [0, 0, 1, 1], [], []>} : vector<130x32xbf16>, vector<32x64xbf16>, vector<130x64xf32> -> vector<130x64xf32>
    %77 = vector.broadcast %7 : vector<1x64xf32> to vector<130x64xf32>
    %78 = arith.addf %76, %77 : vector<130x64xf32>
    %cst_48 = arith.constant 0.000000e+00 : f32
    %79 = vector.broadcast %cst_48 : f32 to vector<130x64xf32>
    %80 = arith.maximumf %78, %79 : vector<130x64xf32>
    %81 = arith.truncf %80 : vector<130x64xf32> to vector<130x64xbf16>
    %cst_49 = arith.constant dense<0.000000e+00> : vector<130x32xf32>
    %82 = tpu.matmul %81, %8, %cst_49 {dimension_numbers = #tpu.dot_dimension_numbers<[1], [0], [0], [1], [0, 0, 1, 1], [], []>} : vector<130x64xbf16>, vector<64x32xbf16>, vector<130x32xf32> -> vector<130x32xf32>
    %83 = vector.broadcast %9 : vector<1x32xf32> to vector<130x32xf32>
    %84 = arith.addf %82, %83 : vector<130x32xf32>
    %85 = arith.addf %74, %84 : vector<130x32xf32>
    %cst_50 = arith.constant dense<0.000000e+00> : vector<130xf32>
    %86 = vector.multi_reduction <add>, %85, %cst_50 [1] : vector<130x32xf32> to vector<130xf32>
    %87 = vector.shape_cast %86 : vector<130xf32> to vector<130x1xf32>
    %cst_51 = arith.constant 3.200000e+01 : f32
    %88 = vector.broadcast %cst_51 : f32 to vector<130x1xf32>
    %89 = arith.divf %87, %88 : vector<130x1xf32>
    %90 = vector.broadcast %89 : vector<130x1xf32> to vector<130x32xf32>
    %91 = arith.subf %85, %90 : vector<130x32xf32>
    %92 = arith.mulf %91, %91 : vector<130x32xf32>
    %cst_52 = arith.constant dense<0.000000e+00> : vector<130xf32>
    %93 = vector.multi_reduction <add>, %92, %cst_52 [1] : vector<130x32xf32> to vector<130xf32>
    %94 = vector.shape_cast %93 : vector<130xf32> to vector<130x1xf32>
    %cst_53 = arith.constant 3.200000e+01 : f32
    %95 = vector.broadcast %cst_53 : f32 to vector<130x1xf32>
    %96 = arith.divf %94, %95 : vector<130x1xf32>
    %97 = vector.broadcast %89 : vector<130x1xf32> to vector<130x32xf32>
    %98 = arith.subf %85, %97 : vector<130x32xf32>
    %cst_54 = arith.constant 9.99999974E-6 : f32
    %99 = vector.broadcast %cst_54 : f32 to vector<130x1xf32>
    %100 = arith.addf %96, %99 : vector<130x1xf32>
    %101 = math.rsqrt %100 : vector<130x1xf32>
    %102 = vector.broadcast %101 : vector<130x1xf32> to vector<130x32xf32>
    %103 = arith.mulf %98, %102 : vector<130x32xf32>
    %c0_55 = arith.constant 0 : index
    %c0_56 = arith.constant 0 : index
    %c0_57 = arith.constant 0 : index
    %104 = vector.load %arg17[%c0_55, %c0_56, %c0_57] : memref<1x130x32xf32, #tpu.memory_space<vmem>>, vector<1x130x32xf32>
    %105 = vector.shape_cast %104 : vector<1x130x32xf32> to vector<130x32xf32>
    %106 = vector.shape_cast %103 : vector<130x32xf32> to vector<1x130x32xf32>
    tpu.vector_store %arg17[%c0_55, %c0_56, %c0_57], %106 {strides = array<i32>} : memref<1x130x32xf32, #tpu.memory_space<vmem>>, vector<1x130x32xf32>,
    return
  }
  func.func @transform_0(%arg0: i32) -> (i32, i32, i32) {
    %c0_i32 = arith.constant 0 : i32
    %c0_i32_0 = arith.constant 0 : i32
    %c0_i32_1 = arith.constant 0 : i32
    return %arg0, %c0_i32, %c0_i32_0 : i32, i32, i32
  }
  func.func @transform_1(%arg0: i32) -> (i32, i32, i32) {
    %c0_i32 = arith.constant 0 : i32
    %c0_i32_0 = arith.constant 0 : i32
    %c0_i32_1 = arith.constant 0 : i32
    return %arg0, %c0_i32, %c0_i32_0 : i32, i32, i32
  }
  func.func @transform_2(%arg0: i32) -> (i32, i32, i32) {
    %c0_i32 = arith.constant 0 : i32
    %c0_i32_0 = arith.constant 0 : i32
    %c0_i32_1 = arith.constant 0 : i32
    return %arg0, %c0_i32, %c0_i32_0 : i32, i32, i32
  }
  func.func @transform_3(%arg0: i32) -> (i32, i32) {
    %c0_i32 = arith.constant 0 : i32
    %c0_i32_0 = arith.constant 0 : i32
    %c0_i32_1 = arith.constant 0 : i32
    return %c0_i32, %c0_i32_0 : i32, i32
  }
  func.func @transform_4(%arg0: i32) -> (i32, i32) {
    %c0_i32 = arith.constant 0 : i32
    %c0_i32_0 = arith.constant 0 : i32
    %c0_i32_1 = arith.constant 0 : i32
    return %c0_i32, %c0_i32_0 : i32, i32
  }
  func.func @transform_5(%arg0: i32) -> (i32, i32) {
    %c0_i32 = arith.constant 0 : i32
    %c0_i32_0 = arith.constant 0 : i32
    %c0_i32_1 = arith.constant 0 : i32
    return %c0_i32, %c0_i32_0 : i32, i32
  }
  func.func @transform_6(%arg0: i32) -> (i32, i32) {
    %c0_i32 = arith.constant 0 : i32
    %c0_i32_0 = arith.constant 0 : i32
    %c0_i32_1 = arith.constant 0 : i32
    return %c0_i32, %c0_i32_0 : i32, i32
  }
  func.func @transform_7(%arg0: i32) -> (i32, i32) {
    %c0_i32 = arith.constant 0 : i32
    %c0_i32_0 = arith.constant 0 : i32
    %c0_i32_1 = arith.constant 0 : i32
    return %c0_i32, %c0_i32_0 : i32, i32
  }
  func.func @transform_8(%arg0: i32) -> (i32, i32) {
    %c0_i32 = arith.constant 0 : i32
    %c0_i32_0 = arith.constant 0 : i32
    %c0_i32_1 = arith.constant 0 : i32
    return %c0_i32, %c0_i32_0 : i32, i32
  }
  func.func @transform_9(%arg0: i32) -> (i32, i32) {
    %c0_i32 = arith.constant 0 : i32
    %c0_i32_0 = arith.constant 0 : i32
    %c0_i32_1 = arith.constant 0 : i32
    return %c0_i32, %c0_i32_0 : i32, i32
  }
  func.func @transform_10(%arg0: i32) -> (i32, i32) {
    %c0_i32 = arith.constant 0 : i32
    %c0_i32_0 = arith.constant 0 : i32
    %c0_i32_1 = arith.constant 0 : i32
    return %c0_i32, %c0_i32_0 : i32, i32
  }
  func.func @transform_11(%arg0: i32) -> (i32, i32) {
    %c0_i32 = arith.constant 0 : i32
    %c0_i32_0 = arith.constant 0 : i32
    %c0_i32_1 = arith.constant 0 : i32
    return %c0_i32, %c0_i32_0 : i32, i32
  }
  func.func @transform_12(%arg0: i32) -> (i32, i32) {
    %c0_i32 = arith.constant 0 : i32
    %c0_i32_0 = arith.constant 0 : i32
    %c0_i32_1 = arith.constant 0 : i32
    return %c0_i32, %c0_i32_0 : i32, i32
  }
  func.func @transform_13(%arg0: i32) -> (i32, i32) {
    %c0_i32 = arith.constant 0 : i32
    %c0_i32_0 = arith.constant 0 : i32
    %c0_i32_1 = arith.constant 0 : i32
    return %c0_i32, %c0_i32_0 : i32, i32
  }
  func.func @transform_14(%arg0: i32) -> (i32, i32) {
    %c0_i32 = arith.constant 0 : i32
    %c0_i32_0 = arith.constant 0 : i32
    %c0_i32_1 = arith.constant 0 : i32
    return %c0_i32, %c0_i32_0 : i32, i32
  }
  func.func @transform_15(%arg0: i32) -> (i32, i32) {
    %c0_i32 = arith.constant 0 : i32
    %c0_i32_0 = arith.constant 0 : i32
    %c0_i32_1 = arith.constant 0 : i32
    return %c0_i32, %c0_i32_0 : i32, i32
  }
  func.func @transform_16(%arg0: i32) -> (i32, i32, i32) {
    %c0_i32 = arith.constant 0 : i32
    %c0_i32_0 = arith.constant 0 : i32
    %c0_i32_1 = arith.constant 0 : i32
    return %arg0, %c0_i32, %c0_i32_0 : i32, i32, i32
  }
}

module attributes {stable_mosaic.version = 11 : i64} {
  func.func @_decoder_kernel(%arg0: i32, %arg1: memref<1x130x32xf32, #tpu.memory_space<vmem>>, %arg2: memref<130x32xf32, #tpu.memory_space<vmem>>, %arg3: memref<8x32xf32, #tpu.memory_space<vmem>>, %arg4: memref<32x32xbf16, #tpu.memory_space<vmem>>, %arg5: memref<1x32xf32, #tpu.memory_space<vmem>>, %arg6: memref<32x32xbf16, #tpu.memory_space<vmem>>, %arg7: memref<1x32xf32, #tpu.memory_space<vmem>>, %arg8: memref<32x32xbf16, #tpu.memory_space<vmem>>, %arg9: memref<1x32xf32, #tpu.memory_space<vmem>>, %arg10: memref<32x32xbf16, #tpu.memory_space<vmem>>, %arg11: memref<1x32xf32, #tpu.memory_space<vmem>>, %arg12: memref<32x64xbf16, #tpu.memory_space<vmem>>, %arg13: memref<1x64xf32, #tpu.memory_space<vmem>>, %arg14: memref<64x32xbf16, #tpu.memory_space<vmem>>, %arg15: memref<1x32xf32, #tpu.memory_space<vmem>>, %arg16: memref<32x128xbf16, #tpu.memory_space<vmem>>, %arg17: memref<1x128xf32, #tpu.memory_space<vmem>>, %arg18: memref<1x8x128xf32, #tpu.memory_space<vmem>>) attributes {dimension_semantics = [#tpu.dimension_semantics<parallel>], iteration_bounds = array<i64: 2>, scalar_prefetch = 0 : i64, scratch_operands = 0 : i64, tpu.core_type = #tpu.core_type<tc>, window_params = [{transform_indices = @transform_0, window_bounds = array<i64: 1, 130, 32>}, {pipeline_mode = #tpu.pipeline_mode<synchronous>, transform_indices = @transform_1, window_bounds = array<i64: 130, 32>}, {pipeline_mode = #tpu.pipeline_mode<synchronous>, transform_indices = @transform_2, window_bounds = array<i64: 8, 32>}, {pipeline_mode = #tpu.pipeline_mode<synchronous>, transform_indices = @transform_3, window_bounds = array<i64: 32, 32>}, {pipeline_mode = #tpu.pipeline_mode<synchronous>, transform_indices = @transform_4, window_bounds = array<i64: 1, 32>}, {pipeline_mode = #tpu.pipeline_mode<synchronous>, transform_indices = @transform_5, window_bounds = array<i64: 32, 32>}, {pipeline_mode = #tpu.pipeline_mode<synchronous>, transform_indices = @transform_6, window_bounds = array<i64: 1, 32>}, {pipeline_mode = #tpu.pipeline_mode<synchronous>, transform_indices = @transform_7, window_bounds = array<i64: 32, 32>}, {pipeline_mode = #tpu.pipeline_mode<synchronous>, transform_indices = @transform_8, window_bounds = array<i64: 1, 32>}, {pipeline_mode = #tpu.pipeline_mode<synchronous>, transform_indices = @transform_9, window_bounds = array<i64: 32, 32>}, {pipeline_mode = #tpu.pipeline_mode<synchronous>, transform_indices = @transform_10, window_bounds = array<i64: 1, 32>}, {pipeline_mode = #tpu.pipeline_mode<synchronous>, transform_indices = @transform_11, window_bounds = array<i64: 32, 64>}, {pipeline_mode = #tpu.pipeline_mode<synchronous>, transform_indices = @transform_12, window_bounds = array<i64: 1, 64>}, {pipeline_mode = #tpu.pipeline_mode<synchronous>, transform_indices = @transform_13, window_bounds = array<i64: 64, 32>}, {pipeline_mode = #tpu.pipeline_mode<synchronous>, transform_indices = @transform_14, window_bounds = array<i64: 1, 32>}, {pipeline_mode = #tpu.pipeline_mode<synchronous>, transform_indices = @transform_15, window_bounds = array<i64: 32, 128>}, {pipeline_mode = #tpu.pipeline_mode<synchronous>, transform_indices = @transform_16, window_bounds = array<i64: 1, 128>}, {transform_indices = @transform_17, window_bounds = array<i64: 1, 8, 128>}]} {
    %c0 = arith.constant 0 : index
    %c0_0 = arith.constant 0 : index
    %0 = vector.load %arg4[%c0, %c0_0] : memref<32x32xbf16, #tpu.memory_space<vmem>>, vector<32x32xbf16>
    %c0_1 = arith.constant 0 : index
    %c0_2 = arith.constant 0 : index
    %1 = vector.load %arg5[%c0_1, %c0_2] : memref<1x32xf32, #tpu.memory_space<vmem>>, vector<1x32xf32>
    %c0_3 = arith.constant 0 : index
    %c0_4 = arith.constant 0 : index
    %2 = vector.load %arg6[%c0_3, %c0_4] : memref<32x32xbf16, #tpu.memory_space<vmem>>, vector<32x32xbf16>
    %c0_5 = arith.constant 0 : index
    %c0_6 = arith.constant 0 : index
    %3 = vector.load %arg7[%c0_5, %c0_6] : memref<1x32xf32, #tpu.memory_space<vmem>>, vector<1x32xf32>
    %c0_7 = arith.constant 0 : index
    %c0_8 = arith.constant 0 : index
    %4 = vector.load %arg8[%c0_7, %c0_8] : memref<32x32xbf16, #tpu.memory_space<vmem>>, vector<32x32xbf16>
    %c0_9 = arith.constant 0 : index
    %c0_10 = arith.constant 0 : index
    %5 = vector.load %arg9[%c0_9, %c0_10] : memref<1x32xf32, #tpu.memory_space<vmem>>, vector<1x32xf32>
    %c0_11 = arith.constant 0 : index
    %c0_12 = arith.constant 0 : index
    %6 = vector.load %arg10[%c0_11, %c0_12] : memref<32x32xbf16, #tpu.memory_space<vmem>>, vector<32x32xbf16>
    %c0_13 = arith.constant 0 : index
    %c0_14 = arith.constant 0 : index
    %7 = vector.load %arg11[%c0_13, %c0_14] : memref<1x32xf32, #tpu.memory_space<vmem>>, vector<1x32xf32>
    %c0_15 = arith.constant 0 : index
    %c0_16 = arith.constant 0 : index
    %8 = vector.load %arg12[%c0_15, %c0_16] : memref<32x64xbf16, #tpu.memory_space<vmem>>, vector<32x64xbf16>
    %c0_17 = arith.constant 0 : index
    %c0_18 = arith.constant 0 : index
    %9 = vector.load %arg13[%c0_17, %c0_18] : memref<1x64xf32, #tpu.memory_space<vmem>>, vector<1x64xf32>
    %c0_19 = arith.constant 0 : index
    %c0_20 = arith.constant 0 : index
    %10 = vector.load %arg14[%c0_19, %c0_20] : memref<64x32xbf16, #tpu.memory_space<vmem>>, vector<64x32xbf16>
    %c0_21 = arith.constant 0 : index
    %c0_22 = arith.constant 0 : index
    %11 = vector.load %arg15[%c0_21, %c0_22] : memref<1x32xf32, #tpu.memory_space<vmem>>, vector<1x32xf32>
    %c0_23 = arith.constant 0 : index
    %c0_24 = arith.constant 0 : index
    %c0_25 = arith.constant 0 : index
    %12 = vector.load %arg1[%c0_23, %c0_24, %c0_25] : memref<1x130x32xf32, #tpu.memory_space<vmem>>, vector<1x130x32xf32>
    %13 = vector.shape_cast %12 : vector<1x130x32xf32> to vector<130x32xf32>
    %c0_26 = arith.constant 0 : index
    %c0_27 = arith.constant 0 : index
    %14 = vector.load %arg2[%c0_26, %c0_27] : memref<130x32xf32, #tpu.memory_space<vmem>>, vector<130x32xf32>
    %c0_28 = arith.constant 0 : index
    %c0_29 = arith.constant 0 : index
    %15 = vector.load %arg3[%c0_28, %c0_29] : memref<8x32xf32, #tpu.memory_space<vmem>>, vector<8x32xf32>
    %c0_30 = arith.constant 0 : index
    %c0_31 = arith.constant 0 : index
    %16 = vector.load %arg16[%c0_30, %c0_31] : memref<32x128xbf16, #tpu.memory_space<vmem>>, vector<32x128xbf16>
    %c0_32 = arith.constant 0 : index
    %c0_33 = arith.constant 0 : index
    %17 = vector.load %arg17[%c0_32, %c0_33] : memref<1x128xf32, #tpu.memory_space<vmem>>, vector<1x128xf32>
    %cst = arith.constant 0.000000e+00 : f32
    %18 = vector.broadcast %cst : f32 to vector<8x32xf32>
    %19 = arith.addf %18, %15 : vector<8x32xf32>
    %20 = arith.truncf %19 : vector<8x32xf32> to vector<8x32xbf16>
    %cst_34 = arith.constant dense<0.000000e+00> : vector<8x32xf32>
    %21 = tpu.matmul %20, %0, %cst_34 {dimension_numbers = #tpu.dot_dimension_numbers<[1], [0], [0], [1], [0, 0, 1, 1], [], []>} : vector<8x32xbf16>, vector<32x32xbf16>, vector<8x32xf32> -> vector<8x32xf32>
    %22 = vector.broadcast %1 : vector<1x32xf32> to vector<8x32xf32>
    %23 = arith.addf %21, %22 : vector<8x32xf32>
    %24 = arith.addf %13, %14 : vector<130x32xf32>
    %25 = arith.truncf %24 : vector<130x32xf32> to vector<130x32xbf16>
    %cst_35 = arith.constant dense<0.000000e+00> : vector<130x32xf32>
    %26 = tpu.matmul %25, %2, %cst_35 {dimension_numbers = #tpu.dot_dimension_numbers<[1], [0], [0], [1], [0, 0, 1, 1], [], []>} : vector<130x32xbf16>, vector<32x32xbf16>, vector<130x32xf32> -> vector<130x32xf32>
    %27 = vector.broadcast %3 : vector<1x32xf32> to vector<130x32xf32>
    %28 = arith.addf %26, %27 : vector<130x32xf32>
    %29 = arith.truncf %13 : vector<130x32xf32> to vector<130x32xbf16>
    %cst_36 = arith.constant dense<0.000000e+00> : vector<130x32xf32>
    %30 = tpu.matmul %29, %4, %cst_36 {dimension_numbers = #tpu.dot_dimension_numbers<[1], [0], [0], [1], [0, 0, 1, 1], [], []>} : vector<130x32xbf16>, vector<32x32xbf16>, vector<130x32xf32> -> vector<130x32xf32>
    %31 = vector.broadcast %5 : vector<1x32xf32> to vector<130x32xf32>
    %32 = arith.addf %30, %31 : vector<130x32xf32>
    %33 = arith.truncf %23 : vector<8x32xf32> to vector<8x32xbf16>
    %34 = arith.truncf %28 : vector<130x32xf32> to vector<130x32xbf16>
    %cst_37 = arith.constant dense<0.000000e+00> : vector<8x130xf32>
    %35 = tpu.matmul %33, %34, %cst_37 {dimension_numbers = #tpu.dot_dimension_numbers<[1], [1], [0], [0], [0, 0, 1, 0], [], []>} : vector<8x32xbf16>, vector<130x32xbf16>, vector<8x130xf32> -> vector<8x130xf32>
    %cst_38 = arith.constant 0.176776692 : f32
    %36 = vector.broadcast %cst_38 : f32 to vector<8x130xf32>
    %37 = arith.mulf %35, %36 : vector<8x130xf32>
    %cst_39 = arith.constant dense<0xFF800000> : vector<8xf32>
    %38 = vector.multi_reduction <maximumf>, %37, %cst_39 [1] : vector<8x130xf32> to vector<8xf32>
    %39 = vector.shape_cast %38 : vector<8xf32> to vector<8x1xf32>
    %40 = vector.broadcast %39 : vector<8x1xf32> to vector<8x130xf32>
    %41 = arith.subf %37, %40 : vector<8x130xf32>
    %42 = math.exp %41 : vector<8x130xf32>
    %cst_40 = arith.constant dense<0.000000e+00> : vector<8xf32>
    %43 = vector.multi_reduction <add>, %42, %cst_40 [1] : vector<8x130xf32> to vector<8xf32>
    %44 = vector.shape_cast %43 : vector<8xf32> to vector<8x1xf32>
    %45 = tpu.reciprocal %44 {approx = true} : vector<8x1xf32> -> vector<8x1xf32>
    %46 = vector.broadcast %45 : vector<8x1xf32> to vector<8x130xf32>
    %47 = arith.mulf %42, %46 : vector<8x130xf32>
    %48 = arith.truncf %47 : vector<8x130xf32> to vector<8x130xbf16>
    %49 = arith.truncf %32 : vector<130x32xf32> to vector<130x32xbf16>
    %cst_41 = arith.constant dense<0.000000e+00> : vector<8x32xf32>
    %50 = tpu.matmul %48, %49, %cst_41 {dimension_numbers = #tpu.dot_dimension_numbers<[1], [0], [0], [1], [0, 0, 1, 1], [], []>} : vector<8x130xbf16>, vector<130x32xbf16>, vector<8x32xf32> -> vector<8x32xf32>
    %51 = arith.truncf %50 : vector<8x32xf32> to vector<8x32xbf16>
    %cst_42 = arith.constant dense<0.000000e+00> : vector<8x32xf32>
    %52 = tpu.matmul %51, %6, %cst_42 {dimension_numbers = #tpu.dot_dimension_numbers<[1], [0], [0], [1], [0, 0, 1, 1], [], []>} : vector<8x32xbf16>, vector<32x32xbf16>, vector<8x32xf32> -> vector<8x32xf32>
    %53 = vector.broadcast %7 : vector<1x32xf32> to vector<8x32xf32>
    %54 = arith.addf %52, %53 : vector<8x32xf32>
    %55 = arith.addf %18, %54 : vector<8x32xf32>
    %cst_43 = arith.constant dense<0.000000e+00> : vector<8xf32>
    %56 = vector.multi_reduction <add>, %55, %cst_43 [1] : vector<8x32xf32> to vector<8xf32>
    %57 = vector.shape_cast %56 : vector<8xf32> to vector<8x1xf32>
    %cst_44 = arith.constant 3.200000e+01 : f32
    %58 = vector.broadcast %cst_44 : f32 to vector<8x1xf32>
    %59 = arith.divf %57, %58 : vector<8x1xf32>
    %60 = vector.broadcast %59 : vector<8x1xf32> to vector<8x32xf32>
    %61 = arith.subf %55, %60 : vector<8x32xf32>
    %62 = arith.mulf %61, %61 : vector<8x32xf32>
    %cst_45 = arith.constant dense<0.000000e+00> : vector<8xf32>
    %63 = vector.multi_reduction <add>, %62, %cst_45 [1] : vector<8x32xf32> to vector<8xf32>
    %64 = vector.shape_cast %63 : vector<8xf32> to vector<8x1xf32>
    %cst_46 = arith.constant 3.200000e+01 : f32
    %65 = vector.broadcast %cst_46 : f32 to vector<8x1xf32>
    %66 = arith.divf %64, %65 : vector<8x1xf32>
    %67 = vector.broadcast %59 : vector<8x1xf32> to vector<8x32xf32>
    %68 = arith.subf %55, %67 : vector<8x32xf32>
    %cst_47 = arith.constant 9.99999974E-6 : f32
    %69 = vector.broadcast %cst_47 : f32 to vector<8x1xf32>
    %70 = arith.addf %66, %69 : vector<8x1xf32>
    %71 = math.rsqrt %70 : vector<8x1xf32>
    %72 = vector.broadcast %71 : vector<8x1xf32> to vector<8x32xf32>
    %73 = arith.mulf %68, %72 : vector<8x32xf32>
    %74 = arith.truncf %73 : vector<8x32xf32> to vector<8x32xbf16>
    %cst_48 = arith.constant dense<0.000000e+00> : vector<8x64xf32>
    %75 = tpu.matmul %74, %8, %cst_48 {dimension_numbers = #tpu.dot_dimension_numbers<[1], [0], [0], [1], [0, 0, 1, 1], [], []>} : vector<8x32xbf16>, vector<32x64xbf16>, vector<8x64xf32> -> vector<8x64xf32>
    %76 = vector.broadcast %9 : vector<1x64xf32> to vector<8x64xf32>
    %77 = arith.addf %75, %76 : vector<8x64xf32>
    %cst_49 = arith.constant 0.000000e+00 : f32
    %78 = vector.broadcast %cst_49 : f32 to vector<8x64xf32>
    %79 = arith.maximumf %77, %78 : vector<8x64xf32>
    %80 = arith.truncf %79 : vector<8x64xf32> to vector<8x64xbf16>
    %cst_50 = arith.constant dense<0.000000e+00> : vector<8x32xf32>
    %81 = tpu.matmul %80, %10, %cst_50 {dimension_numbers = #tpu.dot_dimension_numbers<[1], [0], [0], [1], [0, 0, 1, 1], [], []>} : vector<8x64xbf16>, vector<64x32xbf16>, vector<8x32xf32> -> vector<8x32xf32>
    %82 = vector.broadcast %11 : vector<1x32xf32> to vector<8x32xf32>
    %83 = arith.addf %81, %82 : vector<8x32xf32>
    %84 = arith.addf %73, %83 : vector<8x32xf32>
    %cst_51 = arith.constant dense<0.000000e+00> : vector<8xf32>
    %85 = vector.multi_reduction <add>, %84, %cst_51 [1] : vector<8x32xf32> to vector<8xf32>
    %86 = vector.shape_cast %85 : vector<8xf32> to vector<8x1xf32>
    %cst_52 = arith.constant 3.200000e+01 : f32
    %87 = vector.broadcast %cst_52 : f32 to vector<8x1xf32>
    %88 = arith.divf %86, %87 : vector<8x1xf32>
    %89 = vector.broadcast %88 : vector<8x1xf32> to vector<8x32xf32>
    %90 = arith.subf %84, %89 : vector<8x32xf32>
    %91 = arith.mulf %90, %90 : vector<8x32xf32>
    %cst_53 = arith.constant dense<0.000000e+00> : vector<8xf32>
    %92 = vector.multi_reduction <add>, %91, %cst_53 [1] : vector<8x32xf32> to vector<8xf32>
    %93 = vector.shape_cast %92 : vector<8xf32> to vector<8x1xf32>
    %cst_54 = arith.constant 3.200000e+01 : f32
    %94 = vector.broadcast %cst_54 : f32 to vector<8x1xf32>
    %95 = arith.divf %93, %94 : vector<8x1xf32>
    %96 = vector.broadcast %88 : vector<8x1xf32> to vector<8x32xf32>
    %97 = arith.subf %84, %96 : vector<8x32xf32>
    %cst_55 = arith.constant 9.99999974E-6 : f32
    %98 = vector.broadcast %cst_55 : f32 to vector<8x1xf32>
    %99 = arith.addf %95, %98 : vector<8x1xf32>
    %100 = math.rsqrt %99 : vector<8x1xf32>
    %101 = vector.broadcast %100 : vector<8x1xf32> to vector<8x32xf32>
    %102 = arith.mulf %97, %101 : vector<8x32xf32>
    %103 = arith.truncf %102 : vector<8x32xf32> to vector<8x32xbf16>
    %cst_56 = arith.constant dense<0.000000e+00> : vector<8x128xf32>
    %104 = tpu.matmul %103, %16, %cst_56 {dimension_numbers = #tpu.dot_dimension_numbers<[1], [0], [0], [1], [0, 0, 1, 1], [], []>} : vector<8x32xbf16>, vector<32x128xbf16>, vector<8x128xf32> -> vector<8x128xf32>
    %105 = vector.broadcast %17 : vector<1x128xf32> to vector<8x128xf32>
    %106 = arith.addf %104, %105 : vector<8x128xf32>
    %c0_57 = arith.constant 0 : index
    %c0_58 = arith.constant 0 : index
    %c0_59 = arith.constant 0 : index
    %107 = vector.load %arg18[%c0_57, %c0_58, %c0_59] : memref<1x8x128xf32, #tpu.memory_space<vmem>>, vector<1x8x128xf32>
    %108 = vector.shape_cast %107 : vector<1x8x128xf32> to vector<8x128xf32>
    %109 = vector.shape_cast %106 : vector<8x128xf32> to vector<1x8x128xf32>
    tpu.vector_store %arg18[%c0_57, %c0_58, %c0_59], %109 {strides = array<i32>} : memref<1x8x128xf32, #tpu.memory_space<vmem>>, vector<1x8x128xf32>,
    return
  }
  func.func @transform_0(%arg0: i32) -> (i32, i32, i32) {
    %c0_i32 = arith.constant 0 : i32
    %c0_i32_0 = arith.constant 0 : i32
    %c0_i32_1 = arith.constant 0 : i32
    return %arg0, %c0_i32, %c0_i32_0 : i32, i32, i32
  }
  func.func @transform_1(%arg0: i32) -> (i32, i32) {
    %c0_i32 = arith.constant 0 : i32
    %c0_i32_0 = arith.constant 0 : i32
    %c0_i32_1 = arith.constant 0 : i32
    return %c0_i32, %c0_i32_0 : i32, i32
  }
  func.func @transform_2(%arg0: i32) -> (i32, i32) {
    %c0_i32 = arith.constant 0 : i32
    %c0_i32_0 = arith.constant 0 : i32
    %c0_i32_1 = arith.constant 0 : i32
    return %c0_i32, %c0_i32_0 : i32, i32
  }
  func.func @transform_3(%arg0: i32) -> (i32, i32) {
    %c0_i32 = arith.constant 0 : i32
    %c0_i32_0 = arith.constant 0 : i32
    %c0_i32_1 = arith.constant 0 : i32
    return %c0_i32, %c0_i32_0 : i32, i32
  }
  func.func @transform_4(%arg0: i32) -> (i32, i32) {
    %c0_i32 = arith.constant 0 : i32
    %c0_i32_0 = arith.constant 0 : i32
    %c0_i32_1 = arith.constant 0 : i32
    return %c0_i32, %c0_i32_0 : i32, i32
  }
  func.func @transform_5(%arg0: i32) -> (i32, i32) {
    %c0_i32 = arith.constant 0 : i32
    %c0_i32_0 = arith.constant 0 : i32
    %c0_i32_1 = arith.constant 0 : i32
    return %c0_i32, %c0_i32_0 : i32, i32
  }
  func.func @transform_6(%arg0: i32) -> (i32, i32) {
    %c0_i32 = arith.constant 0 : i32
    %c0_i32_0 = arith.constant 0 : i32
    %c0_i32_1 = arith.constant 0 : i32
    return %c0_i32, %c0_i32_0 : i32, i32
  }
  func.func @transform_7(%arg0: i32) -> (i32, i32) {
    %c0_i32 = arith.constant 0 : i32
    %c0_i32_0 = arith.constant 0 : i32
    %c0_i32_1 = arith.constant 0 : i32
    return %c0_i32, %c0_i32_0 : i32, i32
  }
  func.func @transform_8(%arg0: i32) -> (i32, i32) {
    %c0_i32 = arith.constant 0 : i32
    %c0_i32_0 = arith.constant 0 : i32
    %c0_i32_1 = arith.constant 0 : i32
    return %c0_i32, %c0_i32_0 : i32, i32
  }
  func.func @transform_9(%arg0: i32) -> (i32, i32) {
    %c0_i32 = arith.constant 0 : i32
    %c0_i32_0 = arith.constant 0 : i32
    %c0_i32_1 = arith.constant 0 : i32
    return %c0_i32, %c0_i32_0 : i32, i32
  }
  func.func @transform_10(%arg0: i32) -> (i32, i32) {
    %c0_i32 = arith.constant 0 : i32
    %c0_i32_0 = arith.constant 0 : i32
    %c0_i32_1 = arith.constant 0 : i32
    return %c0_i32, %c0_i32_0 : i32, i32
  }
  func.func @transform_11(%arg0: i32) -> (i32, i32) {
    %c0_i32 = arith.constant 0 : i32
    %c0_i32_0 = arith.constant 0 : i32
    %c0_i32_1 = arith.constant 0 : i32
    return %c0_i32, %c0_i32_0 : i32, i32
  }
  func.func @transform_12(%arg0: i32) -> (i32, i32) {
    %c0_i32 = arith.constant 0 : i32
    %c0_i32_0 = arith.constant 0 : i32
    %c0_i32_1 = arith.constant 0 : i32
    return %c0_i32, %c0_i32_0 : i32, i32
  }
  func.func @transform_13(%arg0: i32) -> (i32, i32) {
    %c0_i32 = arith.constant 0 : i32
    %c0_i32_0 = arith.constant 0 : i32
    %c0_i32_1 = arith.constant 0 : i32
    return %c0_i32, %c0_i32_0 : i32, i32
  }
  func.func @transform_14(%arg0: i32) -> (i32, i32) {
    %c0_i32 = arith.constant 0 : i32
    %c0_i32_0 = arith.constant 0 : i32
    %c0_i32_1 = arith.constant 0 : i32
    return %c0_i32, %c0_i32_0 : i32, i32
  }
  func.func @transform_15(%arg0: i32) -> (i32, i32) {
    %c0_i32 = arith.constant 0 : i32
    %c0_i32_0 = arith.constant 0 : i32
    %c0_i32_1 = arith.constant 0 : i32
    return %c0_i32, %c0_i32_0 : i32, i32
  }
  func.func @transform_16(%arg0: i32) -> (i32, i32) {
    %c0_i32 = arith.constant 0 : i32
    %c0_i32_0 = arith.constant 0 : i32
    %c0_i32_1 = arith.constant 0 : i32
    return %c0_i32, %c0_i32_0 : i32, i32
  }
  func.func @transform_17(%arg0: i32) -> (i32, i32, i32) {
    %c0_i32 = arith.constant 0 : i32
    %c0_i32_0 = arith.constant 0 : i32
    %c0_i32_1 = arith.constant 0 : i32
    return %arg0, %c0_i32, %c0_i32_0 : i32, i32, i32
  }
}

</mosaic_0001>

<bundles_post_ra>
// kernel: g_img_act_forward.4
= control target key start
LH: loop header
LB: loop body
LE: loop exit
PB: predicated region body
PF: predicated region fallthrough
CT: control target
= control target key end

     0   :  { %s784_s18 = smov 0   ;;  %s786_s19 = smov 0   ;;  %s941_s0 = inlined_call_operand.vmem [shape: f32[2,128,3], index: 0, kind: input, shape index: {}]   ;;  %s942_s1 = inlined_call_operand.vmem [shape: bf16[2,3,8], index: 1, kind: input, shape index: {}]   ;;  %s943_s2 = inlined_call_operand.vmem [shape: f32[2,1,8], index: 2, kind: input, shape index: {}]   ;;  %s944_s3 = inlined_call_operand.vmem [shape: bf16[8,32], index: 3, kind: input, shape index: {}]   ;;  %s945_s4 = inlined_call_operand.vmem [shape: f32[1,32], index: 4, kind: input, shape index: {}]   ;;  %s946_s5 = inlined_call_operand.vmem [shape: f32[2,2,64,32], index: 5, kind: output, shape index: {}]  }
   0x1   :  { %s788_s20 = smov 0  }
   0x2 LB: > { %s797_s21 = sadd.s32 4294967295, %s751_s20   ;;  %s799_s22 = sadd.s32 1, %s751_s20   ;;  %s751_s20 = sphi %s788_s20, %s950_s20   ;;  %s747_s19 = sphi %s786_s19, %s949_s19   ;;  %s743_s18 = sphi %s784_s18, %s948_s18  }
   0x3   : > { %s139_s23 = ssub.s32 %s751_s20, %s799_s22  ;;  %s142_s24 = sadd.s32 1, %s747_s19 }
   0x4   : > { %p140_p0 = scmp.eq.s32.totalorder %s139_s23, 0  ;;  %p152_p1 = scmp.ne.s32.totalorder %s747_s19, %s743_s18 }
   0x5   : > { %p153_p2 = scmp.eq.s32.totalorder %s797_s21, 1  ;;  %p664_p3 = scmp.ge.s32.totalorder %s751_s20, 1 }
   0x6   : > { %s807_s25 = scalar_select %p140_p0, %s747_s19, %s142_s24  }
   0x7   : > { %p809_p4 = por %p153_p2, %p152_p1  ;;  %p204_p5 = scmp.lt.s32.totalorder %s751_s20, 3 }
   0x9   : > { %p205_p6 = pnand %p664_p3, %p204_p5 }
   0xa   : > { %p238_p7 = scmp.lt.s32.totalorder (!%p205_p6), %s797_s21, 1  ;;  %s235_s20 = sand.u32 (!%p205_p6), 1, %s743_s18  }
   0xb   : > { %208 = sbr.rel (%p205_p6) target bundleno = 371 (0x173), region = 40  ;;  %s665_s23 = sshll.u32 (!%p205_p6), %s235_s20, 7 }
  0x10   : > { %vm307_vm0 = vcmask 1040384   ;;  %vm308_vm1 = vcmask 1041408   ;;  %v753_v0 = vmov 65535   ;;  %s815_s27 = scalar_select %p238_p7, %s797_s21, 1  ;;  %vm282_vm2 = vcmask 23552  }
  0x11   : > { %v309_v1 = vsel %vm307_vm0, 4294967295, %v753_v0  ;;  %v269_v29 = vld [vmem:[%s944_s3] sm:$0xf]  ;;  %vm415_vm3 = vcmask 1043456   ;;  %vm390_vm4 = vcmask 64512   ;;  %vm468_vm5 = vcmask 261120  }
  0x12   : > { %s698_s28 = sshll.u32 %s815_s27, 7  ;;  %s668_s29 = sshll.u32 %s815_s27, 1  ;;  %v310_v2 = vsel %vm308_vm1, %v309_v1, 0  ;;  %v417_v30 = vsel %vm415_vm3, %v269_v29, 0 }
  0x13   : > { %s822_s7 = scalar_lea.vmem %s941_s0, %s698_s28  ;;  %s246_s10 = scalar_lea.vmem %s942_s1, %s668_s29  ;;  %426 = vmatpush.bf16.msra.mxu1 %v417_v30  ;;  %701 = vmatpush.bf16.msra.mxu3 %v417_v30 }
  0x14   : > { %s249_s13 = scalar_lea.vmem %s943_s2, %s815_s27  ;;  %v267_v3 = vld [vmem:[%s246_s10] sm:$0x3]  ;;  %v252_v5 = vld [vmem:[%s822_s7 + $0x8] sm:$0xff]  ;;  %v253_v11 = vld [vmem:[%s822_s7 + $0x10] sm:$0xff]  ;;  %s875_s28 = scalar_lea.vmem [#allocation2], %s665_s23 }
  0x15   : > { %v251_v4 = vld [vmem:[%s822_s7] sm:$0xff]  ;;  %v312_v6 = vand.u32 %v310_v2, %v267_v3  ;;  %v260_v9 = vld [vmem:[%s822_s7 + $0x48] sm:$0xff]  ;;  %v254_v12 = vld [vmem:[%s822_s7 + $0x18] sm:$0xff]  ;;  %s699_s18 = sshll.u32 (%p809_p4), %s797_s21, 6 }
  0x16   : > { %v259_v7 = vld [vmem:[%s822_s7 + $0x40] sm:$0xff]  ;;  %v271_v8 = vpack.c.bf16 %v252_v5, %v251_v4  ;;  %v261_v13 = vld [vmem:[%s822_s7 + $0x50] sm:$0xff]  ;;  %v262_v14 = vld [vmem:[%s822_s7 + $0x58] sm:$0xff]  ;;  %v272_v15 = vpack.c.bf16 %v254_v12, %v253_v11  ;;  %s495_s6 = scalar_lea.vmem (%p809_p4), %s946_s5, %s699_s18 }
  0x17   : > { %321 = vmatpush.bf16.msra.mxu0 %v312_v6  ;;  %700 = vmatpush.bf16.msra.mxu2 %v312_v6  ;;  %v275_v10 = vpack.c.bf16 %v260_v9, %v259_v7  ;;  %v276_v16 = vpack.c.bf16 %v262_v14, %v261_v13  ;;  %v255_v17 = vld [vmem:[%s822_s7 + $0x20] sm:$0xff]  ;;  %v256_v18 = vld [vmem:[%s822_s7 + $0x28] sm:$0xff]  ;;  %v257_v23 = vld [vmem:[%s822_s7 + $0x30] sm:$0xff] }
  0x18   : > { %v263_v19 = vld [vmem:[%s822_s7 + $0x60] sm:$0xff]  ;;  %v264_v20 = vld [vmem:[%s822_s7 + $0x68] sm:$0xff]  ;;  %v273_v21 = vpack.c.bf16 %v256_v18, %v255_v17  ;;  %v258_v24 = vld [vmem:[%s822_s7 + $0x38] sm:$0xff] }
  0x19   : > { %v277_v22 = vpack.c.bf16 %v264_v20, %v263_v19  ;;  %v265_v25 = vld [vmem:[%s822_s7 + $0x70] sm:$0xff]  ;;  %v266_v26 = vld [vmem:[%s822_s7 + $0x78] sm:$0xff]  ;;  %v274_v27 = vpack.c.bf16 %v258_v24, %v257_v23  ;;  %v727_v32 = vld [vmem:[%s249_s13] ss:$0 sm:$0xff] }
  0x1a   : > { %669 = vmatmul.msk.bf16.vlgmr.msra.gmra.mxu0 %vm282_vm2, %v271_v8  ;;  %673 = vmatmul.msk.bf16.vlgmr.msra.gmra.mxu2 %vm282_vm2, %v275_v10  ;;  %v278_v28 = vpack.c.bf16 %v266_v26, %v265_v25  ;;  %v728_v24 = vld [vmem:[%s945_s4] ss:$0 sm:$0xff] }
  0x2a   : > { %670 = vmatmul.msk.bf16.gmra.mxu0 %vm282_vm2, %v272_v15  ;;  %674 = vmatmul.msk.bf16.gmra.mxu2 %vm282_vm2, %v276_v16 }
  0x3a   : > { %671 = vmatmul.msk.bf16.gmra.mxu0 %vm282_vm2, %v273_v21  ;;  %675 = vmatmul.msk.bf16.gmra.mxu2 %vm282_vm2, %v277_v22 }
  0x4a   : > { %672 = vmatmul.msk.bf16.gmra.mxu0 %vm282_vm2, %v274_v27  ;;  %676 = vmatmul.msk.bf16.gmra.mxu2 %vm282_vm2, %v278_v28 }
  0x97   : > { %v323_v31 = vpop.f32.mrf.mxu0 }
  0x98   : > { %v324_v33 = vadd.f32 %v727_v32, %v323_v31 }
  0x9a   : > { %v363_v36 = vmax.f32 %v324_v33, 0.0 }
  0x9d   : > { %v343_v34 = vpop.f32.mrf.mxu2 }
  0x9e   : > { %v344_v39 = vadd.f32 %v727_v32, %v343_v34 }
  0x9f   : > { %v325_v35 = vpop.f32.mrf.mxu0 }
  0xa0   : > { %v326_v37 = vadd.f32 %v727_v32, %v325_v35  ;;  %v371_v44 = vmax.f32 %v344_v39, 0.0 }
  0xa2   : > { %v364_v38 = vmax.f32 %v326_v37, 0.0 }
  0xa4   : > { %v379_v40 = vpack.c.bf16 %v364_v38, %v363_v36 }
  0xa5   : > { %v345_v41 = vpop.f32.mrf.mxu2 }
  0xa6   : > { %v346_v42 = vadd.f32 %v727_v32, %v345_v41  ;;  %677 = vmatmul.msk.bf16.vlgmr.msra.gmra.mxu1 %vm390_vm4, %v379_v40 }
  0xa7   : > { %v328_v43 = vpop.f32.mrf.mxu0 }
  0xa8   : > { %v372_v45 = vmax.f32 %v346_v42, 0.0  ;;  %v329_v47 = vadd.f32 %v727_v32, %v328_v43 }
  0xaa   : > { %v383_v46 = vpack.c.bf16 %v372_v45, %v371_v44  ;;  %v365_v50 = vmax.f32 %v329_v47, 0.0 }
  0xac   : > { %681 = vmatmul.msk.bf16.vlgmr.msra.gmra.mxu3 %vm390_vm4, %v383_v46 }
  0xad   : > { %v348_v48 = vpop.f32.mrf.mxu2 }
  0xae   : > { %v349_v53 = vadd.f32 %v727_v32, %v348_v48 }
  0xaf   : > { %v330_v49 = vpop.f32.mrf.mxu0 }
  0xb0   : > { %v331_v51 = vadd.f32 %v727_v32, %v330_v49  ;;  %v373_v58 = vmax.f32 %v349_v53, 0.0 }
  0xb2   : > { %v366_v52 = vmax.f32 %v331_v51, 0.0 }
  0xb4   : > { %v380_v54 = vpack.c.bf16 %v366_v52, %v365_v50 }
  0xb5   : > { %v350_v55 = vpop.f32.mrf.mxu2 }
  0xb6   : > { %v351_v56 = vadd.f32 %v727_v32, %v350_v55  ;;  %678 = vmatmul.msk.bf16.gmra.mxu1 %vm390_vm4, %v380_v54 }
  0xb7   : > { %v333_v57 = vpop.f32.mrf.mxu0 }
  0xb8   : > { %v374_v59 = vmax.f32 %v351_v56, 0.0  ;;  %v334_v61 = vadd.f32 %v727_v32, %v333_v57 }
  0xba   : > { %v384_v60 = vpack.c.bf16 %v374_v59, %v373_v58  ;;  %v367_v0 = vmax.f32 %v334_v61, 0.0 }
  0xbc   : > { %682 = vmatmul.msk.bf16.gmra.mxu3 %vm390_vm4, %v384_v60 }
  0xbd   : > { %v353_v62 = vpop.f32.mrf.mxu2 }
  0xbe   : > { %v354_v3 = vadd.f32 %v727_v32, %v353_v62 }
  0xbf   : > { %v335_v63 = vpop.f32.mrf.mxu0 }
  0xc0   : > { %v336_v1 = vadd.f32 %v727_v32, %v335_v63  ;;  %v375_v8 = vmax.f32 %v354_v3, 0.0 }
  0xc2   : > { %v368_v2 = vmax.f32 %v336_v1, 0.0 }
  0xc4   : > { %v381_v4 = vpack.c.bf16 %v368_v2, %v367_v0 }
  0xc5   : > { %v355_v5 = vpop.f32.mrf.mxu2 }
  0xc6   : > { %v356_v6 = vadd.f32 %v727_v32, %v355_v5  ;;  %679 = vmatmul.msk.bf16.gmra.mxu1 %vm390_vm4, %v381_v4 }
  0xc7   : > { %v338_v7 = vpop.f32.mrf.mxu0 }
  0xc8   : > { %v376_v9 = vmax.f32 %v356_v6, 0.0  ;;  %v339_v11 = vadd.f32 %v727_v32, %v338_v7 }
  0xca   : > { %v385_v10 = vpack.c.bf16 %v376_v9, %v375_v8  ;;  %v369_v14 = vmax.f32 %v339_v11, 0.0 }
  0xcc   : > { %683 = vmatmul.msk.bf16.gmra.mxu3 %vm390_vm4, %v385_v10 }
  0xcd   : > { %v358_v12 = vpop.f32.mrf.mxu2 }
  0xce   : > { %v359_v17 = vadd.f32 %v727_v32, %v358_v12 }
  0xcf   : > { %v340_v13 = vpop.f32.mrf.mxu0 }
  0xd0   : > { %v341_v15 = vadd.f32 %v727_v32, %v340_v13  ;;  %v377_v21 = vmax.f32 %v359_v17, 0.0 }
  0xd2   : > { %v370_v16 = vmax.f32 %v341_v15, 0.0 }
  0xd4   : > { %v382_v18 = vpack.c.bf16 %v370_v16, %v369_v14 }
  0xd5   : > { %v360_v19 = vpop.f32.mrf.mxu2 }
  0xd6   : > { %v361_v20 = vadd.f32 %v727_v32, %v360_v19  ;;  %680 = vmatmul.msk.bf16.gmra.mxu1 %vm390_vm4, %v382_v18 }
  0xd8   : > { %v378_v22 = vmax.f32 %v361_v20, 0.0 }
  0xda   : > { %v386_v23 = vpack.c.bf16 %v378_v22, %v377_v21 }
  0xdc   : > { %684 = vmatmul.msk.bf16.gmra.mxu3 %vm390_vm4, %v386_v23 }
 0x123   : > { %v428_v25 = vpop.f32.mrf.mxu1 }
 0x124   : > { %v429_v26 = vadd.f32 %v728_v24, %v428_v25 }
 0x126   : > { %469 = vst.msk [vmem:[%s875_s28] sm:$0xff] %vm468_vm5, %v429_v26 }
 0x12b   : > { %v430_v27 = vpop.f32.mrf.mxu1 }
 0x12c   : > { %v431_v28 = vadd.f32 %v728_v24, %v430_v27 }
 0x12d   : > { %v554_v57 = vld [vmem:[%s875_s28] sm:$0xff] (%p809_p4) }
 0x12e   : > { %470 = vst.msk [vmem:[%s875_s28 + $0x8] sm:$0xff] %vm468_vm5, %v431_v28 }
 0x12f   : > { %v448_v29 = vpop.f32.mrf.mxu3  ;;  %555 = vst [vmem:[%s495_s6] sm:$0xff] (%p809_p4), %v554_v57 }
 0x130   : > { %v449_v30 = vadd.f32 %v728_v24, %v448_v29 }
 0x132   : > { %685 = vst.msk [vmem:[%s875_s28 + $0x40] sm:$0xff] %vm468_vm5, %v449_v30 }
 0x133   : > { %v433_v31 = vpop.f32.mrf.mxu1 }
 0x134   : > { %v434_v32 = vadd.f32 %v728_v24, %v433_v31 }
 0x135   : > { %v556_v58 = vld [vmem:[%s875_s28 + $0x8] sm:$0xff] (%p809_p4) }
 0x136   : > { %471 = vst.msk [vmem:[%s875_s28 + $0x10] sm:$0xff] %vm468_vm5, %v434_v32 }
 0x137   : > { %v450_v33 = vpop.f32.mrf.mxu3  ;;  %557 = vst [vmem:[%s495_s6 + $0x8] sm:$0xff] (%p809_p4), %v556_v58 }
 0x138   : > { %v451_v34 = vadd.f32 %v728_v24, %v450_v33 }
 0x139   : > { %v570_v1 = vld [vmem:[%s875_s28 + $0x40] sm:$0xff] (%p809_p4) }
 0x13a   : > { %686 = vst.msk [vmem:[%s875_s28 + $0x48] sm:$0xff] %vm468_vm5, %v451_v34 }
 0x13b   : > { %v435_v35 = vpop.f32.mrf.mxu1  ;;  %571 = vst [vmem:[%s495_s6 + $0x80] sm:$0xff] (%p809_p4), %v570_v1 }
 0x13c   : > { %v436_v36 = vadd.f32 %v728_v24, %v435_v35 }
 0x13d   : > { %v558_v59 = vld [vmem:[%s875_s28 + $0x10] sm:$0xff] (%p809_p4) }
 0x13e   : > { %472 = vst.msk [vmem:[%s875_s28 + $0x18] sm:$0xff] %vm468_vm5, %v436_v36 }
 0x13f   : > { %v453_v37 = vpop.f32.mrf.mxu3  ;;  %559 = vst [vmem:[%s495_s6 + $0x10] sm:$0xff] (%p809_p4), %v558_v59 }
 0x140   : > { %v454_v38 = vadd.f32 %v728_v24, %v453_v37 }
 0x141   : > { %v572_v2 = vld [vmem:[%s875_s28 + $0x48] sm:$0xff] (%p809_p4) }
 0x142   : > { %687 = vst.msk [vmem:[%s875_s28 + $0x50] sm:$0xff] %vm468_vm5, %v454_v38 }
 0x143   : > { %v438_v39 = vpop.f32.mrf.mxu1  ;;  %573 = vst [vmem:[%s495_s6 + $0x88] sm:$0xff] (%p809_p4), %v572_v2 }
 0x144   : > { %v439_v40 = vadd.f32 %v728_v24, %v438_v39 }
 0x145   : > { %v560_v60 = vld [vmem:[%s875_s28 + $0x18] sm:$0xff] (%p809_p4) }
 0x146   : > { %473 = vst.msk [vmem:[%s875_s28 + $0x20] sm:$0xff] %vm468_vm5, %v439_v40 }
 0x147   : > { %v455_v41 = vpop.f32.mrf.mxu3  ;;  %561 = vst [vmem:[%s495_s6 + $0x18] sm:$0xff] (%p809_p4), %v560_v60 }
 0x148   : > { %v456_v42 = vadd.f32 %v728_v24, %v455_v41 }
 0x149   : > { %v574_v3 = vld [vmem:[%s875_s28 + $0x50] sm:$0xff] (%p809_p4) }
 0x14a   : > { %688 = vst.msk [vmem:[%s875_s28 + $0x58] sm:$0xff] %vm468_vm5, %v456_v42 }
 0x14b   : > { %v440_v43 = vpop.f32.mrf.mxu1  ;;  %575 = vst [vmem:[%s495_s6 + $0x90] sm:$0xff] (%p809_p4), %v574_v3 }
 0x14c   : > { %v441_v44 = vadd.f32 %v728_v24, %v440_v43 }
 0x14d   : > { %v562_v61 = vld [vmem:[%s875_s28 + $0x20] sm:$0xff] (%p809_p4) }
 0x14e   : > { %474 = vst.msk [vmem:[%s875_s28 + $0x28] sm:$0xff] %vm468_vm5, %v441_v44 }
 0x14f   : > { %v458_v45 = vpop.f32.mrf.mxu3  ;;  %563 = vst [vmem:[%s495_s6 + $0x20] sm:$0xff] (%p809_p4), %v562_v61 }
 0x150   : > { %v459_v46 = vadd.f32 %v728_v24, %v458_v45 }
 0x151   : > { %v576_v4 = vld [vmem:[%s875_s28 + $0x58] sm:$0xff] (%p809_p4) }
 0x152   : > { %689 = vst.msk [vmem:[%s875_s28 + $0x60] sm:$0xff] %vm468_vm5, %v459_v46 }
 0x153   : > { %v443_v47 = vpop.f32.mrf.mxu1  ;;  %577 = vst [vmem:[%s495_s6 + $0x98] sm:$0xff] (%p809_p4), %v576_v4 }
 0x154   : > { %v444_v48 = vadd.f32 %v728_v24, %v443_v47 }
 0x155   : > { %v564_v62 = vld [vmem:[%s875_s28 + $0x28] sm:$0xff] (%p809_p4) }
 0x156   : > { %475 = vst.msk [vmem:[%s875_s28 + $0x30] sm:$0xff] %vm468_vm5, %v444_v48 }
 0x157   : > { %v460_v49 = vpop.f32.mrf.mxu3  ;;  %565 = vst [vmem:[%s495_s6 + $0x28] sm:$0xff] (%p809_p4), %v564_v62 }
 0x158   : > { %v461_v50 = vadd.f32 %v728_v24, %v460_v49 }
 0x159   : > { %v578_v5 = vld [vmem:[%s875_s28 + $0x60] sm:$0xff] (%p809_p4) }
 0x15a   : > { %690 = vst.msk [vmem:[%s875_s28 + $0x68] sm:$0xff] %vm468_vm5, %v461_v50 }
 0x15b   : > { %v445_v51 = vpop.f32.mrf.mxu1  ;;  %579 = vst [vmem:[%s495_s6 + $0xa0] sm:$0xff] (%p809_p4), %v578_v5 }
 0x15c   : > { %v446_v52 = vadd.f32 %v728_v24, %v445_v51 }
 0x15d   : > { %v566_v63 = vld [vmem:[%s875_s28 + $0x30] sm:$0xff] (%p809_p4) }
 0x15e   : > { %476 = vst.msk [vmem:[%s875_s28 + $0x38] sm:$0xff] %vm468_vm5, %v446_v52 }
 0x15f   : > { %v463_v53 = vpop.f32.mrf.mxu3  ;;  %567 = vst [vmem:[%s495_s6 + $0x30] sm:$0xff] (%p809_p4), %v566_v63 }
 0x160   : > { %v464_v54 = vadd.f32 %v728_v24, %v463_v53 }
 0x161   : > { %v580_v6 = vld [vmem:[%s875_s28 + $0x68] sm:$0xff] (%p809_p4) }
 0x162   : > { %691 = vst.msk [vmem:[%s875_s28 + $0x70] sm:$0xff] %vm468_vm5, %v464_v54 }
 0x163   : > { %581 = vst [vmem:[%s495_s6 + $0xa8] sm:$0xff] (%p809_p4), %v580_v6 }
 0x165   : > { %v568_v0 = vld [vmem:[%s875_s28 + $0x38] sm:$0xff] (%p809_p4) }
 0x166   : > { %492 = sbr.rel (!%p809_p4) target bundleno = 371 (0x173), region = 44  ;;  %569 = vst [vmem:[%s495_s6 + $0x38] sm:$0xff] (%p809_p4), %v568_v0 }
 0x167   : > { %v465_v55 = vpop.f32.mrf.mxu3 }
 0x168   : > { %v466_v56 = vadd.f32 %v728_v24, %v465_v55 }
 0x169   : > { %v582_v7 = vld [vmem:[%s875_s28 + $0x70] sm:$0xff] (%p809_p4) }
 0x16a   : > { %692 = vst.msk [vmem:[%s875_s28 + $0x78] sm:$0xff] %vm468_vm5, %v466_v56 }
 0x16b   : > { %583 = vst [vmem:[%s495_s6 + $0xb0] sm:$0xff] %v582_v7 }
 0x171   : > { %v584_v8 = vld [vmem:[%s875_s28 + $0x78] sm:$0xff] }
 0x172   : > { %585 = vst [vmem:[%s495_s6 + $0xb8] sm:$0xff] %v584_v8 }
 0x173 PF: > { %p12_p8 = scmp.ge.s32.totalorder %s799_s22, 4   ;;  %s948_s18 = smov %s747_s19 }
 0x174   : > { %s949_s19 = smov %s807_s25  ;;  %s950_s20 = smov %s799_s22 }
 0x175   :  { %14 = sbr.rel (!%p12_p8) target bundleno = 2 (0x2), region = 115 }

// kernel: g_img_act_forward.5
= control target key start
LH: loop header
LB: loop body
LE: loop exit
PB: predicated region body
PF: predicated region fallthrough
CT: control target
= control target key end

     0   :  { %s2766_s0 = inlined_call_operand.vmem [shape: f32[2,8,14], index: 0, kind: input, shape index: {}]   ;;  %s2767_s1 = inlined_call_operand.vmem [shape: f32[2,1,14], index: 1, kind: input, shape index: {}]   ;;  %s2768_s2 = inlined_call_operand.vmem [shape: f32[2,1,10], index: 2, kind: input, shape index: {}]   ;;  %s2769_s3 = inlined_call_operand.vmem [shape: f32[2,1,32], index: 3, kind: input, shape index: {}]   ;;  %s2770_s4 = inlined_call_operand.vmem [shape: f32[1,32], index: 4, kind: input, shape index: {}]   ;;  %s2771_s5 = inlined_call_operand.hbm [shape: f32[10,32], index: 5, kind: input, shape index: {}]   ;;  %s2772_s6 = inlined_call_operand.vmem [shape: bf16[14,32], index: 6, kind: input, shape index: {}]   ;;  %s2773_s7 = inlined_call_operand.hbm [shape: f32[1,32], index: 7, kind: input, shape index: {}]   ;;  %s2774_s8 = inlined_call_operand.hbm [shape: bf16[14,32], index: 8, kind: input, shape index: {}]   ;;  %s2775_s9 = inlined_call_operand.hbm [shape: f32[1,32], index: 9, kind: input, shape index: {}]   ;;  %s2776_s10 = inlined_call_operand.hbm [shape: bf16[32,64], index: 10, kind: input, shape index: {}]   ;;  %s2777_s11 = inlined_call_operand.vmem [shape: f32[1,64], index: 11, kind: input, shape index: {}]   ;;  %s2778_s12 = inlined_call_operand.hbm [shape: bf16[32,32], index: 12, kind: input, shape index: {}]   ;;  %s2779_s13 = inlined_call_operand.vmem [shape: f32[1,32], index: 13, kind: input, shape index: {}]   ;;  %s2780_s14 = inlined_call_operand.hbm [shape: bf16[32,32], index: 14, kind: input, shape index: {}]   ;;  %s2781_s15 = inlined_call_operand.vmem [shape: f32[1,32], index: 15, kind: input, shape index: {}]   ;;  %s2782_s16 = inlined_call_operand.hbm [shape: bf16[32,64], index: 16, kind: input, shape index: {}]   ;;  %s2783_s17 = inlined_call_operand.vmem [shape: f32[1,64], index: 17, kind: input, shape index: {}]   ;;  %s2784_s18 = inlined_call_operand.vmem [shape: bf16[64,32], index: 18, kind: input, shape index: {}]   ;;  %s2785_s19 = inlined_call_operand.vmem [shape: f32[1,32], index: 19, kind: input, shape index: {}]   ;;  %s2786_s20 = inlined_call_operand.hbm [shape: bf16[32,64], index: 20, kind: input, shape index: {}]   ;;  %s2787_s21 = inlined_call_operand.hbm [shape: f32[1,64], index: 21, kind: input, shape index: {}]   ;;  %s2788_s22 = inlined_call_operand.hbm [shape: bf16[32,32], index: 22, kind: input, shape index: {}]   ;;  %s2789_s23 = inlined_call_operand.hbm [shape: f32[1,32], index: 23, kind: input, shape index: {}]   ;;  %s2790_s24 = inlined_call_operand.vmem [shape: f32[2,1,128], index: 24, kind: output, shape index: {}]  }
   0x1   :  { %2793 = sst [smem:[#allocation29_spill]] %s2766_s0 }
   0x2   :  { %2794 = sst [smem:[#allocation30_spill]] %s2767_s1 }
   0x3   :  { %2795 = sst [smem:[#allocation31_spill]] %s2768_s2 }
   0x4   :  { %2796 = sst [smem:[#allocation32_spill]] %s2769_s3 }
   0x5   :  { %2797 = sst [smem:[#allocation33_spill]] %s2770_s4 }
   0x6   :  { %2798 = sst [smem:[#allocation34_spill]] %s2771_s5 }
   0x7   :  { %2799 = sst [smem:[#allocation35_spill]] %s2772_s6 }
   0x8   :  { %2800 = sst [smem:[#allocation36_spill]] %s2773_s7 }
   0x9   :  { %2801 = sst [smem:[#allocation37_spill]] %s2774_s8 }
   0xa   :  { %2802 = sst [smem:[#allocation38_spill]] %s2775_s9 }
   0xb   :  { %2803 = sst [smem:[#allocation39_spill]] %s2778_s12 }
   0xc   :  { %2804 = sst [smem:[#allocation40_spill]] %s2782_s16 }
   0xd   :  { %2805 = sst [smem:[#allocation41_spill]] %s2787_s21 }
   0xe   :  { %2806 = sst [smem:[#allocation42_spill]] %s2790_s24 }
   0xf   :  { %29 = vsyncpa [#allocation3], 0 }
  0x10   :  { %30 = vsyncpa [#allocation5], 0 }
  0x11   :  { %31 = vsyncpa [#allocation8], 0 }
  0x12   :  { %32 = vsyncpa [#allocation11], 0 }
  0x13   :  { %33 = vsyncpa [#allocation14], 0 }
  0x14   :  { %34 = vsyncpa [#allocation17], 0 }
  0x15   :  { %35 = vsyncpa [#allocation20], 0  ;;  %s2527_s5 = smov 0  }
  0x16 LB: > { %2807 = sst [smem:[#allocation28_spill]] %s2380_s5  ;;  %s2536_s2 = sadd.s32 4294967295, %s2380_s5   ;;  %s2380_s5 = sphi %s2527_s5, %s41_s5  }
  0x17   : > { %s2808_s28 = sld [smem:[#allocation36_spill]]  ;;  %p1692_p0 = scmp.ge.s32.totalorder %s2380_s5, 1 }
  0x18   : > { %p596_p1 = scmp.lt.s32.totalorder %s2380_s5, 3  ;;  %p1908_p2 = scmp.eq.s32.totalorder %s2536_s2, 0 }
  0x19   : > { %s2382_s0 = smov [#allocation4]   ;;  %s2810_s9 = sld [smem:[#allocation38_spill]] }
  0x1a   : > { %p2541_p3 = pnand %p1692_p0, %p596_p1  ;;  %s630_s7 = sshll.u32 %s2382_s0, 4  ;;  %s631_s7 = int_to_ptr.vmem [resolvable:$true] %s630_s7 }
  0x1b   : > { %s2383_s4 = smov [#allocation7]   ;;  %s2812_s12 = sld [smem:[#allocation39_spill]] }
  0x1c   : > { %p1871_p4 = pneg %p2541_p3  ;;  %s656_s1 = sshll.u32 %s2383_s4, 4  ;;  %s657_s1 = int_to_ptr.vmem [resolvable:$true] %s656_s1 }
  0x1d   : > { %s628_s6 = sshll.u32 %s2808_s28, 4  ;;  %s2384_s0 = smov [#allocation10]   ;;  %s629_s6 = int_to_ptr.hbm [resolvable:$true] %s628_s6 }
  0x1e   : > { %p2552_p5 = pnand %p1908_p2, %p1871_p4  ;;  %s684_s30 = sshll.u32 %s2384_s0, 4  ;;  %s685_s30 = int_to_ptr.vmem [resolvable:$true] %s684_s30 }
  0x1f   : > { %s654_s25 = sshll.u32 %s2810_s9, 4  ;;  %s2813_s16 = sld [smem:[#allocation40_spill]]  ;;  %s655_s25 = int_to_ptr.hbm [resolvable:$true] %s654_s25 }
  0x20   : > { %1877 = dma.hbm_to_vmem [thread:$0]  (!%p2552_p5), %s629_s6, 16, %s631_s7, [#allocation5]  }
  0x21   : > { %s682_s28 = sshll.u32 %s2812_s12, 4  ;;  %s2385_s4 = smov 64   ;;  %s683_s28 = int_to_ptr.hbm [resolvable:$true] %s682_s28 }
  0x22   : > { %1883 = dma.hbm_to_vmem [thread:$0]  (!%p2552_p5), %s655_s25, 16, %s657_s1, [#allocation8]  }
  0x23   : > { %s2386_s24 = smov 4   ;;  %s2814_s21 = sld [smem:[#allocation41_spill]] }
  0x24   : > { %1889 = dma.hbm_to_vmem [thread:$0]  (!%p2552_p5), %s683_s28, 256, %s685_s30, [#allocation11], %s2385_s4, %s2385_s4, %s2386_s24  }
  0x25   : > { %s716_s5 = sshll.u32 %s2813_s16, 4  ;;  %s2387_s1 = smov [#allocation13]   ;;  %s717_s5 = int_to_ptr.hbm [resolvable:$true] %s716_s5 }
  0x26   : > { %s718_s26 = sshll.u32 %s2387_s1, 4  ;;  %s2388_s9 = smov [#allocation16]   ;;  %s719_s26 = int_to_ptr.vmem [resolvable:$true] %s718_s26 }
  0x27   : > { %1895 = dma.hbm_to_vmem [thread:$0]  (!%p2552_p5), %s717_s5, 256, %s719_s26, [#allocation14], %s2385_s4, %s2385_s4, %s2386_s24  }
  0x28   : > { %s756_s27 = sshll.u32 %s2388_s9, 4  ;;  %s2815_s12 = sld [smem:[#allocation34_spill]]  ;;  %s757_s27 = int_to_ptr.vmem [resolvable:$true] %s756_s27 }
  0x29   : > { %s754_s25 = sshll.u32 %s2814_s21, 4  ;;  %s2389_s30 = smov [#allocation2]   ;;  %s755_s25 = int_to_ptr.hbm [resolvable:$true] %s754_s25 }
  0x2a   : > { %1901 = dma.hbm_to_vmem [thread:$0]  (!%p2552_p5), %s755_s25, 16, %s757_s27, [#allocation17]  }
  0x2b   : > { %s612_s6 = sshll.u32 %s2389_s30, 4  ;;  %s2816_s16 = sld [smem:[#allocation37_spill]]  ;;  %s613_s6 = int_to_ptr.vmem [resolvable:$true] %s612_s6 }
  0x2c   : > { %s2390_s5 = smov 128   ;;  %s2391_s26 = smov 8  }
  0x2d   : > { %s2392_s9 = smov [#allocation6]   ;;  %s665_s25 = sshll.u32 %s2776_s10, 4  ;;  %s666_s25 = int_to_ptr.hbm [resolvable:$true] %s665_s25 }
  0x2e   : > { %s610_s28 = sshll.u32 %s2815_s12, 4  ;;  %s641_s12 = sshll.u32 %s2392_s9, 4  ;;  %s611_s28 = int_to_ptr.hbm [resolvable:$true] %s610_s28  ;;  %s642_s12 = int_to_ptr.vmem [resolvable:$true] %s641_s12 }
  0x2f   : > { %1874 = dma.hbm_to_vmem [thread:$0]  (!%p2552_p5), %s611_s28, 256, %s613_s6, [#allocation3], %s2390_s5, %s2390_s5, %s2391_s26  }
  0x30   : > { %s699_s30 = sshll.u32 %s2780_s14, 4  ;;  %s2393_s28 = smov [#allocation9]   ;;  %s700_s30 = int_to_ptr.hbm [resolvable:$true] %s699_s30 }
  0x31   : > { %s639_s21 = sshll.u32 %s2816_s16, 4  ;;  %s667_s6 = sshll.u32 %s2393_s28, 4  ;;  %s640_s21 = int_to_ptr.hbm [resolvable:$true] %s639_s21  ;;  %s668_s6 = int_to_ptr.vmem [resolvable:$true] %s667_s6 }
  0x32   : > { %1880 = dma.hbm_to_vmem [thread:$0]  (!%p2552_p5), %s640_s21, 128, %s642_s12, [#allocation5], %s2385_s4, %s2385_s4, %s2386_s24  }
  0x33   : > { %1886 = dma.hbm_to_vmem [thread:$0]  (!%p2552_p5), %s666_s25, 256, %s668_s6, [#allocation8], %s2385_s4, %s2385_s4, %s2386_s24  }
  0x34   : > { %s2394_s7 = smov [#allocation12]   ;;  %s739_s21 = sshll.u32 %s2786_s20, 4  ;;  %s740_s21 = int_to_ptr.hbm [resolvable:$true] %s739_s21 }
  0x35   : > { %s701_s1 = sshll.u32 %s2394_s7, 4  ;;  %s765_s0 = sshll.u32 %s2788_s22, 4  ;;  %s702_s1 = int_to_ptr.vmem [resolvable:$true] %s701_s1  ;;  %s766_s0 = int_to_ptr.hbm [resolvable:$true] %s765_s0 }
  0x36   : > { %1892 = dma.hbm_to_vmem [thread:$0]  (!%p2552_p5), %s700_s30, 256, %s702_s1, [#allocation11], %s2385_s4, %s2385_s4, %s2386_s24  }
  0x37   : > { %s2395_s3 = smov [#allocation15]   ;;  %s2396_s16 = smov [#allocation18]  }
  0x38   : > { %s741_s25 = sshll.u32 %s2395_s3, 4  ;;  %s767_s27 = sshll.u32 %s2396_s16, 4  ;;  %s742_s25 = int_to_ptr.vmem [resolvable:$true] %s741_s25  ;;  %s768_s27 = int_to_ptr.vmem [resolvable:$true] %s767_s27 }
  0x39   : > { %1898 = dma.hbm_to_vmem [thread:$0]  (!%p2552_p5), %s740_s21, 256, %s742_s25, [#allocation14], %s2385_s4, %s2385_s4, %s2386_s24  }
  0x3a   : > { %s780_s30 = sshll.u32 %s2789_s23, 4  ;;  %s2397_s7 = smov [#allocation19]   ;;  %s781_s30 = int_to_ptr.hbm [resolvable:$true] %s780_s30 }
  0x3b   : > { %1904 = dma.hbm_to_vmem [thread:$0]  (!%p2552_p5), %s766_s0, 256, %s768_s27, [#allocation17], %s2385_s4, %s2385_s4, %s2386_s24  }
  0x3c   : > { %s782_s1 = sshll.u32 %s2397_s7, 4  ;;  %820 = sbr.rel (%p2541_p3) target bundleno = 2489 (0x9b9), region = 116  ;;  %s783_s1 = int_to_ptr.vmem [resolvable:$true] %s782_s1 }
  0x3d   : > { %1907 = dma.hbm_to_vmem [thread:$0]  (!%p2552_p5), %s781_s30, 16, %s783_s1, [#allocation20]  }
  0x41   : > { %2351 = dma.done.wait (%p1908_p2), [#allocation3], 256  }
  0x42   : > { %2353 = vsyncadd (%p1908_p2), [#allocation3], 4294967040 }
  0x43   : > { %2355 = dma.done.wait (%p1908_p2), [#allocation5], 144  }
  0x44   : > { %2357 = vsyncadd (%p1908_p2), [#allocation5], 4294967152 }
  0x45   : > { %2359 = dma.done.wait (%p1908_p2), [#allocation8], 272  }
  0x46   : > { %2361 = vsyncadd (%p1908_p2), [#allocation8], 4294967024 }
  0x47   : > { %2363 = dma.done.wait (%p1908_p2), [#allocation11], 512  }
  0x48   : > { %2365 = vsyncadd (%p1908_p2), [#allocation11], 4294966784 }
  0x49   : > { %2367 = dma.done.wait (%p1908_p2), [#allocation14], 512  }
  0x4a   : > { %2369 = vsyncadd (%p1908_p2), [#allocation14], 4294966784 }
  0x4b   : > { %2371 = dma.done.wait (%p1908_p2), [#allocation17], 272  }
  0x4c   : > { %2373 = vsyncadd (%p1908_p2), [#allocation17], 4294967024 }
  0x4d   : > { %2375 = dma.done.wait (%p1908_p2), [#allocation20], 16  }
  0x4e   : > { %2377 = vsyncadd (%p1908_p2), [#allocation20], 4294967280  ;;  %p948_p6 = scmp.lt.s32.totalorder %s2536_s2, 1  ;;  %s2817_s4 = sld [smem:[#allocation29_spill]]  ;;  %vm1030_vm0 = vcmask 1046528   ;;  %vm1026_vm1 = vcmask 113664  }
  0x4f   : > { %s2818_s9 = sld [smem:[#allocation30_spill]]  ;;  %v1727_v2 = vld [vmem:[#allocation6] sm:$0xf]  ;;  %v1818_v4 = vld [vmem:[#allocation6] sm:$0x70]  ;;  %v1806_v13 = vld [vmem:[#allocation9 + $0x8] sm:$0xff] }
  0x50   : > { %s2826_s2 = smov (!%p948_p6, %s2536_s2), 1  ;;  %s2819_s25 = sld [smem:[#allocation35_spill]]  ;;  %v1728_v7 = vor.u32 %v1818_v4, %v1727_v2  ;;  %v1808_v12 = vld [vmem:[#allocation10 + $0x8] sm:$0xff]  ;;  %1110 = vmatpush.bf16.msra.mxu2 %v1806_v13  ;;  %v1807_v14 = vld [vmem:[#allocation10] sm:$0xff]  ;;  %v1805_v15 = vld [vmem:[#allocation9] sm:$0xff]  ;;  %vm1078_vm2 = vcmask 1040384  }
  0x51   : > { %s1719_s24 = sshll.u32 %s2826_s2, 3  ;;  %1143 = vmatpush.bf16.msra.mxu3 %v1808_v12  ;;  %v1960_v16 = vld [vmem:[#allocation4] ss:$0 sm:$0xff]  ;;  %v1006_v17 = vld [vmem:[#allocation7] sm:$0x1]  ;;  %s2820_s30 = sld [smem:[#allocation33_spill]] }
  0x52   : > { %v1057_v10 = vsel %vm1030_vm0, %v1728_v7, 0  ;;  %v999_v24 = vld [vmem:[#allocation2 + $0x8] sm:$0x3]  ;;  %vm1080_vm3 = vcmask 1041408   ;;  %v998_v26 = vld [vmem:[#allocation2] sm:$0xff]  ;;  %vm1100_vm4 = vcmask 261120  }
  0x53   : > { %1066 = vmatpush.bf16.msra.mxu1 %v1057_v10  ;;  %v1961_v37 = vld [vmem:[%s2779_s13] ss:$0 sm:$0xff]  ;;  %vm1211_vm5 = vcmask 1044480   ;;  %s2398_s8 = smov 96   ;;  %s2821_s26 = sld [smem:[#allocation31_spill]]  ;;  %vm1182_vm6 = vcmask 80896  }
  0x54   : > { %s951_s5 = scalar_lea.vmem %s2817_s4, %s1719_s24  ;;  %1111 = vmatpush.bf16.msra.mxu2 %v1805_v15  ;;  %v1962_v38 = vld [vmem:[%s2777_s11] ss:$0 sm:$0xff]  ;;  %vm1186_vm7 = vcmask 74752   ;;  %v1810_v12 = vld [vmem:[#allocation12 + $0x8] sm:$0xff]  ;;  %vm1267_vm8 = vcmask 254976   ;;  %s2401_s0 = smov 64  }
  0x55   : > { %s954_s12 = scalar_lea.vmem %s2818_s9, %s2826_s2  ;;  %v994_v5 = vld [vmem:[%s951_s5] sm:$0xff]  ;;  %1144 = vmatpush.bf16.msra.mxu3 %v1807_v14  ;;  %s2823_s27 = sld [smem:[#allocation42_spill]] }
  0x56   : > { %v1722_v0 = vld [vmem:[%s2819_s25] sm:$0xf]  ;;  %v1817_v1 = vld [vmem:[%s2819_s25] sm:$0x70]  ;;  %v1017_v9 = vpack.c.bf16 %v994_v5, %v994_v5 }
  0x57   : > { %v1723_v3 = vor.u32 %v1817_v1, %v1722_v0  ;;  %v995_v6 = vld [vmem:[%s954_s12] sm:$0x1]  ;;  %s2400_s12 = smov 32  }
  0x58   : > { %v1047_v11 = vpack.c.bf16 %v995_v6, %v995_v6  ;;  %v997_v23 = vld [vmem:[%s2820_s30] sm:$0x1]  ;;  %1254 = vmatpush.bf16.msrb.mxu2 %v1810_v12 }
  0x59   : > { %v1032_v8 = vsel %vm1030_vm0, %v1723_v3, 0  ;;  %s957_s21 = scalar_lea.vmem %s2821_s26, %s2826_s2  ;;  %v1809_v13 = vld [vmem:[#allocation12] sm:$0xff]  ;;  %vm1379_vm0 = vcmask 523264  }
  0x5a   : > { %1041 = vmatpush.bf16.msra.mxu0 %v1032_v8  ;;  %1729 = vmatmul.msk.bf16.vlgmr.msra.gmra.mxu1 %vm1026_vm1, %v1047_v11  ;;  %v1963_v50 = vld [vmem:[%s957_s21] ss:$0 sm:$0xff]  ;;  %s2822_s21 = sld [smem:[#allocation32_spill]] }
  0x5b   : > { %s963_s28 = scalar_lea.vmem %s2823_s27, %s2826_s2 }
  0x5c   : > { %1255 = vmatpush.bf16.msrb.mxu2 %v1809_v13 }
  0x5d   : > { %1724 = vmatmul.msk.bf16.vlgmr.msra.gmra.mxu0 %vm1026_vm1, %v1017_v9 }
  0x60   : > { %s960_s9 = scalar_lea.vmem %s2822_s21, %s2826_s2 }
  0xd7   : > { %v1068_v20 = vpop.f32.mrf.mxu1 }
  0xd8   : > { %v1069_v21 = vadd.f32 %v1068_v20, %v1006_v17  ;;  %v1964_v17 = vld [vmem:[%s2781_s15] ss:$0 sm:$0xff] }
  0xda   : > { %v1043_v18 = vpop.f32.mrf.mxu0  ;;  %v1073_v25 = vrot.slane %v1069_v21, 7 }
  0xdb   : > { %v1044_v19 = vadd.f32 %v1960_v16, %v1043_v18 }
  0xdc   : > { %v1079_v27 = vsel %vm1078_vm2, %v997_v23, %v1073_v25 }
  0xdd   : > { %v2679_v22 = vrot.slane %v1044_v19, 6 }
  0xdf   : > { %v1083_v28 = vadd.f32 %v2679_v22, %v999_v24  ;;  %v2686_v29 = vsel %vm1080_vm3, %v1079_v27, %v2679_v22  ;;  %v1070_v33 = vpop.f32.mrf.mxu1  ;;  %v2399_v27 = vmov 32.0  }
  0xe0   : > { %v1118_v31 = vpack.c.bf16 %v2679_v22, %v2686_v29  ;;  %v1082_v32 = vadd.f32 %v2686_v29, %v998_v26 }
  0xe2   : > { %v1045_v30 = vpop.f32.mrf.mxu0  ;;  %1747 = vmatmul.msk.bf16.vlgmr.msra.gmra.mxu3 %vm1100_vm4, %v1118_v31  ;;  %v1084_v34 = vpack.c.bf16 %v1083_v28, %v1082_v32 }
  0xe4   : > { %1738 = vmatmul.msk.bf16.vlgmr.msra.gmra.mxu2 %vm1100_vm4, %v1084_v34 }
 0x165   : > { %v1146_v35 = vpop.f32.mrf.mxu3 }
 0x166   : > { %v1147_v40 = vadd.f32 %v1961_v37, %v1146_v35 }
 0x167   : > { %v1113_v36 = vpop.f32.mrf.mxu2 }
 0x168   : > { %v1114_v43 = vadd.f32 %v1962_v38, %v1113_v36 }
 0x16d   : > { %v1148_v39 = vpop.f32.mrf.mxu3 }
 0x16e   : > { %v1149_v41 = vadd.f32 %v1961_v37, %v1148_v39 }
 0x16f   : > { %v1115_v42 = vpop.f32.mrf.mxu2 }
 0x170   : > { %v1116_v44 = vadd.f32 %v1962_v38, %v1115_v42  ;;  %v1207_v45 = vpack.c.bf16 %v1149_v41, %v1147_v40 }
 0x172   : > { %v1213_v46 = vsel %vm1211_vm5, %v1207_v45, 0  ;;  %v1151_v47 = vpack.c.bf16 %v1116_v44, %v1114_v43  ;;  %v1812_v43 = vld [vmem:[#allocation13 + $0x8] sm:$0xff]  ;;  %v1811_v44 = vld [vmem:[#allocation13] sm:$0xff]  ;;  %vm1496_vm5 = vcmask 785408  }
 0x173   : > { %1222 = vmatpush.bf16.msrb.mxu1 %v1213_v46  ;;  %1341 = vmatpush.bf16.msrb.mxu3 %v1812_v43  ;;  %v1822_v43 = vld [vmem:[#allocation18 + $0x8] sm:$0xff] }
 0x174   : > { %1153 = vrot.lane.b32.xlu0 %v1151_v47, %s2398_s8  ;;  %1484 = vmatpush.bf16.msra.mxu2 %v1822_v43 }
 0x177   : > { %1342 = vmatpush.bf16.msrb.mxu3 %v1811_v44  ;;  %v1011_v44 = vld [vmem:[#allocation16] sm:$0x1] }
 0x1e6   : > { %v1154_v48 = vpop.permute.xlu0 %1153 }
 0x1e7   : > { %v1159_v49 = vsel %vm1100_vm4, %v1154_v48, 0 }
 0x1e8   : > { %1168 = vmatpush.bf16.xpose.msrb.mxu0 %v1159_v49 }
 0x1ef   : > { %1748 = vmatmul.msk.bf16.vlgmr.msrb.gmra.mxu0 %vm1100_vm4, %v1151_v47 }
 0x26c   : > { %v1170_v51 = vpop.f32.mrf.mxu0 }
 0x26d   : > { %v1175_v52 = vmul.f32 0.17677669, %v1170_v51 }
 0x26f   : > { %v1180_v53 = vadd.f32 %v1963_v50, %v1175_v52 }
 0x271   : > { %v1183_v54 = vsel %vm1182_vm6, %v1180_v53, -inf }
 0x272   : > { %1184 = vmax.xlane.f32.xlu0 %v1183_v54 }
 0x274   : > { %v1172_v55 = vpop.f32.mrf.mxu0 }
 0x275   : > { %v1176_v56 = vmul.f32 0.17677669, %v1172_v55 }
 0x277   : > { %v1181_v57 = vadd.f32 %v1963_v50, %v1176_v56 }
 0x279   : > { %v1187_v58 = vsel %vm1186_vm7, %v1181_v57, -inf }
 0x27a   : > { %1188 = vmax.xlane.f32.xlu1 %v1187_v58 }
 0x2e5   : > { %v1185_v59 = vpop.xlane.xlu0 %1184 }
 0x2e6   : > { %v1190_v60 = vsub.f32 %v1180_v53, %v1185_v59 }
 0x2e8   : > { %v1192_v61 = vmul.f32 1.442695, %v1190_v60 }
 0x2ea   : > { %1968 = vpow2.f32 %v1192_v61 }
 0x2ed   : > { %v1189_v62 = vpop.xlane.xlu1 %1188 }
 0x2ee   : > { %v1191_v63 = vsub.f32 %v1181_v57, %v1189_v62 }
 0x2f0   : > { %v1969_v0 = vpop.eup %1968  ;;  %v1194_v1 = vmul.f32 1.442695, %v1191_v63 }
 0x2f1   : > { %v1196_v2 = vsel %vm1182_vm6, %v1969_v0, 0.0 }
 0x2f2   : > { %1970 = vpow2.f32 %v1194_v1  ;;  %1197 = vadd.xlane.f32.xlu1 %v1196_v2 }
 0x2f8   : > { %v1971_v3 = vpop.eup %1970 }
 0x2f9   : > { %v1199_v4 = vsel %vm1186_vm7, %v1971_v3, 0.0 }
 0x2fa   : > { %1200 = vadd.xlane.f32.xlu2 %v1199_v4  ;;  %v1816_v4 = vld [vmem:[%s2784_s18 + $0x18] sm:$0xff] }
 0x2fb   : > { %1387 = vmatpush.bf16.msra.mxu0 %v1816_v4 }
 0x365   : > { %v1198_v5 = vpop.xlane.xlu1 %1197 }
 0x366   : > { %1972 = vrcp.f32 %v1198_v5  ;;  %v1815_v5 = vld [vmem:[%s2784_s18 + $0x10] sm:$0xff] }
 0x367   : > { %1388 = vmatpush.bf16.msra.mxu0 %v1815_v5 }
 0x36c   : > { %v1973_v7 = vpop.eup %1972 }
 0x36d   : > { %v1201_v6 = vpop.xlane.xlu2 %1200  ;;  %v1204_v9 = vmul.f32 %v1973_v7, %v1969_v0  ;;  %v1813_v7 = vld [vmem:[%s2784_s18] sm:$0xff] }
 0x36e   : > { %1974 = vrcp.f32 %v1201_v6  ;;  %v1814_v6 = vld [vmem:[%s2784_s18 + $0x8] sm:$0xff] }
 0x36f   : > { %1976 = vrcp.f32 %v2399_v27  ;;  %1389 = vmatpush.bf16.msra.mxu0 %v1814_v6 }
 0x373   : > { %1390 = vmatpush.bf16.msra.mxu0 %v1813_v7 }
 0x374   : > { %v1975_v8 = vpop.eup %1974 }
 0x375   : > { %v1205_v10 = vmul.f32 %v1975_v8, %v1971_v3  ;;  %v1977_v28 = vpop.eup %1976 }
 0x376   : > { %v1272_v30 = vmul.f32 32.0, %v1977_v28  ;;  %vm1276_vm9 = vweird.f32 %v1977_v28 }
 0x377   : > { %v1206_v11 = vpack.c.bf16 %v1205_v10, %v1204_v9  ;;  %v1965_v9 = vld [vmem:[%s2783_s17] ss:$0 sm:$0xff] }
 0x378   : > { %v1273_v31 = vsub.f32 1.0, %v1272_v30  ;;  %v1819_v30 = vld [vmem:[#allocation15] sm:$0xff] }
 0x379   : > { %1749 = vmatmul.msk.bf16.vlgmr.msrb.gmra.mxu1 %vm1182_vm6, %v1206_v11 }
 0x37a   : > { %v1274_v32 = vmul.f32 %v1977_v28, %v1273_v31  ;;  %v1967_v31 = vld [vmem:[%s960_s9] ss:$0 sm:$0xff] }
 0x37c   : > { %v1275_v33 = vadd.f32 %v1977_v28, %v1274_v32 }
 0x3f6   : > { %v1224_v14 = vpop.f32.mrf.mxu1 }
 0x3fe   : > { %v1226_v15 = vpop.f32.mrf.mxu1 }
 0x3ff   : > { %v1229_v16 = vpack.c.bf16 %v1226_v15, %v1224_v14 }
 0x401   : > { %1758 = vmatmul.msk.bf16.vlgmr.msrb.gmra.mxu2 %vm1100_vm4, %v1229_v16  ;;  %v1966_v16 = vld [vmem:[%s2785_s19] ss:$0 sm:$0xff] }
 0x484   : > { %v1257_v18 = vpop.f32.mrf.mxu2 }
 0x485   : > { %v1258_v19 = vadd.f32 %v1964_v17, %v1257_v18 }
 0x487   : > { %v1262_v20 = vadd.f32 %v1258_v19, %v2686_v29  ;;  %v2719_v29 = vsel %vm1276_vm9, %v1977_v28, %v1275_v33  ;;  %v1820_v28 = vld [vmem:[#allocation15 + $0x8] sm:$0xff] }
 0x488   : > { %1441 = vmatpush.bf16.msra.mxu1 %v1820_v28 }
 0x489   : > { %v1264_v21 = vsel %vm1100_vm4, %v1262_v20, 0.0 }
 0x48a   : > { %1265 = vadd.xlane.f32.xlu2 %v1264_v21 }
 0x48c   : > { %v1259_v23 = vpop.f32.mrf.mxu2  ;;  %1442 = vmatpush.bf16.msra.mxu1 %v1819_v30 }
 0x48d   : > { %v1260_v24 = vadd.f32 %v1964_v17, %v1259_v23 }
 0x48f   : > { %v1263_v25 = vadd.f32 %v1260_v24, %v2679_v22 }
 0x491   : > { %v1268_v26 = vsel %vm1267_vm8, %v1263_v25, 0.0 }
 0x492   : > { %1269 = vadd.xlane.f32.xlu1 %v1268_v26 }
 0x4fd   : > { %v1266_v34 = vpop.xlane.xlu2 %1265 }
 0x4fe   : > { %v1278_v35 = vmul.f32 %v2719_v29, %v1266_v34 }
 0x500   : > { %v1280_v36 = vsub.f32 %v1262_v20, %v1278_v35 }
 0x502   : > { %v1282_v37 = vmul.f32 %v1280_v36, %v1280_v36 }
 0x504   : > { %v1284_v22 = vsel %vm1100_vm4, %v1282_v37, 0.0 }
 0x505   : > { %v1270_v38 = vpop.xlane.xlu1 %1269  ;;  %1285 = vadd.xlane.f32.xlu2 %v1284_v22 }
 0x506   : > { %v1279_v39 = vmul.f32 %v2719_v29, %v1270_v38 }
 0x508   : > { %v1281_v40 = vsub.f32 %v1263_v25, %v1279_v39 }
 0x50a   : > { %v1283_v41 = vmul.f32 %v1281_v40, %v1281_v40 }
 0x50c   : > { %v1287_v42 = vsel %vm1267_vm8, %v1283_v41, 0.0 }
 0x50d   : > { %1288 = vadd.xlane.f32.xlu1 %v1287_v42 }
 0x578   : > { %v1286_v45 = vpop.xlane.xlu2 %1285 }
 0x579   : > { %v1290_v46 = vmul.f32 %v1286_v45, %v2719_v29 }
 0x57b   : > { %v1292_v47 = vadd.f32 1e-05, %v1290_v46 }
 0x57d   : > { %1978 = vrsqrt.f32 %v1292_v47  ;;  %vm1300_vm11 = vweird.f32 %v1292_v47 }
 0x580   : > { %v1289_v48 = vpop.xlane.xlu1 %1288 }
 0x581   : > { %v1291_v49 = vmul.f32 %v1289_v48, %v2719_v29 }
 0x583   : > { %v1979_v50 = vpop.eup %1978  ;;  %v1293_v51 = vadd.f32 1e-05, %v1291_v49 }
 0x584   : > { %v1295_v52 = vmul.f32 %v1979_v50, %v1292_v47  ;;  %vm1301_vm10 = vweird.f32 %v1979_v50 }
 0x585   : > { %1980 = vrsqrt.f32 %v1293_v51  ;;  %vm1302_vm13 = vmor %vm1300_vm11, %vm1301_vm10  ;;  %vm1310_vm14 = vweird.f32 %v1293_v51 }
 0x586   : > { %v1296_v53 = vmul.f32 %v1979_v50, %v1295_v52  ;;  %v1821_v52 = vld [vmem:[#allocation18] sm:$0xff] }
 0x587   : > { %1485 = vmatpush.bf16.msra.mxu2 %v1821_v52 }
 0x588   : > { %v1297_v54 = vmul.f32 0.5, %v1296_v53 }
 0x58a   : > { %v1298_v56 = vsub.f32 1.5, %v1297_v54 }
 0x58b   : > { %v1981_v55 = vpop.eup %1980 }
 0x58c   : > { %v1305_v57 = vmul.f32 %v1981_v55, %v1293_v51  ;;  %v1299_v59 = vmul.f32 %v1979_v50, %v1298_v56  ;;  %vm1311_vm12 = vweird.f32 %v1981_v55  ;;  %v1016_v56 = vld [vmem:[#allocation19] sm:$0x1] }
 0x58d   : > { %vm1312_vm15 = vmor %vm1310_vm14, %vm1311_vm12 }
 0x58e   : > { %v1306_v58 = vmul.f32 %v1981_v55, %v1305_v57  ;;  %v1303_v62 = vsel %vm1302_vm13, %v1979_v50, %v1299_v59 }
 0x58f   : > { %v1314_v1 = vmul.f32 %v1303_v62, %v1280_v36 }
 0x590   : > { %v1307_v60 = vmul.f32 0.5, %v1306_v58 }
 0x592   : > { %v1308_v61 = vsub.f32 1.5, %v1307_v60 }
 0x594   : > { %v1309_v63 = vmul.f32 %v1981_v55, %v1308_v61 }
 0x596   : > { %v1313_v0 = vsel %vm1312_vm15, %v1981_v55, %v1309_v63 }
 0x597   : > { %v1315_v2 = vmul.f32 %v1313_v0, %v1281_v40 }
 0x599   : > { %v1316_v3 = vpack.c.bf16 %v1315_v2, %v1314_v1 }
 0x59b   : > { %1767 = vmatmul.msk.bf16.vlgmr.msrb.gmra.mxu3 %vm1100_vm4, %v1316_v3 }
 0x61e   : > { %v1344_v8 = vpop.f32.mrf.mxu3 }
 0x61f   : > { %v1345_v10 = vadd.f32 %v1965_v9, %v1344_v8 }
 0x621   : > { %v1349_v13 = vmax.f32 %v1345_v10, 0.0 }
 0x626   : > { %v1346_v11 = vpop.f32.mrf.mxu3 }
 0x627   : > { %v1347_v12 = vadd.f32 %v1965_v9, %v1346_v11 }
 0x629   : > { %v1350_v14 = vmax.f32 %v1347_v12, 0.0 }
 0x62b   : > { %v1351_v15 = vpack.c.bf16 %v1350_v14, %v1349_v13 }
 0x62d   : > { %1784 = vmatmul.msk.bf16.vlgmr.msra.gmra.mxu0 %vm1379_vm0, %v1351_v15 }
 0x6aa   : > { %v1392_v17 = vpop.f32.mrf.mxu0 }
 0x6ab   : > { %v1393_v18 = vadd.f32 %v1966_v16, %v1392_v17 }
 0x6ad   : > { %v1396_v19 = vadd.f32 %v1393_v18, %v1314_v1 }
 0x6af   : > { %v1397_v20 = vsel %vm1100_vm4, %v1396_v19, 0.0 }
 0x6b0   : > { %1398 = vadd.xlane.f32.xlu2 %v1397_v20 }
 0x6b2   : > { %v1394_v21 = vpop.f32.mrf.mxu0 }
 0x6c8   : > { %1453 = vrot.lane.b32.xlu2 %v1967_v31, %s2400_s12 }
 0x723   : > { %v1399_v23 = vpop.xlane.xlu2 %1398 }
 0x724   : > { %v1400_v24 = vmul.f32 %v1399_v23, %v2719_v29 }
 0x726   : > { %v1401_v25 = vsub.f32 %v1396_v19, %v1400_v24 }
 0x728   : > { %v1402_v26 = vmul.f32 %v1401_v25, %v1401_v25 }
 0x72a   : > { %v1403_v27 = vsel %vm1100_vm4, %v1402_v26, 0.0 }
 0x72b   : > { %1404 = vadd.xlane.f32.xlu1 %v1403_v27  ;;  %v1454_v49 = vpop.permute.xlu2 %1453 }
 0x79e   : > { %v1405_v32 = vpop.xlane.xlu1 %1404 }
 0x79f   : > { %v1406_v33 = vmul.f32 %v1405_v32, %v2719_v29 }
 0x7a1   : > { %v1407_v34 = vadd.f32 1e-05, %v1406_v33 }
 0x7a3   : > { %1982 = vrsqrt.f32 %v1407_v34  ;;  %vm1414_vm2 = vweird.f32 %v1407_v34 }
 0x7a9   : > { %v1983_v35 = vpop.eup %1982 }
 0x7aa   : > { %v1409_v36 = vmul.f32 %v1983_v35, %v1407_v34  ;;  %vm1415_vm1 = vweird.f32 %v1983_v35 }
 0x7ab   : > { %vm1416_vm3 = vmor %vm1414_vm2, %vm1415_vm1 }
 0x7ac   : > { %v1410_v37 = vmul.f32 %v1983_v35, %v1409_v36 }
 0x7ae   : > { %v1411_v22 = vmul.f32 0.5, %v1410_v37 }
 0x7b0   : > { %v1412_v38 = vsub.f32 1.5, %v1411_v22 }
 0x7b2   : > { %v1413_v39 = vmul.f32 %v1983_v35, %v1412_v38 }
 0x7b4   : > { %v1417_v40 = vsel %vm1416_vm3, %v1983_v35, %v1413_v39 }
 0x7b5   : > { %v1418_v41 = vmul.f32 %v1417_v40, %v1401_v25 }
 0x7b7   : > { %v1419_v42 = vpack.c.bf16 %v1418_v41, %v1418_v41 }
 0x7b9   : > { %1793 = vmatmul.msk.bf16.vlgmr.msra.gmra.mxu1 %vm1100_vm4, %v1419_v42 }
 0x836   : > { %v1444_v29 = vpop.f32.mrf.mxu1 }
 0x837   : > { %v1445_v45 = vadd.f32 %v1444_v29, %v1011_v44 }
 0x839   : > { %v1448_v46 = vmul.f32 0.5, %v1445_v45 }
 0x83b   : > { %v1449_v47 = vmul.f32 1.442695, %v1448_v46 }
 0x83d   : > { %1984 = vpow2.f32 %v1449_v47 }
 0x83e   : > { %v1446_v48 = vpop.f32.mrf.mxu1 }
 0x843   : > { %v1985_v50 = vpop.eup %1984 }
 0x844   : > { %v1456_v51 = vmul.f32 %v1985_v50, %v1454_v49 }
 0x846   : > { %1458 = vrot.lane.b32.xlu1 %v1456_v51, %s2398_s8 }
 0x8b8   : > { %v1459_v53 = vpop.permute.xlu1 %1458 }
 0x8b9   : > { %v1461_v54 = vadd.f32 %v1459_v53, %v1445_v45 }
 0x8bb   : > { %v1462_v55 = vpack.c.bf16 %v1461_v54, %v1461_v54 }
 0x8bd   : > { %1802 = vmatmul.msk.bf16.vlgmr.msra.gmra.mxu2 %vm1100_vm4, %v1462_v55 }
 0x940   : > { %v1487_v57 = vpop.f32.mrf.mxu2 }
 0x941   : > { %v1488_v58 = vadd.f32 %v1487_v57, %v1016_v56 }
 0x943   : > { %1492 = vrot.lane.b32.xlu0 %v1488_v58, %s2401_s0 }
 0x948   : > { %v1489_v59 = vpop.f32.mrf.mxu2 }
 0x9b5   : > { %v1493_v60 = vpop.permute.xlu0 %1492 }
 0x9b6   : > { %v1495_v61 = vsel %vm1379_vm0, %v1445_v45, %v1493_v60 }
 0x9b7   : > { %v1497_v62 = vsel %vm1496_vm5, %v1495_v61, 0.0 }
 0x9b8   : > { %1498 = vst [vmem:[%s963_s28] sm:$0x1] %v1497_v62 }
 0x9b9 PF: > { %s2824_s8 = sld [smem:[#allocation28_spill]] }
 0x9bf   : > { %s41_s5 = sadd.s32 1, %s2824_s8  }
 0x9c0   : > { %p38_p7 = scmp.ge.s32.totalorder %s41_s5, 4  }
 0x9c2   :  { %40 = sbr.rel (!%p38_p7) target bundleno = 22 (0x16), region = 204 }
 0x9c7   :  { %1516 = vsyncpa [#allocation3], 1 }
 0x9c8   :  { %1518 = vsyncpa [#allocation3 + $0x1], 1 }
 0x9c9   :  { %1519 = vsyncpa [#allocation5], 1 }
 0x9ca   :  { %1520 = vsyncpa [#allocation8], 1 }
 0x9cb   :  { %1521 = vsyncpa [#allocation11], 1 }
 0x9cc   :  { %1522 = vsyncpa [#allocation14], 1 }
 0x9cd   :  { %1523 = vsyncpa [#allocation17], 1 }
 0x9ce   :  { %1524 = vsyncpa [#allocation20], 1 }

// kernel: g_img_act_forward.7
= control target key start
LH: loop header
LB: loop body
LE: loop exit
PB: predicated region body
PF: predicated region fallthrough
CT: control target
= control target key end

     0   :  { %s1503_s24 = smov 0   ;;  %s1815_s0 = inlined_call_operand.vmem [shape: f32[2,130,32], index: 0, kind: input, shape index: {}]   ;;  %s1816_s1 = inlined_call_operand.vmem [shape: f32[130,32], index: 1, kind: input, shape index: {}]   ;;  %s1817_s2 = inlined_call_operand.vmem [shape: f32[8,32], index: 2, kind: input, shape index: {}]   ;;  %s1818_s3 = inlined_call_operand.vmem [shape: bf16[32,32], index: 3, kind: input, shape index: {}]   ;;  %s1819_s4 = inlined_call_operand.vmem [shape: f32[1,32], index: 4, kind: input, shape index: {}]   ;;  %s1820_s5 = inlined_call_operand.vmem [shape: bf16[32,32], index: 5, kind: input, shape index: {}]   ;;  %s1821_s6 = inlined_call_operand.vmem [shape: f32[1,32], index: 6, kind: input, shape index: {}]   ;;  %s1822_s7 = inlined_call_operand.vmem [shape: bf16[32,32], index: 7, kind: input, shape index: {}]   ;;  %s1823_s8 = inlined_call_operand.vmem [shape: f32[1,32], index: 8, kind: input, shape index: {}]   ;;  %s1824_s9 = inlined_call_operand.vmem [shape: bf16[32,32], index: 9, kind: input, shape index: {}]   ;;  %s1825_s10 = inlined_call_operand.vmem [shape: f32[1,32], index: 10, kind: input, shape index: {}]   ;;  %s1826_s11 = inlined_call_operand.vmem [shape: bf16[32,64], index: 11, kind: input, shape index: {}]   ;;  %s1827_s12 = inlined_call_operand.vmem [shape: f32[1,64], index: 12, kind: input, shape index: {}]   ;;  %s1828_s13 = inlined_call_operand.vmem [shape: bf16[64,32], index: 13, kind: input, shape index: {}]   ;;  %s1829_s14 = inlined_call_operand.vmem [shape: f32[1,32], index: 14, kind: input, shape index: {}]   ;;  %s1830_s15 = inlined_call_operand.vmem [shape: bf16[32,128], index: 15, kind: input, shape index: {}]   ;;  %s1831_s16 = inlined_call_operand.vmem [shape: f32[1,128], index: 16, kind: input, shape index: {}]   ;;  %s1832_s17 = inlined_call_operand.vmem [shape: f32[2,8,128], index: 17, kind: output, shape index: {}]  }
   0x1   :  { %1834 = sst [smem:[#allocation2_spill]] %s1815_s0 }
   0x2   :  { %1835 = sst [smem:[#allocation3_spill]] %s1816_s1 }
   0x3 LB: > { %s1260_s25 = sadd.s32 4294967295, %s1410_s24   ;;  %p1264_p0 = scmp.ge.s32.totalorder %s1410_s24, 1  ;;  %s1410_s24 = sphi %s1503_s24, %s27_s24  }
   0x4   : > { %p487_p1 = scmp.lt.s32.totalorder %s1410_s24, 3 }
   0x6   : > { %p488_p2 = pnand %p1264_p0, %p487_p1 }
   0x7   : > { %p538_p3 = scmp.lt.s32.totalorder (!%p488_p2), %s1260_s25, 1  ;;  %s1836_s19 = sld [smem:[#allocation3_spill]] (!%p488_p2) }
   0x8   : > { %491 = sbr.rel (%p488_p2) target bundleno = 1944 (0x798), region = 88  ;;  %s1837_s23 = sld [smem:[#allocation2_spill]] (!%p488_p2) }
   0xd   : > { %v1362_v0 = vld [vmem:[%s1820_s5 + $0x8] sm:$0xff]  ;;  %v1361_v1 = vld [vmem:[%s1820_s5] sm:$0xff]  ;;  %s1839_s25 = smov (!%p538_p3, %s1260_s25), 1  ;;  %vm639_vm0 = vcmask 261120   ;;  %v601_v9 = vld [vmem:[%s1836_s19 + $0x10] sm:$0xff]  ;;  %vm949_vm1 = vcmask 15360  }
   0xe   : > { %730 = vmatpush.bf16.msra.mxu1 %v1362_v0  ;;  %s1375_s0 = smul.u32 136, %s1839_s25  ;;  %v599_v2 = vld [vmem:[%s1836_s19] sm:$0xff]  ;;  %v600_v3 = vld [vmem:[%s1836_s19 + $0x8] sm:$0xff]  ;;  %v602_v12 = vld [vmem:[%s1836_s19 + $0x18] sm:$0xff]  ;;  %vm981_vm2 = vcmask 1040384   ;;  %vm1134_vm7 = vcmask 523264  }
   0xf   : > { %v603_v16 = vld [vmem:[%s1836_s19 + $0x20] sm:$0xff]  ;;  %v604_v19 = vld [vmem:[%s1836_s19 + $0x28] sm:$0xff]  ;;  %v605_v25 = vld [vmem:[%s1836_s19 + $0x30] sm:$0xff]  ;;  %s1266_s29 = sshll.u32 %s1839_s25, 3 }
  0x10   : > { %s1529_s26 = scalar_lea.vmem %s1837_s23, %s1375_s0  ;;  %v606_v26 = vld [vmem:[%s1836_s19 + $0x38] sm:$0xff]  ;;  %v607_v32 = vld [vmem:[%s1836_s19 + $0x40] sm:$0xff]  ;;  %v608_v33 = vld [vmem:[%s1836_s19 + $0x48] sm:$0xff]  ;;  %s546_s20 = scalar_lea.vmem %s1832_s17, %s1266_s29 }
  0x11   : > { %v1532_v4 = vld [vmem:[%s1529_s26] sm:$0xff]  ;;  %v1535_v5 = vld [vmem:[%s1529_s26 + $0x8] sm:$0xff]  ;;  %v1544_v10 = vld [vmem:[%s1529_s26 + $0x10] sm:$0xff] }
  0x12   : > { %731 = vmatpush.bf16.msra.mxu1 %v1361_v1  ;;  %v656_v6 = vadd.f32 %v599_v2, %v1532_v4  ;;  %v657_v7 = vadd.f32 %v600_v3, %v1535_v5  ;;  %v1547_v11 = vld [vmem:[%s1529_s26 + $0x18] sm:$0xff]  ;;  %v658_v13 = vadd.f32 %v601_v9, %v1544_v10  ;;  %v1559_v17 = vld [vmem:[%s1529_s26 + $0x20] sm:$0xff]  ;;  %v1562_v18 = vld [vmem:[%s1529_s26 + $0x28] sm:$0xff] }
  0x13   : > { %v659_v14 = vadd.f32 %v602_v12, %v1547_v11  ;;  %v660_v20 = vadd.f32 %v603_v16, %v1559_v17  ;;  %v661_v21 = vadd.f32 %v604_v19, %v1562_v18  ;;  %v1571_v23 = vld [vmem:[%s1529_s26 + $0x30] sm:$0xff]  ;;  %v1574_v24 = vld [vmem:[%s1529_s26 + $0x38] sm:$0xff]  ;;  %v1586_v30 = vld [vmem:[%s1529_s26 + $0x40] sm:$0xff] }
  0x14   : > { %v673_v8 = vpack.c.bf16 %v657_v7, %v656_v6  ;;  %v662_v27 = vadd.f32 %v605_v25, %v1571_v23  ;;  %v663_v28 = vadd.f32 %v606_v26, %v1574_v24  ;;  %v1589_v31 = vld [vmem:[%s1529_s26 + $0x48] sm:$0xff]  ;;  %v664_v34 = vadd.f32 %v607_v32, %v1586_v30  ;;  %v1601_v37 = vld [vmem:[%s1529_s26 + $0x50] sm:$0xff]  ;;  %v1604_v38 = vld [vmem:[%s1529_s26 + $0x58] sm:$0xff] }
  0x15   : > { %v674_v15 = vpack.c.bf16 %v659_v14, %v658_v13  ;;  %v675_v22 = vpack.c.bf16 %v661_v21, %v660_v20  ;;  %v665_v35 = vadd.f32 %v608_v33, %v1589_v31  ;;  %v609_v39 = vld [vmem:[%s1836_s19 + $0x50] sm:$0xff]  ;;  %v610_v40 = vld [vmem:[%s1836_s19 + $0x58] sm:$0xff]  ;;  %v1616_v44 = vld [vmem:[%s1529_s26 + $0x60] sm:$0xff] }
  0x16   : > { %1284 = vmatmul.msk.bf16.vlgmr.msra.gmra.mxu1 %vm639_vm0, %v673_v8  ;;  %v676_v29 = vpack.c.bf16 %v663_v28, %v662_v27  ;;  %v666_v41 = vadd.f32 %v609_v39, %v1601_v37  ;;  %v667_v42 = vadd.f32 %v610_v40, %v1604_v38  ;;  %v1619_v45 = vld [vmem:[%s1529_s26 + $0x68] sm:$0xff]  ;;  %v611_v46 = vld [vmem:[%s1836_s19 + $0x60] sm:$0xff]  ;;  %v1631_v51 = vld [vmem:[%s1529_s26 + $0x70] sm:$0xff] }
  0x17   : > { %v677_v36 = vpack.c.bf16 %v665_v35, %v664_v34  ;;  %v612_v47 = vld [vmem:[%s1836_s19 + $0x68] sm:$0xff]  ;;  %v668_v48 = vadd.f32 %v611_v46, %v1616_v44  ;;  %v1634_v52 = vld [vmem:[%s1529_s26 + $0x78] sm:$0xff]  ;;  %v613_v53 = vld [vmem:[%s1836_s19 + $0x70] sm:$0xff] }
  0x18   : > { %v678_v43 = vpack.c.bf16 %v667_v42, %v666_v41  ;;  %v669_v49 = vadd.f32 %v612_v47, %v1619_v45  ;;  %v614_v54 = vld [vmem:[%s1836_s19 + $0x78] sm:$0xff]  ;;  %v670_v55 = vadd.f32 %v613_v53, %v1631_v51  ;;  %v1646_v59 = vld [vmem:[%s1529_s26 + $0x80] sm:$0x3]  ;;  %v1360_v3 = vld [vmem:[%s1818_s3 + $0x8] sm:$0xff] }
  0x19   : > { %v671_v56 = vadd.f32 %v614_v54, %v1634_v52  ;;  %v615_v60 = vld [vmem:[%s1836_s19 + $0x80] sm:$0x3]  ;;  %649 = vmatpush.bf16.msra.mxu0 %v1360_v3 }
  0x1a   : > { %v679_v50 = vpack.c.bf16 %v669_v49, %v668_v48  ;;  %v672_v61 = vadd.f32 %v615_v60, %v1646_v59  ;;  %v1385_v63 = vld [vmem:[%s1821_s6] ss:$0 sm:$0xff]  ;;  %v777_v48 = vpack.c.bf16 %v1535_v5, %v1532_v4  ;;  %v778_v60 = vpack.c.bf16 %v1547_v11, %v1544_v10 }
  0x1b   : > { %v680_v57 = vpack.c.bf16 %v671_v56, %v670_v55  ;;  %v1359_v6 = vld [vmem:[%s1818_s3] sm:$0xff]  ;;  %v779_v11 = vpack.c.bf16 %v1562_v18, %v1559_v17 }
  0x1c   : > { %v681_v62 = vpack.c.bf16 %v672_v61, %v672_v61  ;;  %v616_v9 = vld [vmem:[%s1817_s2] sm:$0xff] }
  0x1d   : > { %650 = vmatpush.bf16.msra.mxu0 %v1359_v6  ;;  %v623_v12 = vpack.c.bf16 %v616_v9, %v616_v9  ;;  %v1363_v47 = vld [vmem:[%s1822_s7] sm:$0xff] }
  0x1e   : > { %v1386_v10 = vld [vmem:[%s1819_s4] ss:$0 sm:$0xff] }
  0x20   : > { %1275 = vmatmul.msk.bf16.vlgmr.msra.gmra.mxu0 %vm639_vm0, %v623_v12 }
  0x26   : > { %1285 = vmatmul.msk.bf16.gmra.mxu1 %vm639_vm0, %v674_v15 }
  0x36   : > { %1286 = vmatmul.msk.bf16.gmra.mxu1 %vm639_vm0, %v675_v22 }
  0x46   : > { %1287 = vmatmul.msk.bf16.gmra.mxu1 %vm639_vm0, %v676_v29 }
  0x56   : > { %1288 = vmatmul.msk.bf16.gmra.mxu1 %vm639_vm0, %v677_v36 }
  0x66   : > { %1289 = vmatmul.msk.bf16.gmra.mxu1 %vm639_vm0, %v678_v43  ;;  %v1364_v43 = vld [vmem:[%s1822_s7 + $0x8] sm:$0xff] }
  0x67   : > { %834 = vmatpush.bf16.msra.mxu2 %v1364_v43 }
  0x6b   : > { %835 = vmatpush.bf16.msra.mxu2 %v1363_v47 }
  0x6e   : > { %1301 = vmatmul.msk.bf16.vlgmr.msra.gmra.mxu2 %vm639_vm0, %v777_v48 }
  0x76   : > { %1290 = vmatmul.msk.bf16.gmra.mxu1 %vm639_vm0, %v679_v50 }
  0x7e   : > { %1302 = vmatmul.msk.bf16.gmra.mxu2 %vm639_vm0, %v778_v60 }
  0x86   : > { %1291 = vmatmul.msk.bf16.gmra.mxu1 %vm639_vm0, %v680_v57 }
  0x8e   : > { %1303 = vmatmul.msk.bf16.gmra.mxu2 %vm639_vm0, %v779_v11 }
  0x93   : > { %v733_v58 = vpop.f32.mrf.mxu1 }
  0x94   : > { %v1656_v1 = vadd.f32 %v1385_v63, %v733_v58 }
  0x96   : > { %1292 = vmatmul.msk.bf16.gmra.mxu1 %vm639_vm0, %v681_v62 }
  0x9b   : > { %v735_v0 = vpop.f32.mrf.mxu1 }
  0x9c   : > { %v1658_v2 = vadd.f32 %v1385_v63, %v735_v0 }
  0x9e   : > { %v882_v7 = vpack.c.bf16 %v1658_v2, %v1656_v1  ;;  %v1734_v1 = vld [vmem:[%s1823_s8] ss:$0 sm:$0xff] }
  0xa3   : > { %v738_v8 = vpop.f32.mrf.mxu1 }
  0xa4   : > { %v1672_v14 = vadd.f32 %v1385_v63, %v738_v8 }
  0xab   : > { %v740_v13 = vpop.f32.mrf.mxu1 }
  0xac   : > { %v1674_v15 = vadd.f32 %v1385_v63, %v740_v13 }
  0xae   : > { %v883_v16 = vpack.c.bf16 %v1674_v15, %v1672_v14  ;;  %v783_v14 = vpack.c.bf16 %v1619_v45, %v1616_v44 }
  0xb0   : > { %v898_v18 = vsel %vm639_vm0, %v883_v16, 0 }
  0xb3   : > { %v743_v19 = vpop.f32.mrf.mxu1 }
  0xb4   : > { %v1678_v21 = vadd.f32 %v1385_v63, %v743_v19  ;;  %v652_v19 = vpop.f32.mrf.mxu0 }
  0xbb   : > { %v745_v20 = vpop.f32.mrf.mxu1 }
  0xbc   : > { %v746_v22 = vadd.f32 %v1385_v63, %v745_v20  ;;  %v653_v20 = vadd.f32 %v1386_v10, %v652_v19 }
  0xbe   : > { %v884_v25 = vpack.c.bf16 %v746_v22, %v1678_v21  ;;  %v881_v21 = vpack.c.bf16 %v653_v20, %v653_v20  ;;  %v654_v22 = vpop.f32.mrf.mxu0 }
  0xc0   : > { %v901_v17 = vsel %vm639_vm0, %v884_v25, 0 }
  0xc3   : > { %v748_v26 = vpop.f32.mrf.mxu1 }
  0xc4   : > { %v749_v28 = vadd.f32 %v1385_v63, %v748_v26 }
  0xcb   : > { %v750_v27 = vpop.f32.mrf.mxu1 }
  0xcc   : > { %v751_v29 = vadd.f32 %v1385_v63, %v750_v27  ;;  %v780_v27 = vpack.c.bf16 %v1574_v24, %v1571_v23  ;;  %v895_v23 = vsel %vm639_vm0, %v882_v7, 0  ;;  %v782_v24 = vpack.c.bf16 %v1604_v38, %v1601_v37 }
  0xce   : > { %v885_v32 = vpack.c.bf16 %v751_v29, %v749_v28  ;;  %1304 = vmatmul.msk.bf16.gmra.mxu2 %vm639_vm0, %v780_v27  ;;  %v781_v28 = vpack.c.bf16 %v1589_v31, %v1586_v30  ;;  %v784_v30 = vpack.c.bf16 %v1634_v52, %v1631_v51 }
  0xd0   : > { %v904_v26 = vsel %vm639_vm0, %v885_v32, 0 }
  0xd3   : > { %v753_v33 = vpop.f32.mrf.mxu1 }
  0xd4   : > { %v754_v35 = vadd.f32 %v1385_v63, %v753_v33 }
  0xdb   : > { %v755_v34 = vpop.f32.mrf.mxu1 }
  0xdc   : > { %v756_v36 = vadd.f32 %v1385_v63, %v755_v34 }
  0xde   : > { %v886_v39 = vpack.c.bf16 %v756_v36, %v754_v35  ;;  %1305 = vmatmul.msk.bf16.gmra.mxu2 %vm639_vm0, %v781_v28 }
  0xe3   : > { %v758_v40 = vpop.f32.mrf.mxu1 }
  0xe4   : > { %v759_v3 = vadd.f32 %v1385_v63, %v758_v40 }
  0xeb   : > { %v760_v41 = vpop.f32.mrf.mxu1 }
  0xec   : > { %v761_v5 = vadd.f32 %v1385_v63, %v760_v41 }
  0xee   : > { %v887_v6 = vpack.c.bf16 %v761_v5, %v759_v3  ;;  %1306 = vmatmul.msk.bf16.gmra.mxu2 %vm639_vm0, %v782_v24  ;;  %v785_v3 = vpack.c.bf16 %v1646_v59, %v1646_v59 }
  0xf0   : > { %v910_v12 = vsel %vm639_vm0, %v887_v6, 0 }
  0xf1   : > { %v837_v31 = vpop.f32.mrf.mxu2 }
  0xf2   : > { %v838_v37 = vadd.f32 %v1734_v1, %v837_v31 }
  0xf3   : > { %v763_v42 = vpop.f32.mrf.mxu1 }
  0xf4   : > { %v764_v58 = vadd.f32 %v1385_v63, %v763_v42 }
  0xf9   : > { %v839_v38 = vpop.f32.mrf.mxu2 }
  0xfa   : > { %v840_v2 = vadd.f32 %v1734_v1, %v839_v38 }
  0xfb   : > { %v765_v46 = vpop.f32.mrf.mxu1 }
  0xfc   : > { %v766_v56 = vadd.f32 %v1385_v63, %v765_v46  ;;  %v969_v7 = vpack.c.bf16 %v840_v2, %v838_v37 }
  0xfe   : > { %v888_v61 = vpack.c.bf16 %v766_v56, %v764_v58  ;;  %1307 = vmatmul.msk.bf16.gmra.mxu2 %vm639_vm0, %v783_v14 }
 0x100   : > { %v913_v62 = vsel %vm639_vm0, %v888_v61, 0 }
 0x101   : > { %v842_v44 = vpop.f32.mrf.mxu2 }
 0x102   : > { %v843_v45 = vadd.f32 %v1734_v1, %v842_v44 }
 0x103   : > { %v768_v49 = vpop.f32.mrf.mxu1 }
 0x104   : > { %v769_v53 = vadd.f32 %v1385_v63, %v768_v49 }
 0x109   : > { %v844_v15 = vpop.f32.mrf.mxu2 }
 0x10a   : > { %v845_v51 = vadd.f32 %v1734_v1, %v844_v15 }
 0x10b   : > { %v770_v50 = vpop.f32.mrf.mxu1 }
 0x10c   : > { %v771_v54 = vadd.f32 %v1385_v63, %v770_v50  ;;  %v970_v52 = vpack.c.bf16 %v845_v51, %v843_v45  ;;  %v1366_v45 = vld [vmem:[%s1824_s9 + $0x8] sm:$0xff] }
 0x10e   : > { %v889_v55 = vpack.c.bf16 %v771_v54, %v769_v53  ;;  %1308 = vmatmul.msk.bf16.gmra.mxu2 %vm639_vm0, %v784_v30 }
 0x110   : > { %v916_v57 = vsel %vm639_vm0, %v889_v55, 0 }
 0x111   : > { %921 = vmatpush.bf16.xpose.msra.mxu3 %v916_v57  ;;  %v847_v25 = vpop.f32.mrf.mxu2 }
 0x112   : > { %v848_v32 = vadd.f32 %v1734_v1, %v847_v25 }
 0x113   : > { %v773_v4 = vpop.f32.mrf.mxu1 }
 0x114   : > { %v774_v0 = vadd.f32 %v1385_v63, %v773_v4  ;;  %v907_v63 = vsel %vm639_vm0, %v886_v39, 0 }
 0x116   : > { %v890_v8 = vpack.c.bf16 %v774_v0, %v774_v0 }
 0x118   : > { %v919_v13 = vsel %vm639_vm0, %v890_v8, 0 }
 0x119   : > { %922 = vmatpush.bf16.xpose.msra.mxu3 %v913_v62  ;;  %941 = vmatpush.bf16.xpose.msrb.mxu0 %v919_v13  ;;  %v849_v33 = vpop.f32.mrf.mxu2 }
 0x11a   : > { %v850_v34 = vadd.f32 %v1734_v1, %v849_v33 }
 0x11b   : > { %v775_v9 = vpop.f32.mrf.mxu1 }
 0x11c   : > { %v971_v35 = vpack.c.bf16 %v850_v34, %v848_v32  ;;  %v1388_v32 = vld [vmem:[%s1825_s10] ss:$0 sm:$0xff] }
 0x11e   : > { %1309 = vmatmul.msk.bf16.gmra.mxu2 %vm639_vm0, %v785_v3 }
 0x120   : > { %1311 = vmatmul.msk.bf16.vlgmr.msrb.gmra.mxu0 %vm639_vm0, %v881_v21 }
 0x121   : > { %923 = vmatpush.bf16.xpose.msra.mxu3 %v910_v12 }
 0x129   : > { %924 = vmatpush.bf16.xpose.msra.mxu3 %v907_v63 }
 0x131   : > { %925 = vmatpush.bf16.xpose.msra.mxu3 %v904_v26 }
 0x139   : > { %926 = vmatpush.bf16.xpose.msra.mxu3 %v901_v17 }
 0x141   : > { %927 = vmatpush.bf16.xpose.msra.mxu3 %v898_v18 }
 0x149   : > { %928 = vmatpush.bf16.xpose.msra.mxu3 %v895_v23 }
 0x150   : > { %1310 = vmatmul.msk.bf16.vlgmr.msra.gmra.mxu3 %vm639_vm0, %v881_v21 }
 0x151   : > { %v852_v36 = vpop.f32.mrf.mxu2  ;;  %1036 = vmatpush.bf16.msrb.mxu3 %v1366_v45 }
 0x152   : > { %v853_v39 = vadd.f32 %v1734_v1, %v852_v36 }
 0x159   : > { %v854_v40 = vpop.f32.mrf.mxu2 }
 0x15a   : > { %v855_v41 = vadd.f32 %v1734_v1, %v854_v40 }
 0x15c   : > { %v972_v42 = vpack.c.bf16 %v855_v41, %v853_v39  ;;  %v1412_v39 = vmov 32.0  }
 0x161   : > { %v857_v43 = vpop.f32.mrf.mxu2 }
 0x162   : > { %v858_v13 = vadd.f32 %v1734_v1, %v857_v43 }
 0x169   : > { %v859_v47 = vpop.f32.mrf.mxu2 }
 0x16a   : > { %v860_v10 = vadd.f32 %v1734_v1, %v859_v47 }
 0x16c   : > { %v973_v19 = vpack.c.bf16 %v860_v10, %v858_v13 }
 0x171   : > { %v862_v54 = vpop.f32.mrf.mxu2 }
 0x172   : > { %v863_v8 = vadd.f32 %v1734_v1, %v862_v54 }
 0x179   : > { %v864_v56 = vpop.f32.mrf.mxu2 }
 0x17a   : > { %v865_v9 = vadd.f32 %v1734_v1, %v864_v56  ;;  %v1367_v56 = vld [vmem:[%s1826_s11] sm:$0xff] }
 0x17c   : > { %v974_v11 = vpack.c.bf16 %v865_v9, %v863_v8 }
 0x181   : > { %v867_v57 = vpop.f32.mrf.mxu2 }
 0x182   : > { %v868_v5 = vadd.f32 %v1734_v1, %v867_v57  ;;  %v1372_v57 = vld [vmem:[%s1828_s13 + $0x18] sm:$0xff] }
 0x189   : > { %v869_v58 = vpop.f32.mrf.mxu2 }
 0x18a   : > { %v870_v62 = vadd.f32 %v1734_v1, %v869_v58  ;;  %v1371_v58 = vld [vmem:[%s1828_s13 + $0x10] sm:$0xff] }
 0x18c   : > { %v975_v12 = vpack.c.bf16 %v870_v62, %v868_v5 }
 0x191   : > { %v872_v60 = vpop.f32.mrf.mxu2 }
 0x192   : > { %v873_v61 = vadd.f32 %v1734_v1, %v872_v60 }
 0x199   : > { %v874_v4 = vpop.f32.mrf.mxu2 }
 0x19a   : > { %v875_v0 = vadd.f32 %v1734_v1, %v874_v4  ;;  %v1370_v4 = vld [vmem:[%s1828_s13 + $0x8] sm:$0xff] }
 0x19c   : > { %v976_v6 = vpack.c.bf16 %v875_v0, %v873_v61 }
 0x19d   : > { %v943_v16 = vpop.f32.mrf.mxu0 }
 0x19e   : > { %v948_v46 = vmul.f32 0.17677669, %v943_v16  ;;  %985 = vmatpush.bf16.msra.mxu0 %v976_v6 }
 0x1a0   : > { %v950_v50 = vsel %vm949_vm1, %v948_v46, -inf }
 0x1a1   : > { %v877_v28 = vpop.f32.mrf.mxu2 }
 0x1a2   : > { %986 = vmatpush.bf16.msra.mxu0 %v975_v12  ;;  %v878_v23 = vadd.f32 %v1734_v1, %v877_v28  ;;  %v1365_v1 = vld [vmem:[%s1824_s9] sm:$0xff] }
 0x1a3   : > { %1037 = vmatpush.bf16.msrb.mxu3 %v1365_v1 }
 0x1a4   : > { %v977_v24 = vpack.c.bf16 %v878_v23, %v878_v23 }
 0x1a5   : > { %v945_v29 = vpop.f32.mrf.mxu0 }
 0x1a6   : > { %987 = vmatpush.bf16.msra.mxu0 %v974_v11  ;;  %v983_v14 = vsel %vm981_vm2, %v977_v24, 0  ;;  %v1369_v11 = vld [vmem:[%s1828_s13] sm:$0xff] }
 0x1a7   : > { %1142 = vmatpush.bf16.msra.mxu3 %v1372_v57 }
 0x1a9   : > { %v879_v30 = vpop.f32.mrf.mxu2 }
 0x1aa   : > { %988 = vmatpush.bf16.msra.mxu0 %v973_v19  ;;  %v1389_v19 = vld [vmem:[%s1827_s12] ss:$0 sm:$0xff] }
 0x1ab   : > { %1143 = vmatpush.bf16.msra.mxu3 %v1371_v58 }
 0x1ae   : > { %989 = vmatpush.bf16.msra.mxu0 %v972_v42 }
 0x1af   : > { %1144 = vmatpush.bf16.msra.mxu3 %v1370_v4 }
 0x1b2   : > { %990 = vmatpush.bf16.msra.mxu0 %v971_v35 }
 0x1b3   : > { %1145 = vmatpush.bf16.msra.mxu3 %v1369_v11 }
 0x1b6   : > { %991 = vmatpush.bf16.msra.mxu0 %v970_v52 }
 0x1ba   : > { %992 = vmatpush.bf16.msra.mxu0 %v969_v7 }
 0x1be   : > { %1005 = vmatpush.bf16.msrb.mxu0 %v983_v14 }
 0x1d3   : > { %v930_v48 = vpop.f32.mrf.mxu3 }
 0x1d4   : > { %v947_v49 = vmul.f32 0.17677669, %v930_v48 }
 0x1d6   : > { %v951_v53 = vmax.f32 %v947_v49, %v950_v50 }
 0x1d8   : > { %952 = vmax.xlane.f32.xlu0 %v951_v53 }
 0x1db   : > { %v932_v55 = vpop.f32.mrf.mxu3 }
 0x1dc   : > { %v1368_v55 = vld [vmem:[%s1826_s11 + $0x8] sm:$0xff] }
 0x24b   : > { %v953_v59 = vpop.xlane.xlu0 %952 }
 0x24c   : > { %v954_v20 = vsub.f32 %v947_v49, %v953_v59  ;;  %v955_v21 = vsub.f32 %v948_v46, %v953_v59 }
 0x24e   : > { %v956_v63 = vmul.f32 1.442695, %v954_v20  ;;  %v958_v22 = vmul.f32 1.442695, %v955_v21 }
 0x250   : > { %1392 = vpow2.f32 %v956_v63 }
 0x251   : > { %1394 = vpow2.f32 %v958_v22 }
 0x256   : > { %v1393_v26 = vpop.eup %1392 }
 0x257   : > { %v1395_v27 = vpop.eup %1394 }
 0x258   : > { %v960_v17 = vsel %vm949_vm1, %v1395_v27, 0.0 }
 0x259   : > { %v961_v18 = vadd.f32 %v1393_v26, %v960_v17 }
 0x25b   : > { %962 = vadd.xlane.f32.xlu0 %v961_v18 }
 0x2ce   : > { %v963_v31 = vpop.xlane.xlu0 %962 }
 0x2cf   : > { %1396 = vrcp.f32 %v963_v31 }
 0x2d0   : > { %1398 = vrcp.f32 %v1412_v39 }
 0x2d5   : > { %v1397_v37 = vpop.eup %1396 }
 0x2d6   : > { %v965_v38 = vmul.f32 %v1397_v37, %v1393_v26  ;;  %v966_v7 = vmul.f32 %v1397_v37, %v1395_v27  ;;  %v1399_v40 = vpop.eup %1398  ;;  %v1390_v26 = vld [vmem:[%s1829_s14] ss:$0 sm:$0xff] }
 0x2d7   : > { %v1048_v41 = vmul.f32 32.0, %v1399_v40  ;;  %vm1052_vm3 = vweird.f32 %v1399_v40 }
 0x2d8   : > { %v967_v2 = vpack.c.bf16 %v965_v38, %v965_v38  ;;  %v968_v44 = vpack.c.bf16 %v966_v7, %v966_v7  ;;  %v1374_v38 = vld [vmem:[%s1830_s15 + $0x8] sm:$0xff] }
 0x2d9   : > { %v1049_v42 = vsub.f32 1.0, %v1048_v41 }
 0x2da   : > { %993 = vmatmul.bf16.vlgmr.msra.gmra.mxu0 %v967_v2  ;;  %v1373_v2 = vld [vmem:[%s1830_s15] sm:$0xff] }
 0x2db   : > { %v1050_v43 = vmul.f32 %v1399_v40, %v1049_v42  ;;  %1098 = vmatpush.bf16.msra.mxu0 %v1368_v55 }
 0x2dd   : > { %v1051_v46 = vadd.f32 %v1399_v40, %v1050_v43 }
 0x2df   : > { %v1053_v47 = vsel %vm1052_vm3, %v1399_v40, %v1051_v46  ;;  %1099 = vmatpush.bf16.msra.mxu0 %v1367_v56 }
 0x2ea   : > { %1312 = vmatmul.msk.bf16.vlgmr.msrb.gmra.mxu0 %vm949_vm1, %v968_v44 }
 0x2eb   : > { %1199 = vmatpush.bf16.msrb.mxu0 %v1374_v38 }
 0x2ef   : > { %1200 = vmatpush.bf16.msrb.mxu0 %v1373_v2 }
 0x357   : > { %v994_v15 = vpop.f32.mrf.mxu0 }
 0x35f   : > { %v996_v51 = vpop.f32.mrf.mxu0 }
 0x367   : > { %v1007_v52 = vpop.f32.mrf.mxu0 }
 0x368   : > { %v1008_v16 = vadd.f32 %v1007_v52, %v994_v15 }
 0x36a   : > { %v1011_v25 = vpack.c.bf16 %v1008_v16, %v1008_v16 }
 0x36c   : > { %1321 = vmatmul.msk.bf16.vlgmr.msrb.gmra.mxu3 %vm639_vm0, %v1011_v25 }
 0x36f   : > { %v1009_v29 = vpop.f32.mrf.mxu0 }
 0x3ef   : > { %v1039_v33 = vpop.f32.mrf.mxu3 }
 0x3f0   : > { %v1040_v34 = vadd.f32 %v1388_v32, %v1039_v33 }
 0x3f2   : > { %v1044_v35 = vsel %vm639_vm0, %v1040_v34, 0.0 }
 0x3f3   : > { %1045 = vadd.xlane.f32.xlu1 %v1044_v35 }
 0x3f7   : > { %v1041_v36 = vpop.f32.mrf.mxu3 }
 0x466   : > { %v1046_v48 = vpop.xlane.xlu1 %1045 }
 0x467   : > { %v1054_v49 = vmul.f32 %v1053_v47, %v1046_v48 }
 0x469   : > { %v1055_v50 = vsub.f32 %v1040_v34, %v1054_v49  ;;  %v1391_v34 = vld [vmem:[%s1831_s16] ss:$0 sm:$0xff] }
 0x46b   : > { %v1056_v53 = vmul.f32 %v1055_v50, %v1055_v50 }
 0x46d   : > { %v1057_v54 = vsel %vm639_vm0, %v1056_v53, 0.0 }
 0x46e   : > { %1058 = vadd.xlane.f32.xlu1 %v1057_v54 }
 0x4e1   : > { %v1059_v60 = vpop.xlane.xlu1 %1058 }
 0x4e2   : > { %v1060_v61 = vmul.f32 %v1059_v60, %v1053_v47 }
 0x4e4   : > { %v1061_v5 = vadd.f32 1e-05, %v1060_v61 }
 0x4e6   : > { %1400 = vrsqrt.f32 %v1061_v5  ;;  %vm1068_vm5 = vweird.f32 %v1061_v5 }
 0x4ec   : > { %v1401_v62 = vpop.eup %1400 }
 0x4ed   : > { %v1063_v0 = vmul.f32 %v1401_v62, %v1061_v5  ;;  %vm1069_vm4 = vweird.f32 %v1401_v62 }
 0x4ee   : > { %vm1070_vm6 = vmor %vm1068_vm5, %vm1069_vm4 }
 0x4ef   : > { %v1064_v3 = vmul.f32 %v1401_v62, %v1063_v0 }
 0x4f1   : > { %v1065_v6 = vmul.f32 0.5, %v1064_v3 }
 0x4f3   : > { %v1066_v8 = vsub.f32 1.5, %v1065_v6 }
 0x4f5   : > { %v1067_v9 = vmul.f32 %v1401_v62, %v1066_v8 }
 0x4f7   : > { %v1071_v12 = vsel %vm1070_vm6, %v1401_v62, %v1067_v9 }
 0x4f8   : > { %v1072_v13 = vmul.f32 %v1071_v12, %v1055_v50 }
 0x4fa   : > { %v1073_v10 = vpack.c.bf16 %v1072_v13, %v1072_v13 }
 0x4fc   : > { %1330 = vmatmul.msk.bf16.vlgmr.msra.gmra.mxu0 %vm639_vm0, %v1073_v10 }
 0x579   : > { %v1101_v59 = vpop.f32.mrf.mxu0 }
 0x57a   : > { %v1102_v20 = vadd.f32 %v1389_v19, %v1101_v59 }
 0x57c   : > { %v1105_v21 = vmax.f32 %v1102_v20, 0.0 }
 0x57e   : > { %v1106_v63 = vpack.c.bf16 %v1105_v21, %v1105_v21 }
 0x580   : > { %1347 = vmatmul.msk.bf16.vlgmr.msra.gmra.mxu3 %vm1134_vm7, %v1106_v63 }
 0x581   : > { %v1103_v22 = vpop.f32.mrf.mxu0 }
 0x603   : > { %v1147_v27 = vpop.f32.mrf.mxu3 }
 0x604   : > { %v1148_v17 = vadd.f32 %v1390_v26, %v1147_v27 }
 0x606   : > { %v1151_v18 = vadd.f32 %v1148_v17, %v1072_v13 }
 0x608   : > { %v1152_v28 = vsel %vm639_vm0, %v1151_v18, 0.0 }
 0x609   : > { %1153 = vadd.xlane.f32.xlu2 %v1152_v28 }
 0x60b   : > { %v1149_v23 = vpop.f32.mrf.mxu3 }
 0x67c   : > { %v1154_v24 = vpop.xlane.xlu2 %1153 }
 0x67d   : > { %v1155_v14 = vmul.f32 %v1154_v24, %v1053_v47 }
 0x67f   : > { %v1156_v30 = vsub.f32 %v1151_v18, %v1155_v14 }
 0x681   : > { %v1157_v31 = vmul.f32 %v1156_v30, %v1156_v30 }
 0x683   : > { %v1158_v37 = vsel %vm639_vm0, %v1157_v31, 0.0 }
 0x684   : > { %1159 = vadd.xlane.f32.xlu2 %v1158_v37 }
 0x6f7   : > { %v1160_v7 = vpop.xlane.xlu2 %1159 }
 0x6f8   : > { %v1161_v44 = vmul.f32 %v1160_v7, %v1053_v47 }
 0x6fa   : > { %v1162_v45 = vadd.f32 1e-05, %v1161_v44 }
 0x6fc   : > { %1402 = vrsqrt.f32 %v1162_v45  ;;  %vm1169_vm9 = vweird.f32 %v1162_v45 }
 0x702   : > { %v1403_v1 = vpop.eup %1402 }
 0x703   : > { %v1164_v15 = vmul.f32 %v1403_v1, %v1162_v45  ;;  %vm1170_vm8 = vweird.f32 %v1403_v1 }
 0x704   : > { %vm1171_vm10 = vmor %vm1169_vm9, %vm1170_vm8 }
 0x705   : > { %v1165_v51 = vmul.f32 %v1403_v1, %v1164_v15 }
 0x707   : > { %v1166_v52 = vmul.f32 0.5, %v1165_v51 }
 0x709   : > { %v1167_v16 = vsub.f32 1.5, %v1166_v52 }
 0x70b   : > { %v1168_v25 = vmul.f32 %v1403_v1, %v1167_v16 }
 0x70d   : > { %v1172_v29 = vsel %vm1171_vm10, %v1403_v1, %v1168_v25 }
 0x70e   : > { %v1173_v32 = vmul.f32 %v1172_v29, %v1156_v30 }
 0x710   : > { %v1174_v33 = vpack.c.bf16 %v1173_v32, %v1173_v32 }
 0x712   : > { %1356 = vmatmul.msk.bf16.vlgmr.msrb.gmra.mxu0 %vm639_vm0, %v1174_v33 }
 0x78f   : > { %v1202_v35 = vpop.f32.mrf.mxu0 }
 0x790   : > { %v1203_v36 = vadd.f32 %v1391_v34, %v1202_v35 }
 0x792   : > { %1206 = vst [vmem:[%s546_s20] sm:$0xff] %v1203_v36 }
 0x797   : > { %v1204_v39 = vpop.f32.mrf.mxu0 }
 0x798 PF: > { %s27_s24 = sadd.s32 1, %s1410_s24  }
 0x799   : > { %p24_p4 = scmp.ge.s32.totalorder %s27_s24, 4  }
 0x79b   :  { %26 = sbr.rel (!%p24_p4) target bundleno = 3 (0x3), region = 118 }

// kernel: g_img_act_forward.6
= control target key start
LH: loop header
LB: loop body
LE: loop exit
PB: predicated region body
PF: predicated region fallthrough
CT: control target
= control target key end

     0   :  { %s3286_s21 = smov 0   ;;  %s4766_s0 = inlined_call_operand.vmem [shape: f32[2,1,14], index: 0, kind: input, shape index: {}]   ;;  %s4767_s1 = inlined_call_operand.vmem [shape: f32[2,1,32], index: 1, kind: input, shape index: {}]   ;;  %s4768_s2 = inlined_call_operand.vmem [shape: f32[2,128,32], index: 2, kind: input, shape index: {}]   ;;  %s4769_s3 = inlined_call_operand.vmem [shape: f32[130,32], index: 3, kind: input, shape index: {}]   ;;  %s4770_s4 = inlined_call_operand.vmem [shape: bf16[14,32], index: 4, kind: input, shape index: {}]   ;;  %s4771_s5 = inlined_call_operand.vmem [shape: f32[1,32], index: 5, kind: input, shape index: {}]   ;;  %s4772_s6 = inlined_call_operand.vmem [shape: bf16[32,64], index: 6, kind: input, shape index: {}]   ;;  %s4773_s7 = inlined_call_operand.vmem [shape: f32[1,64], index: 7, kind: input, shape index: {}]   ;;  %s4774_s8 = inlined_call_operand.vmem [shape: bf16[32,32], index: 8, kind: input, shape index: {}]   ;;  %s4775_s9 = inlined_call_operand.vmem [shape: f32[1,32], index: 9, kind: input, shape index: {}]   ;;  %s4776_s10 = inlined_call_operand.vmem [shape: bf16[32,32], index: 10, kind: input, shape index: {}]   ;;  %s4777_s11 = inlined_call_operand.vmem [shape: f32[1,32], index: 11, kind: input, shape index: {}]   ;;  %s4778_s12 = inlined_call_operand.vmem [shape: bf16[32,64], index: 12, kind: input, shape index: {}]   ;;  %s4779_s13 = inlined_call_operand.vmem [shape: f32[1,64], index: 13, kind: input, shape index: {}]   ;;  %s4780_s14 = inlined_call_operand.vmem [shape: bf16[64,32], index: 14, kind: input, shape index: {}]   ;;  %s4781_s15 = inlined_call_operand.vmem [shape: f32[1,32], index: 15, kind: input, shape index: {}]   ;;  %s4782_s16 = inlined_call_operand.vmem [shape: f32[2,130,32], index: 16, kind: output, shape index: {}]  }
   0x1   :  { %4783 = sst [smem:[#allocation2_spill]] %s4766_s0 }
   0x2 LB: > { %s2850_s22 = sadd.s32 4294967295, %s3197_s21   ;;  %p2854_p0 = scmp.ge.s32.totalorder %s3197_s21, 1  ;;  %s3197_s21 = sphi %s3286_s21, %s26_s21  }
   0x3   : > { %p478_p1 = scmp.lt.s32.totalorder %s3197_s21, 3 }
   0x5   : > { %p479_p2 = pnand %p2854_p0, %p478_p1 }
   0x6   : > { %p534_p3 = scmp.lt.s32.totalorder (!%p479_p2), %s2850_s22, 1  ;;  %s4784_s18 = sld [smem:[#allocation2_spill]] (!%p479_p2) }
   0x7   : > { %482 = sbr.rel (%p479_p2) target bundleno = 2210 (0x8a2), region = 84  ;;  %s3199_s0 = smov (!%p479_p2), 96  }
   0xc   : > { %v2860_v0 = vld [vmem:[%s4770_s4] sm:$0xf]  ;;  %v2998_v1 = vld [vmem:[%s4770_s4] sm:$0x70]  ;;  %vm628_vm0 = vcmask 1046528   ;;  %v2987_v3 = vld [vmem:[%s4772_s6 + $0x8] sm:$0xff] }
   0xd   : > { %v2861_v2 = vor.u32 %v2998_v1, %v2860_v0  ;;  %s4786_s22 = smov (!%p534_p3, %s2850_s22), 1  ;;  %3000 = vmatpush.bf16.msra.mxu2 %v2987_v3  ;;  %v2986_v5 = vld [vmem:[%s4772_s6] sm:$0xff]  ;;  %2999 = vmatpush.bf16.msra.mxu1 %v2987_v3  ;;  %vm624_vm1 = vcmask 113664   ;;  %vm664_vm2 = vcmask 1041408   ;;  %v608_v11 = vld [vmem:[%s4769_s3 + $0x50] sm:$0xff]  ;;  %v609_v12 = vld [vmem:[%s4769_s3 + $0x58] sm:$0xff] }
   0xe   : > { %s536_s19 = scalar_lea.vmem %s4784_s18, %s4786_s22  ;;  %s2985_s20 = sshll.u32 %s4786_s22, 7  ;;  %vm757_vm3 = vcmask 261120   ;;  %v604_v28 = vld [vmem:[%s4769_s3 + $0x30] sm:$0xff]  ;;  %v605_v29 = vld [vmem:[%s4769_s3 + $0x38] sm:$0xff]  ;;  %v610_v37 = vld [vmem:[%s4769_s3 + $0x60] sm:$0xff]  ;;  %vm713_vm4 = vcmask 1040384  }
   0xf   : > { %v630_v4 = vsel %vm628_vm0, %v2861_v2, 0  ;;  %s3316_s25 = scalar_lea.vmem %s4768_s2, %s2985_s20  ;;  %v580_v6 = vld [vmem:[%s536_s19] sm:$0x1]  ;;  %v611_v38 = vld [vmem:[%s4769_s3 + $0x68] sm:$0xff]  ;;  %v612_v58 = vld [vmem:[%s4769_s3 + $0x70] sm:$0xff]  ;;  %s539_s17 = scalar_lea.vmem %s4767_s1, %s4786_s22  ;;  %vm1172_vm5 = vcmask 15360  }
  0x10   : > { %639 = vmatpush.bf16.msra.mxu0 %v630_v4  ;;  %v618_v7 = vpack.c.bf16 %v580_v6, %v580_v6  ;;  %v591_v8 = vld [vmem:[%s3316_s25 + $0x48] sm:$0xff]  ;;  %v592_v9 = vld [vmem:[%s3316_s25 + $0x50] sm:$0xff]  ;;  %v593_v10 = vld [vmem:[%s3316_s25 + $0x58] sm:$0xff]  ;;  %vm1238_vm6 = vcmask 9216   ;;  %vm1797_vm14 = vcmask 254976  }
  0x11   : > { %3002 = vmatpush.bf16.msra.mxu2 %v2986_v5  ;;  %v682_v13 = vrot.slane %v591_v8, 6  ;;  %v684_v14 = vrot.slane %v592_v9, 6  ;;  %v686_v15 = vrot.slane %v593_v10, 6  ;;  %3001 = vmatpush.bf16.msra.mxu1 %v2986_v5  ;;  %v594_v20 = vld [vmem:[%s3316_s25 + $0x60] sm:$0xff]  ;;  %v595_v22 = vld [vmem:[%s3316_s25 + $0x68] sm:$0xff]  ;;  %v588_v25 = vld [vmem:[%s3316_s25 + $0x30] sm:$0xff] }
  0x12   : > { %v688_v23 = vrot.slane %v594_v20, 6  ;;  %v3339_v24 = vld [vmem:[%s3316_s25 + $0x28] sm:$0xff]  ;;  %v589_v26 = vld [vmem:[%s3316_s25 + $0x38] sm:$0xff]  ;;  %v690_v27 = vrot.slane %v595_v22, 6  ;;  %v676_v31 = vrot.slane %v588_v25, 6  ;;  %v590_v42 = vld [vmem:[%s3316_s25 + $0x40] sm:$0xff] }
  0x13   : > { %2862 = vmatmul.msk.bf16.vlgmr.msra.gmra.mxu0 %vm624_vm1, %v618_v7  ;;  %v3328_v16 = vsel %vm664_vm2, %v682_v13, %v684_v14  ;;  %v3331_v17 = vsel %vm664_vm2, %v684_v14, %v686_v15  ;;  %v674_v30 = vrot.slane %v3339_v24, 6  ;;  %v678_v32 = vrot.slane %v589_v26, 6  ;;  %v606_v47 = vld [vmem:[%s4769_s3 + $0x40] sm:$0xff]  ;;  %v607_v48 = vld [vmem:[%s4769_s3 + $0x48] sm:$0xff]  ;;  %v596_v51 = vld [vmem:[%s3316_s25 + $0x70] sm:$0xff] }
  0x14   : > { %791 = vmatpush.bf16.msrb.mxu0 %v2987_v3  ;;  %v726_v18 = vadd.f32 %v3328_v16, %v608_v11  ;;  %v727_v19 = vadd.f32 %v3331_v17, %v609_v12  ;;  %v3367_v39 = vsel %vm664_vm2, %v686_v15, %v688_v23  ;;  %v3370_v40 = vsel %vm664_vm2, %v688_v23, %v690_v27  ;;  %v597_v52 = vld [vmem:[%s3316_s25 + $0x78] sm:$0xff]  ;;  %v614_v1 = vld [vmem:[%s4769_s3 + $0x80] sm:$0x3]  ;;  %v2989_v4 = vld [vmem:[%s4774_s8 + $0x8] sm:$0xff] }
  0x15   : > { %v3353_v33 = vsel %vm664_vm2, %v674_v30, %v676_v31  ;;  %v3356_v34 = vsel %vm664_vm2, %v676_v31, %v678_v32  ;;  %v728_v43 = vadd.f32 %v3367_v39, %v610_v37  ;;  %v729_v44 = vadd.f32 %v3370_v40, %v611_v38  ;;  %v613_v59 = vld [vmem:[%s4769_s3 + $0x78] sm:$0xff]  ;;  %895 = vmatpush.bf16.msrb.mxu2 %v2989_v4  ;;  %v582_v6 = vld [vmem:[%s3316_s25] sm:$0xff]  ;;  %v583_v7 = vld [vmem:[%s3316_s25 + $0x8] sm:$0xff] }
  0x16   : > { %v738_v21 = vpack.c.bf16 %v727_v19, %v726_v18  ;;  %v722_v35 = vadd.f32 %v3353_v33, %v604_v28  ;;  %v723_v36 = vadd.f32 %v3356_v34, %v605_v29  ;;  %v680_v45 = vrot.slane %v590_v42, 6  ;;  %v617_v8 = vld [vmem:[%s4771_s5] sm:$0x1]  ;;  %v599_v15 = vld [vmem:[%s4769_s3 + $0x8] sm:$0xff]  ;;  %v584_v28 = vld [vmem:[%s3316_s25 + $0x10] sm:$0xff] }
  0x17   : > { %v739_v46 = vpack.c.bf16 %v729_v44, %v728_v43  ;;  %v692_v55 = vrot.slane %v596_v51, 6  ;;  %v3393_v56 = vrot.slane %v597_v52, 6  ;;  %v665_v9 = vrot.slane %v582_v6, 6  ;;  %v598_v19 = vld [vmem:[%s4769_s3] sm:$0xff]  ;;  %v585_v29 = vld [vmem:[%s3316_s25 + $0x18] sm:$0xff]  ;;  %v600_v38 = vld [vmem:[%s4769_s3 + $0x10] sm:$0xff] }
  0x18   : > { %792 = vmatpush.bf16.msrb.mxu0 %v2986_v5  ;;  %2876 = vmatmul.msk.bf16.vlgmr.msra.gmra.mxu2 %vm757_vm3, %v738_v21  ;;  %v736_v41 = vpack.c.bf16 %v723_v36, %v722_v35  ;;  %v3383_v49 = vsel %vm664_vm2, %v678_v32, %v680_v45  ;;  %v3386_v50 = vsel %vm664_vm2, %v680_v45, %v682_v13  ;;  %v2988_v5 = vld [vmem:[%s4774_s8] sm:$0xff]  ;;  %v666_v10 = vrot.slane %v583_v7, 6 }
  0x19   : > { %v724_v53 = vadd.f32 %v3383_v49, %v606_v47  ;;  %v725_v54 = vadd.f32 %v3386_v50, %v607_v48  ;;  %v3402_v60 = vsel %vm664_vm2, %v690_v27, %v692_v55  ;;  %v3406_v61 = vsel %vm664_vm2, %v692_v55, %v3393_v56  ;;  %896 = vmatpush.bf16.msrb.mxu2 %v2988_v5  ;;  %v581_v13 = vld [vmem:[%s539_s17] sm:$0x1] }
  0x1a   : > { %2874 = vmatmul.msk.bf16.vlgmr.msra.gmra.mxu1 %vm757_vm3, %v736_v41  ;;  %v730_v62 = vadd.f32 %v3402_v60, %v612_v58  ;;  %v731_v63 = vadd.f32 %v3406_v61, %v613_v59  ;;  %v732_v2 = vadd.f32 %v3393_v56, %v614_v1  ;;  %v3433_v14 = vsel %vm664_vm2, %v665_v9, %v666_v10  ;;  %v601_v41 = vld [vmem:[%s4769_s3 + $0x18] sm:$0xff]  ;;  %v3468_v42 = vld [vmem:[%s4773_s7] ss:$0 sm:$0xff] }
  0x1b   : > { %v737_v57 = vpack.c.bf16 %v725_v54, %v724_v53  ;;  %v717_v21 = vadd.f32 %v3433_v14, %v599_v15  ;;  %v668_v31 = vrot.slane %v584_v28, 6  ;;  %v670_v32 = vrot.slane %v585_v29, 6  ;;  %v586_v54 = vld [vmem:[%s3316_s25 + $0x20] sm:$0xff]  ;;  %s3003_s25 = smul.u32 136, %s4786_s22 }
  0x1c   : > { %v740_v0 = vpack.c.bf16 %v731_v63, %v730_v62  ;;  %v741_v3 = vpack.c.bf16 %v732_v2, %v732_v2  ;;  %v672_v55 = vrot.slane %v586_v54, 6  ;;  %v602_v62 = vld [vmem:[%s4769_s3 + $0x20] sm:$0xff]  ;;  %v603_v63 = vld [vmem:[%s4769_s3 + $0x28] sm:$0xff] }
  0x1d   : > { %v3454_v36 = vsel %vm664_vm2, %v666_v10, %v668_v31  ;;  %v3457_v37 = vsel %vm664_vm2, %v668_v31, %v670_v32  ;;  %v844_v31 = vpack.c.bf16 %v3370_v40, %v3367_v39  ;;  %s4647_s20 = scalar_lea.vmem %s4782_s16, %s3003_s25 }
  0x1e   : > { %v718_v43 = vadd.f32 %v3454_v36, %v600_v38  ;;  %v719_v44 = vadd.f32 %v3457_v37, %v601_v41  ;;  %v839_v47 = vpack.c.bf16 %v3457_v37, %v3454_v36  ;;  %v3484_v58 = vsel %vm664_vm2, %v670_v32, %v672_v55 }
  0x1f   : > { %v3489_v59 = vsel %vm664_vm2, %v672_v55, %v674_v30  ;;  %v720_v1 = vadd.f32 %v3484_v58, %v602_v62  ;;  %v845_v32 = vpack.c.bf16 %v3406_v61, %v3402_v60 }
  0x20   : > { %v734_v51 = vpack.c.bf16 %v719_v44, %v718_v43  ;;  %v721_v2 = vadd.f32 %v3489_v59, %v603_v63  ;;  %v840_v24 = vpack.c.bf16 %v3489_v59, %v3484_v58 }
  0x22   : > { %v735_v4 = vpack.c.bf16 %v721_v2, %v720_v1 }
  0x28   : > { %2877 = vmatmul.msk.bf16.gmra.mxu2 %vm757_vm3, %v739_v46 }
  0x2a   : > { %2875 = vmatmul.msk.bf16.gmra.mxu1 %vm757_vm3, %v737_v57 }
  0x38   : > { %2878 = vmatmul.msk.bf16.gmra.mxu2 %vm757_vm3, %v740_v0 }
  0x48   : > { %2879 = vmatmul.msk.bf16.gmra.mxu2 %vm757_vm3, %v741_v3 }
  0x90   : > { %v641_v11 = vpop.f32.mrf.mxu0 }
  0x91   : > { %v642_v12 = vadd.f32 %v641_v11, %v617_v8 }
  0x93   : > { %v646_v18 = vrot.slane %v642_v12, 7  ;;  %v841_v12 = vpack.c.bf16 %v3356_v34, %v3353_v33 }
  0x95   : > { %v714_v20 = vsel %vm713_vm4, %v581_v13, %v646_v18 }
  0x96   : > { %v3444_v22 = vsel %vm664_vm2, %v714_v20, %v665_v9 }
  0x97   : > { %v838_v23 = vpack.c.bf16 %v3433_v14, %v3444_v22  ;;  %v716_v25 = vadd.f32 %v3444_v22, %v598_v19  ;;  %v809_v53 = vpop.f32.mrf.mxu1 }
  0x98   : > { %v643_v26 = vpop.f32.mrf.mxu0  ;;  %v810_v15 = vadd.f32 %v3468_v42, %v809_v53 }
  0x99   : > { %2888 = vmatmul.msk.bf16.vlgmr.msrb.gmra.mxu2 %vm757_vm3, %v838_v23  ;;  %v733_v27 = vpack.c.bf16 %v717_v21, %v716_v25  ;;  %v842_v26 = vpack.c.bf16 %v3386_v50, %v3383_v49 }
  0x9b   : > { %2871 = vmatmul.msk.bf16.vlgmr.msrb.gmra.mxu0 %vm757_vm3, %v733_v27  ;;  %v819_v35 = vpop.f32.mrf.mxu2  ;;  %v843_v27 = vpack.c.bf16 %v3331_v17, %v3328_v16 }
  0x9c   : > { %v820_v45 = vadd.f32 %v3468_v42, %v819_v35 }
  0x9f   : > { %v811_v0 = vpop.f32.mrf.mxu1 }
  0xa0   : > { %v812_v21 = vadd.f32 %v3468_v42, %v811_v0 }
  0xa2   : > { %v3522_v23 = vpack.c.bf16 %v812_v21, %v810_v15 }
  0xa3   : > { %v821_v46 = vpop.f32.mrf.mxu2 }
  0xa4   : > { %v822_v48 = vadd.f32 %v3468_v42, %v821_v46  ;;  %966 = vrot.lane.b32.xlu2 %v3522_v23, %s3199_s0 }
  0xa6   : > { %v3476_v52 = vpack.c.bf16 %v822_v48, %v820_v45 }
  0xa7   : > { %v814_v30 = vpop.f32.mrf.mxu1 }
  0xa8   : > { %970 = vrot.lane.b32.xlu1 %v3476_v52, %s3199_s0  ;;  %v815_v7 = vadd.f32 %v3468_v42, %v814_v30 }
  0xa9   : > { %2889 = vmatmul.msk.bf16.gmra.mxu2 %vm757_vm3, %v839_v47 }
  0xab   : > { %2872 = vmatmul.msk.bf16.gmra.mxu0 %vm757_vm3, %v734_v51  ;;  %v824_v57 = vpop.f32.mrf.mxu2 }
  0xac   : > { %v825_v19 = vadd.f32 %v3468_v42, %v824_v57 }
  0xaf   : > { %v816_v6 = vpop.f32.mrf.mxu1 }
  0xb0   : > { %v817_v8 = vadd.f32 %v3468_v42, %v816_v6 }
  0xb2   : > { %v3506_v10 = vpack.c.bf16 %v817_v8, %v815_v7 }
  0xb3   : > { %v826_v3 = vpop.f32.mrf.mxu2 }
  0xb4   : > { %968 = vrot.lane.b32.xlu1 %v3506_v10, %s3199_s0  ;;  %v827_v20 = vadd.f32 %v3468_v42, %v826_v3 }
  0xb6   : > { %v3524_v25 = vpack.c.bf16 %v827_v20, %v825_v19 }
  0xb9   : > { %2890 = vmatmul.msk.bf16.gmra.mxu2 %vm757_vm3, %v840_v24 }
  0xbb   : > { %2873 = vmatmul.msk.bf16.gmra.mxu0 %vm757_vm3, %v735_v4  ;;  %v829_v5 = vpop.f32.mrf.mxu2 }
  0xbc   : > { %v830_v9 = vadd.f32 %v3468_v42, %v829_v5 }
  0xc3   : > { %v831_v11 = vpop.f32.mrf.mxu2 }
  0xc4   : > { %v832_v13 = vadd.f32 %v3468_v42, %v831_v11 }
  0xc6   : > { %v3514_v18 = vpack.c.bf16 %v832_v13, %v830_v9 }
  0xc8   : > { %974 = vrot.lane.b32.xlu0 %v3514_v18, %s3199_s0 }
  0xc9   : > { %2891 = vmatmul.msk.bf16.gmra.mxu2 %vm757_vm3, %v841_v12 }
  0xcb   : > { %v834_v28 = vpop.f32.mrf.mxu2 }
  0xcc   : > { %v835_v7 = vadd.f32 %v3468_v42, %v834_v28 }
  0xce   : > { %v3571_v9 = vpack.c.bf16 %v835_v7, %v835_v7 }
  0xd0   : > { %972 = vrot.lane.b32.xlu0 %v3524_v25, %s3199_s0 }
  0xd3   : > { %v836_v29 = vpop.f32.mrf.mxu2 }
  0xd9   : > { %2892 = vmatmul.msk.bf16.gmra.mxu2 %vm757_vm3, %v842_v26 }
  0xe9   : > { %2893 = vmatmul.msk.bf16.gmra.mxu2 %vm757_vm3, %v843_v27 }
  0xf9   : > { %2894 = vmatmul.msk.bf16.gmra.mxu2 %vm757_vm3, %v844_v31 }
 0x109   : > { %2895 = vmatmul.msk.bf16.gmra.mxu2 %vm757_vm3, %v845_v32 }
 0x118   : > { %v794_v35 = vpop.f32.mrf.mxu0 }
 0x119   : > { %v795_v43 = vadd.f32 %v3468_v42, %v794_v35  ;;  %v3581_v35 = vld [vmem:[%s4775_s9] ss:$0 sm:$0xff] }
 0x11a   : > { %v971_v8 = vpop.permute.xlu1 %970 }
 0x11b   : > { %v1021_v11 = vsel %vm757_vm3, %v971_v8, 0 }
 0x11c   : > { %v3542_v38 = vpop.f32.mrf.mxu2 }
 0x120   : > { %v796_v41 = vpop.f32.mrf.mxu0 }
 0x121   : > { %v797_v44 = vadd.f32 %v3468_v42, %v796_v41 }
 0x123   : > { %v3546_v45 = vpack.c.bf16 %v797_v44, %v795_v43 }
 0x124   : > { %v3548_v46 = vpop.f32.mrf.mxu2 }
 0x125   : > { %960 = vrot.lane.b32.xlu1 %v3546_v45, %s3199_s0 }
 0x126   : > { %v969_v13 = vpop.permute.xlu1 %968 }
 0x127   : > { %v1018_v15 = vsel %vm757_vm3, %v969_v13, 0 }
 0x128   : > { %v799_v47 = vpop.f32.mrf.mxu0 }
 0x129   : > { %v800_v53 = vadd.f32 %v3468_v42, %v799_v47 }
 0x12c   : > { %v3552_v48 = vpop.f32.mrf.mxu2 }
 0x130   : > { %v801_v51 = vpop.f32.mrf.mxu0 }
 0x131   : > { %v802_v54 = vadd.f32 %v3468_v42, %v801_v51 }
 0x133   : > { %v3556_v55 = vpack.c.bf16 %v802_v54, %v800_v53 }
 0x134   : > { %v3558_v57 = vpop.f32.mrf.mxu2 }
 0x135   : > { %962 = vrot.lane.b32.xlu0 %v3556_v55, %s3199_s0 }
 0x138   : > { %v804_v62 = vpop.f32.mrf.mxu0 }
 0x139   : > { %v805_v3 = vadd.f32 %v3468_v42, %v804_v62 }
 0x13a   : > { %v975_v63 = vpop.permute.xlu0 %974 }
 0x13b   : > { %v1027_v1 = vsel %vm757_vm3, %v975_v63, 0 }
 0x13c   : > { %v908_v0 = vpop.f32.mrf.mxu2  ;;  %1032 = vmatpush.bf16.xpose.msra.mxu3 %v1027_v1 }
 0x140   : > { %v806_v2 = vpop.f32.mrf.mxu0 }
 0x141   : > { %v807_v24 = vadd.f32 %v3468_v42, %v806_v2  ;;  %v967_v42 = vpop.permute.xlu2 %966 }
 0x142   : > { %v973_v30 = vpop.permute.xlu0 %972  ;;  %v1015_v20 = vsel %vm757_vm3, %v967_v42, 0 }
 0x143   : > { %v3565_v4 = vpack.c.bf16 %v807_v24, %v805_v3  ;;  %v1024_v6 = vsel %vm757_vm3, %v973_v30, 0 }
 0x144   : > { %v910_v5 = vpop.f32.mrf.mxu2  ;;  %1033 = vmatpush.bf16.xpose.msra.mxu3 %v1024_v6 }
 0x145   : > { %964 = vrot.lane.b32.xlu2 %v3565_v4, %s3199_s0  ;;  %v911_v13 = vadd.f32 %v3581_v35, %v910_v5 }
 0x14c   : > { %v913_v12 = vpop.f32.mrf.mxu2  ;;  %1034 = vmatpush.bf16.xpose.msra.mxu3 %v1021_v11  ;;  %v909_v11 = vadd.f32 %v3581_v35, %v908_v0 }
 0x14d   : > { %976 = vrot.lane.b32.xlu2 %v3571_v9, %s3199_s0  ;;  %v914_v7 = vadd.f32 %v3581_v35, %v913_v12  ;;  %v906_v12 = vadd.f32 %v3581_v35, %v3558_v57 }
 0x154   : > { %v915_v19 = vpop.f32.mrf.mxu2  ;;  %1035 = vmatpush.bf16.xpose.msra.mxu3 %v1018_v15 }
 0x155   : > { %v916_v8 = vadd.f32 %v3581_v35, %v915_v19  ;;  %v1485_v19 = vpack.c.bf16 %v911_v13, %v909_v11 }
 0x157   : > { %v1486_v15 = vpack.c.bf16 %v916_v8, %v914_v7 }
 0x15c   : > { %v918_v21 = vpop.f32.mrf.mxu2  ;;  %1036 = vmatpush.bf16.xpose.msra.mxu3 %v1015_v20 }
 0x15d   : > { %v919_v1 = vadd.f32 %v3581_v35, %v918_v21 }
 0x164   : > { %v920_v26 = vpop.f32.mrf.mxu2 }
 0x165   : > { %v921_v2 = vadd.f32 %v3581_v35, %v920_v26 }
 0x167   : > { %v1487_v6 = vpack.c.bf16 %v921_v2, %v919_v1 }
 0x16c   : > { %v923_v27 = vpop.f32.mrf.mxu2 }
 0x16d   : > { %v924_v54 = vadd.f32 %v3581_v35, %v923_v27  ;;  %v904_v27 = vadd.f32 %v3581_v35, %v3552_v48  ;;  %v899_v48 = vadd.f32 %v3581_v35, %v3542_v38 }
 0x16f   : > { %v1484_v5 = vpack.c.bf16 %v906_v12, %v904_v27 }
 0x174   : > { %v925_v28 = vpop.f32.mrf.mxu2 }
 0x175   : > { %v926_v62 = vadd.f32 %v3581_v35, %v925_v28  ;;  %v901_v28 = vadd.f32 %v3581_v35, %v3548_v46 }
 0x177   : > { %v1488_v3 = vpack.c.bf16 %v926_v62, %v924_v54 }
 0x17c   : > { %v928_v29 = vpop.f32.mrf.mxu2 }
 0x17d   : > { %v929_v44 = vadd.f32 %v3581_v35, %v928_v29 }
 0x184   : > { %v930_v31 = vpop.f32.mrf.mxu2 }
 0x185   : > { %v931_v47 = vadd.f32 %v3581_v35, %v930_v31  ;;  %v1483_v31 = vpack.c.bf16 %v901_v28, %v899_v48 }
 0x187   : > { %v1489_v63 = vpack.c.bf16 %v931_v47, %v929_v44 }
 0x18c   : > { %v933_v32 = vpop.f32.mrf.mxu2 }
 0x18d   : > { %v934_v41 = vadd.f32 %v3581_v35, %v933_v32 }
 0x194   : > { %v935_v43 = vpop.f32.mrf.mxu2 }
 0x195   : > { %v936_v51 = vadd.f32 %v3581_v35, %v935_v43 }
 0x197   : > { %v1490_v53 = vpack.c.bf16 %v936_v51, %v934_v41  ;;  %v961_v0 = vpop.permute.xlu1 %960 }
 0x198   : > { %v1006_v29 = vsel %vm757_vm3, %v961_v0, 0 }
 0x199   : > { %1522 = vmatpush.bf16.msrb.mxu1 %v1490_v53 }
 0x19d   : > { %1523 = vmatpush.bf16.msrb.mxu1 %v1489_v63 }
 0x19f   : > { %v965_v24 = vpop.permute.xlu2 %964 }
 0x1a0   : > { %v1012_v30 = vsel %vm757_vm3, %v965_v24, 0 }
 0x1a1   : > { %1037 = vmatpush.bf16.xpose.msra.mxu3 %v1012_v30  ;;  %1524 = vmatpush.bf16.msrb.mxu1 %v1488_v3 }
 0x1a5   : > { %1525 = vmatpush.bf16.msrb.mxu1 %v1487_v6 }
 0x1a7   : > { %v977_v42 = vpop.permute.xlu2 %976  ;;  %v963_v20 = vpop.permute.xlu0 %962 }
 0x1a8   : > { %v1030_v21 = vsel %vm757_vm3, %v977_v42, 0  ;;  %v1009_v26 = vsel %vm757_vm3, %v963_v20, 0 }
 0x1a9   : > { %1038 = vmatpush.bf16.xpose.msra.mxu3 %v1009_v26  ;;  %1092 = vmatpush.bf16.xpose.msra.mxu0 %v1030_v21 }
 0x1aa   : > { %1526 = vmatpush.bf16.msrb.mxu1 %v1486_v15 }
 0x1ae   : > { %1527 = vmatpush.bf16.msrb.mxu1 %v1485_v19 }
 0x1b0   : > { %2906 = vmatmul.msk.bf16.vlgmr.msra.gmra.mxu0 %vm757_vm3, %v3546_v45 }
 0x1b1   : > { %1039 = vmatpush.bf16.xpose.msra.mxu3 %v1006_v29 }
 0x1b2   : > { %1528 = vmatpush.bf16.msrb.mxu1 %v1484_v5 }
 0x1b6   : > { %1529 = vmatpush.bf16.msrb.mxu1 %v1483_v31 }
 0x1b8   : > { %2897 = vmatmul.msk.bf16.vlgmr.msra.gmra.mxu3 %vm757_vm3, %v3546_v45 }
 0x1c0   : > { %2907 = vmatmul.msk.bf16.gmra.mxu0 %vm757_vm3, %v3556_v55 }
 0x1c8   : > { %2898 = vmatmul.msk.bf16.gmra.mxu3 %vm757_vm3, %v3556_v55 }
 0x1d0   : > { %2908 = vmatmul.msk.bf16.gmra.mxu0 %vm757_vm3, %v3565_v4 }
 0x1d8   : > { %2899 = vmatmul.msk.bf16.gmra.mxu3 %vm757_vm3, %v3565_v4 }
 0x1e0   : > { %2909 = vmatmul.msk.bf16.gmra.mxu0 %vm757_vm3, %v3522_v23 }
 0x1e8   : > { %2900 = vmatmul.msk.bf16.gmra.mxu3 %vm757_vm3, %v3522_v23  ;;  %v846_v23 = vpack.c.bf16 %v3393_v56, %v3393_v56 }
 0x1ea   : > { %2896 = vmatmul.msk.bf16.gmra.mxu2 %vm757_vm3, %v846_v23 }
 0x1f0   : > { %2910 = vmatmul.msk.bf16.gmra.mxu0 %vm757_vm3, %v3506_v10 }
 0x1f8   : > { %2901 = vmatmul.msk.bf16.gmra.mxu3 %vm757_vm3, %v3506_v10 }
 0x200   : > { %2911 = vmatmul.msk.bf16.gmra.mxu0 %vm757_vm3, %v3476_v52 }
 0x208   : > { %2902 = vmatmul.msk.bf16.gmra.mxu3 %vm757_vm3, %v3476_v52 }
 0x210   : > { %2912 = vmatmul.msk.bf16.gmra.mxu0 %vm757_vm3, %v3524_v25 }
 0x218   : > { %2903 = vmatmul.msk.bf16.gmra.mxu3 %vm757_vm3, %v3524_v25 }
 0x220   : > { %2913 = vmatmul.msk.bf16.gmra.mxu0 %vm757_vm3, %v3514_v18 }
 0x228   : > { %2904 = vmatmul.msk.bf16.gmra.mxu3 %vm757_vm3, %v3514_v18 }
 0x22d   : > { %v1094_v10 = vpop.f32.mrf.mxu0 }
 0x22e   : > { %v3646_v25 = vmul.f32 0.17677669, %v1094_v10 }
 0x230   : > { %2914 = vmatmul.msk.bf16.gmra.mxu0 %vm757_vm3, %v3571_v9  ;;  %v1173_v55 = vsel %vm1172_vm5, %v3646_v25, -inf }
 0x235   : > { %v1096_v52 = vpop.f32.mrf.mxu0 }
 0x236   : > { %v3653_v57 = vmul.f32 0.17677669, %v1096_v52 }
 0x238   : > { %2905 = vmatmul.msk.bf16.gmra.mxu3 %vm757_vm3, %v3571_v9  ;;  %v1177_v9 = vsel %vm1172_vm5, %v3653_v57, -inf }
 0x23b   : > { %v1041_v38 = vpop.f32.mrf.mxu3 }
 0x23c   : > { %v3648_v45 = vmul.f32 0.17677669, %v1041_v38 }
 0x23d   : > { %v1099_v46 = vpop.f32.mrf.mxu0 }
 0x23e   : > { %v1174_v18 = vmax.f32 %v3648_v45, %v1173_v55  ;;  %v3660_v44 = vmul.f32 0.17677669, %v1099_v46 }
 0x240   : > { %1175 = vmax.xlane.f32.xlu0 %v1174_v18  ;;  %v1181_v54 = vsel %vm1172_vm5, %v3660_v44, -inf }
 0x243   : > { %v1043_v4 = vpop.f32.mrf.mxu3 }
 0x244   : > { %v3655_v32 = vmul.f32 0.17677669, %v1043_v4 }
 0x245   : > { %v1101_v41 = vpop.f32.mrf.mxu0 }
 0x246   : > { %v1178_v43 = vmax.f32 %v3655_v32, %v1177_v9  ;;  %v3667_v63 = vmul.f32 0.17677669, %v1101_v41 }
 0x248   : > { %1179 = vmax.xlane.f32.xlu1 %v1178_v43  ;;  %v1185_v24 = vsel %vm1172_vm5, %v3667_v63, -inf }
 0x24b   : > { %v1046_v47 = vpop.f32.mrf.mxu3 }
 0x24c   : > { %v3662_v51 = vmul.f32 0.17677669, %v1046_v47 }
 0x24d   : > { %v1104_v53 = vpop.f32.mrf.mxu0 }
 0x24e   : > { %v1182_v62 = vmax.f32 %v3662_v51, %v1181_v54  ;;  %v3674_v6 = vmul.f32 0.17677669, %v1104_v53 }
 0x250   : > { %1183 = vmax.xlane.f32.xlu2 %v1182_v62  ;;  %v1189_v13 = vsel %vm1172_vm5, %v3674_v6, -inf }
 0x253   : > { %v1048_v1 = vpop.f32.mrf.mxu3 }
 0x254   : > { %v3669_v2 = vmul.f32 0.17677669, %v1048_v1 }
 0x255   : > { %v1106_v3 = vpop.f32.mrf.mxu0 }
 0x256   : > { %v1186_v30 = vmax.f32 %v3669_v2, %v1185_v24  ;;  %v3681_v42 = vmul.f32 0.17677669, %v1106_v3 }
 0x258   : > { %1187 = vmax.xlane.f32.xlu2 %v1186_v30  ;;  %v1193_v27 = vsel %vm1172_vm5, %v3681_v42, -inf }
 0x25b   : > { %v1051_v7 = vpop.f32.mrf.mxu3 }
 0x25c   : > { %v3676_v8 = vmul.f32 0.17677669, %v1051_v7 }
 0x25d   : > { %v1109_v11 = vpop.f32.mrf.mxu0 }
 0x25e   : > { %v1190_v15 = vmax.f32 %v3676_v8, %v1189_v13  ;;  %v3688_v19 = vmul.f32 0.17677669, %v1109_v11 }
 0x260   : > { %1191 = vmax.xlane.f32.xlu0 %v1190_v15  ;;  %v1197_v29 = vsel %vm1172_vm5, %v3688_v19, -inf }
 0x263   : > { %v1053_v20 = vpop.f32.mrf.mxu3 }
 0x264   : > { %v3683_v21 = vmul.f32 0.17677669, %v1053_v20 }
 0x265   : > { %v1111_v26 = vpop.f32.mrf.mxu0 }
 0x266   : > { %v1194_v12 = vmax.f32 %v3683_v21, %v1193_v27  ;;  %v3695_v31 = vmul.f32 0.17677669, %v1111_v26 }
 0x268   : > { %1195 = vmax.xlane.f32.xlu1 %v1194_v12  ;;  %v1201_v38 = vsel %vm1172_vm5, %v3695_v31, -inf }
 0x26b   : > { %v1056_v0 = vpop.f32.mrf.mxu3 }
 0x26c   : > { %v3690_v5 = vmul.f32 0.17677669, %v1056_v0 }
 0x26d   : > { %v1114_v28 = vpop.f32.mrf.mxu0  ;;  %v938_v13 = vpop.f32.mrf.mxu2 }
 0x26e   : > { %v1198_v48 = vmax.f32 %v3690_v5, %v1197_v29  ;;  %v3702_v55 = vmul.f32 0.17677669, %v1114_v28  ;;  %v939_v15 = vadd.f32 %v3581_v35, %v938_v13 }
 0x270   : > { %1199 = vmax.xlane.f32.xlu2 %v1198_v48  ;;  %v1205_v9 = vsel %vm1172_vm5, %v3702_v55, -inf  ;;  %v1491_v26 = vpack.c.bf16 %v939_v15, %v939_v15 }
 0x272   : > { %v1520_v12 = vsel %vm713_vm4, %v1491_v26, 0 }
 0x273   : > { %v1058_v23 = vpop.f32.mrf.mxu3  ;;  %1582 = vmatpush.bf16.msra.mxu2 %v1520_v12 }
 0x274   : > { %v3697_v10 = vmul.f32 0.17677669, %v1058_v23 }
 0x275   : > { %v1116_v52 = vpop.f32.mrf.mxu0  ;;  %v940_v0 = vpop.f32.mrf.mxu2 }
 0x276   : > { %v1202_v46 = vmax.f32 %v3697_v10, %v1201_v38 }
 0x278   : > { %1203 = vmax.xlane.f32.xlu0 %v1202_v46 }
 0x27b   : > { %v1061_v18 = vpop.f32.mrf.mxu3 }
 0x27c   : > { %v3704_v4 = vmul.f32 0.17677669, %v1061_v18 }
 0x27d   : > { %v1119_v41 = vpop.f32.mrf.mxu0 }
 0x27e   : > { %v1206_v43 = vmax.f32 %v3704_v4, %v1205_v9 }
 0x280   : > { %1207 = vmax.xlane.f32.xlu0 %v1206_v43 }
 0x283   : > { %v1063_v47 = vpop.f32.mrf.mxu3 }
 0x285   : > { %v3709_v53 = vpop.f32.mrf.mxu0 }
 0x28b   : > { %v1066_v54 = vpop.f32.mrf.mxu3 }
 0x28d   : > { %v3711_v62 = vpop.f32.mrf.mxu0 }
 0x293   : > { %v3713_v1 = vpop.f32.mrf.mxu3 }
 0x295   : > { %v3715_v3 = vpop.f32.mrf.mxu0 }
 0x29b   : > { %v3717_v24 = vpop.f32.mrf.mxu3 }
 0x29d   : > { %v3719_v30 = vpop.f32.mrf.mxu0 }
 0x2a3   : > { %v3721_v7 = vpop.f32.mrf.mxu3 }
 0x2a5   : > { %v3723_v11 = vpop.f32.mrf.mxu0 }
 0x2ab   : > { %v3726_v20 = vpop.f32.mrf.mxu3 }
 0x2ad   : > { %v3728_v27 = vpop.f32.mrf.mxu0 }
 0x2b3   : > { %v3731_v28 = vpop.f32.mrf.mxu3  ;;  %v1176_v29 = vpop.xlane.xlu0 %1175 }
 0x2b4   : > { %v1243_v48 = vsub.f32 %v3648_v45, %v1176_v29  ;;  %v1244_v23 = vsub.f32 %v3646_v25, %v1176_v29 }
 0x2b5   : > { %v1136_v38 = vpop.f32.mrf.mxu0 }
 0x2b6   : > { %v1277_v46 = vmul.f32 1.442695, %v1243_v48  ;;  %v1279_v18 = vmul.f32 1.442695, %v1244_v23  ;;  %v3746_v23 = vmul.f32 0.17677669, %v1116_v52 }
 0x2b7   : > { %v3750_v38 = vmul.f32 0.17677669, %v1063_v47 }
 0x2b8   : > { %3019 = vpow2.f32 %v1277_v46  ;;  %v1209_v52 = vsel %vm1172_vm5, %v3746_v23, -inf }
 0x2b9   : > { %3021 = vpow2.f32 %v1279_v18 }
 0x2bb   : > { %v3735_v35 = vpop.f32.mrf.mxu3  ;;  %v1180_v9 = vpop.xlane.xlu1 %1179 }
 0x2bc   : > { %v1245_v43 = vsub.f32 %v3655_v32, %v1180_v9  ;;  %v1246_v13 = vsub.f32 %v3653_v57, %v1180_v9 }
 0x2be   : > { %v3739_v15 = vpop.eup %3019  ;;  %v1281_v26 = vmul.f32 1.442695, %v1245_v43  ;;  %v1283_v12 = vmul.f32 1.442695, %v1246_v13 }
 0x2bf   : > { %v3741_v0 = vpop.eup %3021 }
 0x2c0   : > { %3023 = vpow2.f32 %v1281_v26  ;;  %v1345_v25 = vsel %vm1172_vm5, %v3741_v0, 0.0  ;;  %v3762_v26 = vmul.f32 0.17677669, %v1119_v41 }
 0x2c1   : > { %3025 = vpow2.f32 %v1283_v12  ;;  %v1346_v45 = vadd.f32 %v3739_v15, %v1345_v25 }
 0x2c2   : > { %v1213_v41 = vsel %vm1172_vm5, %v3762_v26, -inf }
 0x2c3   : > { %1347 = vadd.xlane.f32.xlu1 %v1346_v45  ;;  %v1083_v29 = vpop.f32.mrf.mxu3  ;;  %v1184_v48 = vpop.xlane.xlu2 %1183  ;;  %v3766_v45 = vmul.f32 0.17677669, %v1066_v54 }
 0x2c4   : > { %v1247_v57 = vsub.f32 %v3662_v51, %v1184_v48  ;;  %v1248_v32 = vsub.f32 %v3660_v44, %v1184_v48  ;;  %v1210_v44 = vmax.f32 %v3750_v38, %v1209_v52 }
 0x2c6   : > { %v3752_v46 = vpop.eup %3023  ;;  %v1285_v18 = vmul.f32 1.442695, %v1247_v57  ;;  %v1287_v9 = vmul.f32 1.442695, %v1248_v32 }
 0x2c7   : > { %v3754_v43 = vpop.eup %3025 }
 0x2c8   : > { %3027 = vpow2.f32 %v1285_v18  ;;  %v1349_v13 = vsel %vm1172_vm5, %v3754_v43, 0.0 }
 0x2c9   : > { %3029 = vpow2.f32 %v1287_v9  ;;  %v1350_v51 = vadd.f32 %v3752_v46, %v1349_v13  ;;  %v3779_v9 = vmul.f32 0.17677669, %v3709_v53 }
 0x2cb   : > { %1351 = vadd.xlane.f32.xlu2 %v1350_v51  ;;  %1211 = vmax.xlane.f32.xlu1 %v1210_v44  ;;  %v1188_v47 = vpop.xlane.xlu2 %1187  ;;  %v3784_v51 = vmul.f32 0.17677669, %v3713_v1  ;;  %v1217_v53 = vsel %vm1172_vm5, %v3779_v9, -inf }
 0x2cc   : > { %v1249_v12 = vsub.f32 %v3669_v2, %v1188_v47  ;;  %v1250_v25 = vsub.f32 %v3667_v63, %v1188_v47  ;;  %v1214_v63 = vmax.f32 %v3766_v45, %v1213_v41 }
 0x2ce   : > { %v3768_v29 = vpop.eup %3027  ;;  %v1289_v48 = vmul.f32 1.442695, %v1249_v12  ;;  %v1291_v57 = vmul.f32 1.442695, %v1250_v25 }
 0x2cf   : > { %v3770_v32 = vpop.eup %3029 }
 0x2d0   : > { %3031 = vpow2.f32 %v1289_v48  ;;  %v1353_v18 = vsel %vm1172_vm5, %v3770_v32, 0.0 }
 0x2d1   : > { %3033 = vpow2.f32 %v1291_v57  ;;  %v1354_v2 = vadd.f32 %v3768_v29, %v1353_v18  ;;  %v3797_v57 = vmul.f32 0.17677669, %v3711_v62 }
 0x2d3   : > { %1355 = vadd.xlane.f32.xlu2 %v1354_v2  ;;  %1215 = vmax.xlane.f32.xlu1 %v1214_v63  ;;  %v1192_v54 = vpop.xlane.xlu0 %1191  ;;  %v3802_v2 = vmul.f32 0.17677669, %v3717_v24  ;;  %v1221_v62 = vsel %vm1172_vm5, %v3797_v57, -inf }
 0x2d4   : > { %v1251_v13 = vsub.f32 %v3676_v8, %v1192_v54  ;;  %v1252_v52 = vsub.f32 %v3674_v6, %v1192_v54  ;;  %v1218_v6 = vmax.f32 %v3784_v51, %v1217_v53 }
 0x2d6   : > { %v3786_v44 = vpop.eup %3031  ;;  %v1293_v47 = vmul.f32 1.442695, %v1251_v13  ;;  %v1295_v12 = vmul.f32 1.442695, %v1252_v52 }
 0x2d7   : > { %v3788_v25 = vpop.eup %3033 }
 0x2d8   : > { %3035 = vpow2.f32 %v1293_v47  ;;  %v1357_v48 = vsel %vm1172_vm5, %v3788_v25, 0.0 }
 0x2d9   : > { %3037 = vpow2.f32 %v1295_v12  ;;  %v1358_v8 = vadd.f32 %v3786_v44, %v1357_v48  ;;  %v3815_v12 = vmul.f32 0.17677669, %v3715_v3 }
 0x2db   : > { %1359 = vadd.xlane.f32.xlu0 %v1358_v8  ;;  %1219 = vmax.xlane.f32.xlu2 %v1218_v6  ;;  %v1196_v1 = vpop.xlane.xlu1 %1195  ;;  %v3820_v8 = vmul.f32 0.17677669, %v3721_v7  ;;  %v1225_v3 = vsel %vm1172_vm5, %v3815_v12, -inf }
 0x2dc   : > { %v1253_v18 = vsub.f32 %v3683_v21, %v1196_v1  ;;  %v1254_v41 = vsub.f32 %v3681_v42, %v1196_v1  ;;  %v1222_v42 = vmax.f32 %v3802_v2, %v1221_v62 }
 0x2de   : > { %v3804_v63 = vpop.eup %3035  ;;  %v1297_v54 = vmul.f32 1.442695, %v1253_v18  ;;  %v1299_v13 = vmul.f32 1.442695, %v1254_v41 }
 0x2df   : > { %v3806_v52 = vpop.eup %3037 }
 0x2e0   : > { %3039 = vpow2.f32 %v1297_v54  ;;  %v1361_v47 = vsel %vm1172_vm5, %v3806_v52, 0.0 }
 0x2e1   : > { %3041 = vpow2.f32 %v1299_v13  ;;  %v1362_v21 = vadd.f32 %v3804_v63, %v1361_v47  ;;  %v3833_v13 = vmul.f32 0.17677669, %v3719_v30 }
 0x2e3   : > { %1363 = vadd.xlane.f32.xlu0 %v1362_v21  ;;  %1223 = vmax.xlane.f32.xlu2 %v1222_v42  ;;  %v1200_v24 = vpop.xlane.xlu2 %1199  ;;  %v3838_v21 = vmul.f32 0.17677669, %v3726_v20  ;;  %v1229_v30 = vsel %vm1172_vm5, %v3833_v13, -inf }
 0x2e4   : > { %v1255_v48 = vsub.f32 %v3690_v5, %v1200_v24  ;;  %v1256_v53 = vsub.f32 %v3688_v19, %v1200_v24  ;;  %v1226_v19 = vmax.f32 %v3820_v8, %v1225_v3 }
 0x2e6   : > { %v3822_v6 = vpop.eup %3039  ;;  %v1301_v1 = vmul.f32 1.442695, %v1255_v48  ;;  %v1303_v18 = vmul.f32 1.442695, %v1256_v53 }
 0x2e7   : > { %v3824_v41 = vpop.eup %3041 }
 0x2e8   : > { %3043 = vpow2.f32 %v1301_v1  ;;  %v1365_v54 = vsel %vm1172_vm5, %v3824_v41, 0.0 }
 0x2e9   : > { %3045 = vpow2.f32 %v1303_v18  ;;  %v1366_v5 = vadd.f32 %v3822_v6, %v1365_v54  ;;  %v3851_v18 = vmul.f32 0.17677669, %v3723_v11 }
 0x2eb   : > { %1367 = vadd.xlane.f32.xlu1 %v1366_v5  ;;  %1227 = vmax.xlane.f32.xlu0 %v1226_v19  ;;  %v1204_v7 = vpop.xlane.xlu0 %1203  ;;  %v3856_v5 = vmul.f32 0.17677669, %v3731_v28  ;;  %v1233_v11 = vsel %vm1172_vm5, %v3851_v18, -inf }
 0x2ec   : > { %v1257_v47 = vsub.f32 %v3697_v10, %v1204_v7  ;;  %v1258_v62 = vsub.f32 %v3695_v31, %v1204_v7  ;;  %v1230_v31 = vmax.f32 %v3838_v21, %v1229_v30 }
 0x2ee   : > { %v3840_v42 = vpop.eup %3043  ;;  %v1305_v24 = vmul.f32 1.442695, %v1257_v47  ;;  %v1307_v48 = vmul.f32 1.442695, %v1258_v62 }
 0x2ef   : > { %v3842_v53 = vpop.eup %3045 }
 0x2f0   : > { %3047 = vpow2.f32 %v1305_v24  ;;  %v1369_v1 = vsel %vm1172_vm5, %v3842_v53, 0.0 }
 0x2f1   : > { %3049 = vpow2.f32 %v1307_v48  ;;  %v1370_v10 = vadd.f32 %v3840_v42, %v1369_v1 }
 0x2f3   : > { %1371 = vadd.xlane.f32.xlu1 %v1370_v10  ;;  %1231 = vmax.xlane.f32.xlu0 %v1230_v31  ;;  %v1208_v20 = vpop.xlane.xlu0 %1207 }
 0x2f4   : > { %v1259_v54 = vsub.f32 %v3704_v4, %v1208_v20  ;;  %v1260_v3 = vsub.f32 %v3702_v55, %v1208_v20  ;;  %v1234_v55 = vmax.f32 %v3856_v5, %v1233_v11 }
 0x2f6   : > { %v3858_v19 = vpop.eup %3047  ;;  %v1309_v7 = vmul.f32 1.442695, %v1259_v54  ;;  %v1311_v47 = vmul.f32 1.442695, %v1260_v3 }
 0x2f7   : > { %v3860_v62 = vpop.eup %3049 }
 0x2f8   : > { %3051 = vpow2.f32 %v1309_v7  ;;  %v1373_v24 = vsel %vm1172_vm5, %v3860_v62, 0.0 }
 0x2f9   : > { %3053 = vpow2.f32 %v1311_v47  ;;  %v1374_v4 = vadd.f32 %v3858_v19, %v1373_v24 }
 0x2fb   : > { %1375 = vadd.xlane.f32.xlu2 %v1374_v4  ;;  %1235 = vmax.xlane.f32.xlu1 %v1234_v55 }
 0x2fe   : > { %v3868_v28 = vpop.eup %3051 }
 0x2ff   : > { %v3870_v48 = vpop.eup %3053 }
 0x300   : > { %v1377_v1 = vsel %vm1172_vm5, %v3870_v48, 0.0 }
 0x301   : > { %v1378_v30 = vadd.f32 %v3868_v28, %v1377_v1 }
 0x303   : > { %1379 = vadd.xlane.f32.xlu2 %v1378_v30 }
 0x336   : > { %v1348_v10 = vpop.xlane.xlu1 %1347 }
 0x337   : > { %3055 = vrcp.f32 %v1348_v10 }
 0x33d   : > { %v3056_v24 = vpop.eup %3055 }
 0x33e   : > { %v1352_v31 = vpop.xlane.xlu2 %1351  ;;  %v1212_v20 = vpop.xlane.xlu1 %1211  ;;  %v1432_v4 = vmul.f32 %v3056_v24, %v3741_v0  ;;  %v1431_v10 = vmul.f32 %v3056_v24, %v3739_v15 }
 0x33f   : > { %3057 = vrcp.f32 %v1352_v31  ;;  %v1261_v54 = vsub.f32 %v3750_v38, %v1212_v20  ;;  %v1262_v3 = vsub.f32 %v3746_v23, %v1212_v20  ;;  %v2991_v23 = vld [vmem:[%s4776_s10 + $0x8] sm:$0xff] }
 0x340   : > { %1685 = vmatpush.bf16.msrb.mxu0 %v2991_v23 }
 0x341   : > { %v1313_v7 = vmul.f32 1.442695, %v1261_v54  ;;  %v1315_v47 = vmul.f32 1.442695, %v1262_v3 }
 0x343   : > { %3059 = vpow2.f32 %v1313_v7 }
 0x344   : > { %3061 = vpow2.f32 %v1315_v47 }
 0x345   : > { %v3058_v11 = vpop.eup %3057 }
 0x346   : > { %v1434_v55 = vmul.f32 %v3058_v11, %v3754_v43  ;;  %v1356_v1 = vpop.xlane.xlu2 %1355  ;;  %v1216_v30 = vpop.xlane.xlu1 %1215  ;;  %v1433_v31 = vmul.f32 %v3058_v11, %v3752_v46 }
 0x347   : > { %v1263_v38 = vsub.f32 %v3766_v45, %v1216_v30  ;;  %v1264_v20 = vsub.f32 %v3762_v26, %v1216_v30 }
 0x348   : > { %v1466_v54 = vpack.c.bf16 %v1434_v55, %v1432_v4  ;;  %v1465_v3 = vpack.c.bf16 %v1433_v31, %v1431_v10 }
 0x349   : > { %v3886_v0 = vpop.eup %3059  ;;  %v1317_v43 = vmul.f32 1.442695, %v1263_v38  ;;  %v1319_v7 = vmul.f32 1.442695, %v1264_v20 }
 0x34a   : > { %v3888_v47 = vpop.eup %3061  ;;  %1530 = vmatmul.bf16.vlgmr.msrb.gmra.mxu1 %v1465_v3  ;;  %2915 = vmatmul.msk.bf16.vlgmr.msra.gmra.mxu2 %vm1172_vm5, %v1466_v54 }
 0x34b   : > { %3063 = vpow2.f32 %v1317_v43  ;;  %v1381_v15 = vsel %vm1172_vm5, %v3888_v47, 0.0 }
 0x34c   : > { %3065 = vpow2.f32 %v1319_v7  ;;  %v1382_v46 = vadd.f32 %v3886_v0, %v1381_v15 }
 0x34d   : > { %3067 = vrcp.f32 %v1356_v1 }
 0x34e   : > { %1383 = vadd.xlane.f32.xlu0 %v1382_v46  ;;  %v1360_v26 = vpop.xlane.xlu0 %1359  ;;  %v1220_v45 = vpop.xlane.xlu2 %1219 }
 0x34f   : > { %3069 = vrcp.f32 %v1360_v26  ;;  %v1265_v24 = vsub.f32 %v3784_v51, %v1220_v45  ;;  %v1266_v11 = vsub.f32 %v3779_v9, %v1220_v45 }
 0x351   : > { %v3896_v4 = vpop.eup %3063  ;;  %v1321_v55 = vmul.f32 1.442695, %v1265_v24  ;;  %v1323_v30 = vmul.f32 1.442695, %v1266_v11 }
 0x352   : > { %v3898_v10 = vpop.eup %3065 }
 0x353   : > { %v3068_v31 = vpop.eup %3067  ;;  %3071 = vpow2.f32 %v1321_v55  ;;  %v1385_v23 = vsel %vm1172_vm5, %v3898_v10, 0.0  ;;  %v2990_v55 = vld [vmem:[%s4776_s10] sm:$0xff] }
 0x354   : > { %3073 = vpow2.f32 %v1323_v30  ;;  %v1386_v1 = vadd.f32 %v3896_v4, %v1385_v23  ;;  %v1436_v20 = vmul.f32 %v3068_v31, %v3770_v32  ;;  %v1435_v3 = vmul.f32 %v3068_v31, %v3768_v29  ;;  %1686 = vmatpush.bf16.msrb.mxu0 %v2990_v55 }
 0x355   : > { %v3070_v38 = vpop.eup %3069  ;;  %v3924_v30 = vmul.f32 0.17677669, %v3728_v27 }
 0x356   : > { %v1438_v51 = vmul.f32 %v3070_v38, %v3788_v25  ;;  %1387 = vadd.xlane.f32.xlu1 %v1386_v1  ;;  %v1364_v9 = vpop.xlane.xlu0 %1363  ;;  %v1224_v54 = vpop.xlane.xlu2 %1223  ;;  %v1437_v43 = vmul.f32 %v3070_v38, %v3786_v44  ;;  %v3918_v25 = vmul.f32 0.17677669, %v3735_v35 }
 0x357   : > { %v1267_v7 = vsub.f32 %v3802_v2, %v1224_v54  ;;  %v1268_v15 = vsub.f32 %v3797_v57, %v1224_v54  ;;  %3075 = vrcp.f32 %v1364_v9 }
 0x358   : > { %v1467_v46 = vpack.c.bf16 %v1437_v43, %v1435_v3  ;;  %v1468_v26 = vpack.c.bf16 %v1438_v51, %v1436_v20  ;;  %v1237_v51 = vsel %vm664_vm2, %v3918_v25, -inf }
 0x359   : > { %v3909_v45 = vpop.eup %3071  ;;  %v1325_v24 = vmul.f32 1.442695, %v1267_v7  ;;  %v1327_v11 = vmul.f32 1.442695, %v1268_v15 }
 0x35a   : > { %v3911_v32 = vpop.eup %3073  ;;  %1535 = vmatmul.bf16.gmra.mxu1 %v1467_v46  ;;  %2916 = vmatmul.msk.bf16.gmra.mxu2 %vm1172_vm5, %v1468_v26 }
 0x35b   : > { %3077 = vpow2.f32 %v1325_v24  ;;  %v1389_v29 = vsel %vm1172_vm5, %v3911_v32, 0.0 }
 0x35c   : > { %3079 = vpow2.f32 %v1327_v11  ;;  %v1390_v44 = vadd.f32 %v3909_v45, %v1389_v29 }
 0x35d   : > { %v3076_v1 = vpop.eup %3075 }
 0x35e   : > { %1391 = vadd.xlane.f32.xlu2 %v1390_v44  ;;  %v1368_v57 = vpop.xlane.xlu1 %1367  ;;  %v1228_v2 = vpop.xlane.xlu0 %1227  ;;  %v1440_v43 = vmul.f32 %v3076_v1, %v3806_v52  ;;  %v1439_v26 = vmul.f32 %v3076_v1, %v3804_v63 }
 0x35f   : > { %3081 = vrcp.f32 %v1368_v57  ;;  %v1269_v31 = vsub.f32 %v3820_v8, %v1228_v2  ;;  %v1270_v23 = vsub.f32 %v3815_v12, %v1228_v2  ;;  %v1239_v8 = vsel %vm1238_vm6, %v3924_v30, -inf }
 0x360   : > { %v1240_v54 = vmax.f32 %v1237_v51, %v1239_v8 }
 0x361   : > { %v3928_v35 = vpop.eup %3077  ;;  %v1329_v38 = vmul.f32 1.442695, %v1269_v31  ;;  %v1331_v20 = vmul.f32 1.442695, %v1270_v23 }
 0x362   : > { %v3932_v9 = vpop.eup %3079 }
 0x363   : > { %3083 = vpow2.f32 %v1329_v38  ;;  %v1393_v27 = vsel %vm1172_vm5, %v3932_v9, 0.0 }
 0x364   : > { %3085 = vpow2.f32 %v1331_v20  ;;  %v1394_v12 = vadd.f32 %v3928_v35, %v1393_v27 }
 0x365   : > { %v3082_v3 = vpop.eup %3081 }
 0x366   : > { %v1442_v7 = vmul.f32 %v3082_v3, %v3824_v41  ;;  %1395 = vadd.xlane.f32.xlu0 %v1394_v12  ;;  %1241 = vmax.xlane.f32.xlu2 %v1240_v54  ;;  %v1372_v15 = vpop.xlane.xlu1 %1371  ;;  %v1232_v46 = vpop.xlane.xlu0 %1231  ;;  %v1441_v24 = vmul.f32 %v3082_v3, %v3822_v6 }
 0x367   : > { %v1271_v11 = vsub.f32 %v3838_v21, %v1232_v46  ;;  %v1272_v29 = vsub.f32 %v3833_v13, %v1232_v46 }
 0x368   : > { %v1469_v44 = vpack.c.bf16 %v1441_v24, %v1439_v26  ;;  %v1470_v57 = vpack.c.bf16 %v1442_v7, %v1440_v43 }
 0x369   : > { %v3945_v2 = vpop.eup %3083  ;;  %v1333_v55 = vmul.f32 1.442695, %v1271_v11  ;;  %v1335_v52 = vmul.f32 1.442695, %v1272_v29 }
 0x36a   : > { %v3947_v31 = vpop.eup %3085  ;;  %1540 = vmatmul.bf16.gmra.mxu1 %v1469_v44  ;;  %2917 = vmatmul.msk.bf16.gmra.mxu2 %vm1172_vm5, %v1470_v57 }
 0x36b   : > { %3087 = vpow2.f32 %v1333_v55  ;;  %v1397_v63 = vsel %vm1172_vm5, %v3947_v31, 0.0 }
 0x36c   : > { %3089 = vpow2.f32 %v1335_v52  ;;  %v1398_v6 = vadd.f32 %v3945_v2, %v1397_v63 }
 0x36d   : > { %3091 = vrcp.f32 %v1372_v15 }
 0x36e   : > { %1399 = vadd.xlane.f32.xlu1 %v1398_v6  ;;  %v1376_v41 = vpop.xlane.xlu2 %1375  ;;  %v1236_v13 = vpop.xlane.xlu1 %1235 }
 0x36f   : > { %3093 = vrcp.f32 %v1376_v41  ;;  %v1273_v21 = vsub.f32 %v3856_v5, %v1236_v13  ;;  %v1274_v23 = vsub.f32 %v3851_v18, %v1236_v13 }
 0x371   : > { %v3955_v1 = vpop.eup %3087  ;;  %v1337_v38 = vmul.f32 1.442695, %v1273_v21  ;;  %v1339_v20 = vmul.f32 1.442695, %v1274_v23 }
 0x372   : > { %v3957_v51 = vpop.eup %3089 }
 0x373   : > { %v3092_v27 = vpop.eup %3091  ;;  %3095 = vpow2.f32 %v1337_v38  ;;  %v1401_v8 = vsel %vm1172_vm5, %v3957_v51, 0.0 }
 0x374   : > { %3097 = vpow2.f32 %v1339_v20  ;;  %v1402_v12 = vadd.f32 %v3955_v1, %v1401_v8  ;;  %v1444_v3 = vmul.f32 %v3092_v27, %v3842_v53  ;;  %v1443_v18 = vmul.f32 %v3092_v27, %v3840_v42 }
 0x375   : > { %v3094_v54 = vpop.eup %3093 }
 0x376   : > { %v1446_v5 = vmul.f32 %v3094_v54, %v3860_v62  ;;  %1403 = vadd.xlane.f32.xlu0 %v1402_v12  ;;  %v1445_v43 = vmul.f32 %v3094_v54, %v3858_v19  ;;  %v1380_v62 = vpop.xlane.xlu2 %1379 }
 0x377   : > { %3099 = vrcp.f32 %v1380_v62 }
 0x378   : > { %v1471_v7 = vpack.c.bf16 %v1445_v43, %v1443_v18  ;;  %v1472_v15 = vpack.c.bf16 %v1446_v5, %v1444_v3 }
 0x379   : > { %v3966_v46 = vpop.eup %3095 }
 0x37a   : > { %v3968_v26 = vpop.eup %3097  ;;  %1545 = vmatmul.bf16.gmra.mxu1 %v1471_v7  ;;  %2918 = vmatmul.msk.bf16.gmra.mxu2 %vm1172_vm5, %v1472_v15 }
 0x37b   : > { %v1405_v24 = vsel %vm1172_vm5, %v3968_v26, 0.0 }
 0x37c   : > { %v1406_v53 = vadd.f32 %v3966_v46, %v1405_v24 }
 0x37d   : > { %v3100_v19 = vpop.eup %3099 }
 0x37e   : > { %1407 = vadd.xlane.f32.xlu1 %v1406_v53  ;;  %v1448_v44 = vmul.f32 %v3100_v19, %v3870_v48  ;;  %v1447_v55 = vmul.f32 %v3100_v19, %v3868_v28 }
 0x3c1   : > { %v1384_v42 = vpop.xlane.xlu0 %1383 }
 0x3c2   : > { %3101 = vrcp.f32 %v1384_v42 }
 0x3c7   : > { %v1531_v11 = vpop.f32.mrf.mxu1 }
 0x3c8   : > { %v3102_v29 = vpop.eup %3101 }
 0x3c9   : > { %v1450_v57 = vmul.f32 %v3102_v29, %v3888_v47  ;;  %v1449_v52 = vmul.f32 %v3102_v29, %v3886_v0  ;;  %v1388_v41 = vpop.xlane.xlu1 %1387 }
 0x3ca   : > { %3103 = vrcp.f32 %v1388_v41 }
 0x3cb   : > { %v1473_v63 = vpack.c.bf16 %v1449_v52, %v1447_v55  ;;  %v1474_v6 = vpack.c.bf16 %v1450_v57, %v1448_v44 }
 0x3cd   : > { %1550 = vmatmul.bf16.gmra.mxu1 %v1473_v63  ;;  %2919 = vmatmul.msk.bf16.gmra.mxu2 %vm1172_vm5, %v1474_v6  ;;  %v1584_v13 = vpop.f32.mrf.mxu2 }
 0x3ce   : > { %v1585_v48 = vadd.f32 %v1584_v13, %v1531_v11 }
 0x3cf   : > { %v1533_v21 = vpop.f32.mrf.mxu1 }
 0x3d0   : > { %v3104_v20 = vpop.eup %3103 }
 0x3d1   : > { %v1392_v23 = vpop.xlane.xlu2 %1391  ;;  %v1452_v0 = vmul.f32 %v3104_v20, %v3898_v10  ;;  %v1451_v3 = vmul.f32 %v3104_v20, %v3896_v4 }
 0x3d2   : > { %3105 = vrcp.f32 %v1392_v23 }
 0x3d5   : > { %v1586_v38 = vpop.f32.mrf.mxu2 }
 0x3d6   : > { %v1587_v27 = vadd.f32 %v1586_v38, %v1533_v21 }
 0x3d7   : > { %v1536_v47 = vpop.f32.mrf.mxu1 }
 0x3d8   : > { %v3106_v8 = vpop.eup %3105  ;;  %v1628_v28 = vpack.c.bf16 %v1587_v27, %v1585_v48 }
 0x3d9   : > { %v1454_v12 = vmul.f32 %v3106_v8, %v3911_v32  ;;  %v1242_v54 = vpop.xlane.xlu2 %1241  ;;  %v1453_v5 = vmul.f32 %v3106_v8, %v3909_v45  ;;  %v1396_v62 = vpop.xlane.xlu0 %1395 }
 0x3da   : > { %v1275_v18 = vsub.f32 %v3918_v25, %v1242_v54  ;;  %v1276_v43 = vsub.f32 %v3924_v30, %v1242_v54  ;;  %2932 = vmatmul.msk.bf16.vlgmr.msrb.gmra.mxu0 %vm757_vm3, %v1628_v28 }
 0x3db   : > { %v1475_v7 = vpack.c.bf16 %v1453_v5, %v1451_v3  ;;  %v1476_v15 = vpack.c.bf16 %v1454_v12, %v1452_v0 }
 0x3dc   : > { %v1341_v24 = vmul.f32 1.442695, %v1275_v18  ;;  %v1343_v53 = vmul.f32 1.442695, %v1276_v43 }
 0x3dd   : > { %1555 = vmatmul.bf16.gmra.mxu1 %v1475_v7  ;;  %2920 = vmatmul.msk.bf16.gmra.mxu2 %vm1172_vm5, %v1476_v15  ;;  %v1589_v10 = vpop.f32.mrf.mxu2 }
 0x3de   : > { %3107 = vpow2.f32 %v1341_v24  ;;  %v1590_v11 = vadd.f32 %v1589_v10, %v1536_v47 }
 0x3df   : > { %3109 = vpow2.f32 %v1343_v53  ;;  %v1538_v4 = vpop.f32.mrf.mxu1 }
 0x3e0   : > { %3111 = vrcp.f32 %v1396_v62 }
 0x3e1   : > { %v1400_v45 = vpop.xlane.xlu1 %1399 }
 0x3e2   : > { %3113 = vrcp.f32 %v1400_v45 }
 0x3e4   : > { %v3987_v32 = vpop.eup %3107 }
 0x3e5   : > { %v3989_v25 = vpop.eup %3109  ;;  %v1591_v30 = vpop.f32.mrf.mxu2  ;;  %v1409_v42 = vsel %vm664_vm2, %v3987_v32, 0.0 }
 0x3e6   : > { %v3112_v19 = vpop.eup %3111  ;;  %v1592_v29 = vadd.f32 %v1591_v30, %v1538_v4  ;;  %v1410_v44 = vsel %vm1238_vm6, %v3989_v25, 0.0 }
 0x3e7   : > { %v1541_v57 = vpop.f32.mrf.mxu1  ;;  %v1411_v55 = vadd.f32 %v1410_v44, %v1409_v42  ;;  %v1456_v6 = vmul.f32 %v3112_v19, %v3932_v9  ;;  %v1455_v13 = vmul.f32 %v3112_v19, %v3928_v35 }
 0x3e8   : > { %v3114_v52 = vpop.eup %3113  ;;  %v1629_v63 = vpack.c.bf16 %v1592_v29, %v1590_v11 }
 0x3e9   : > { %v1458_v41 = vmul.f32 %v3114_v52, %v3947_v31  ;;  %1412 = vadd.xlane.f32.xlu2 %v1411_v55  ;;  %v1457_v21 = vmul.f32 %v3114_v52, %v3945_v2  ;;  %v1404_v20 = vpop.xlane.xlu0 %1403 }
 0x3ea   : > { %2933 = vmatmul.msk.bf16.gmra.mxu0 %vm757_vm3, %v1629_v63  ;;  %3115 = vrcp.f32 %v1404_v20 }
 0x3eb   : > { %v1477_v23 = vpack.c.bf16 %v1457_v21, %v1455_v13  ;;  %v1478_v38 = vpack.c.bf16 %v1458_v41, %v1456_v6 }
 0x3ed   : > { %1560 = vmatmul.bf16.gmra.mxu1 %v1477_v23  ;;  %2921 = vmatmul.msk.bf16.gmra.mxu2 %vm1172_vm5, %v1478_v38  ;;  %v1594_v48 = vpop.f32.mrf.mxu2 }
 0x3ee   : > { %v1595_v8 = vadd.f32 %v1594_v48, %v1541_v57 }
 0x3ef   : > { %v1543_v27 = vpop.f32.mrf.mxu1 }
 0x3f0   : > { %v3116_v31 = vpop.eup %3115 }
 0x3f1   : > { %v1408_v47 = vpop.xlane.xlu1 %1407  ;;  %v1460_v2 = vmul.f32 %v3116_v31, %v3957_v51  ;;  %v1459_v54 = vmul.f32 %v3116_v31, %v3955_v1 }
 0x3f2   : > { %3117 = vrcp.f32 %v1408_v47 }
 0x3f5   : > { %v1596_v9 = vpop.f32.mrf.mxu2 }
 0x3f6   : > { %v1597_v28 = vadd.f32 %v1596_v9, %v1543_v27 }
 0x3f7   : > { %v1546_v5 = vpop.f32.mrf.mxu1 }
 0x3f8   : > { %v3118_v35 = vpop.eup %3117  ;;  %v1630_v0 = vpack.c.bf16 %v1597_v28, %v1595_v8 }
 0x3f9   : > { %v1462_v12 = vmul.f32 %v3118_v35, %v3968_v26  ;;  %v1461_v3 = vmul.f32 %v3118_v35, %v3966_v46  ;;  %v4011_v46 = vld [vmem:[%s4777_s11] ss:$0 sm:$0xff] }
 0x3fa   : > { %2934 = vmatmul.msk.bf16.gmra.mxu0 %vm757_vm3, %v1630_v0 }
 0x3fb   : > { %v1479_v18 = vpack.c.bf16 %v1461_v3, %v1459_v54  ;;  %v1480_v43 = vpack.c.bf16 %v1462_v12, %v1460_v2 }
 0x3fd   : > { %1565 = vmatmul.bf16.gmra.mxu1 %v1479_v18  ;;  %2922 = vmatmul.msk.bf16.gmra.mxu2 %vm1172_vm5, %v1480_v43  ;;  %v1599_v7 = vpop.f32.mrf.mxu2 }
 0x3fe   : > { %v1600_v53 = vadd.f32 %v1599_v7, %v1546_v5 }
 0x3ff   : > { %v1548_v15 = vpop.f32.mrf.mxu1 }
 0x405   : > { %v1601_v24 = vpop.f32.mrf.mxu2 }
 0x406   : > { %v1602_v62 = vadd.f32 %v1601_v24, %v1548_v15 }
 0x408   : > { %v1631_v51 = vpack.c.bf16 %v1602_v62, %v1600_v53 }
 0x40a   : > { %2935 = vmatmul.msk.bf16.gmra.mxu0 %vm757_vm3, %v1631_v51 }
 0x44a   : > { %v1551_v26 = vpop.f32.mrf.mxu1 }
 0x450   : > { %v1604_v1 = vpop.f32.mrf.mxu2 }
 0x451   : > { %v1605_v42 = vadd.f32 %v1604_v1, %v1551_v26 }
 0x452   : > { %v1553_v10 = vpop.f32.mrf.mxu1 }
 0x457   : > { %v1688_v4 = vpop.f32.mrf.mxu0 }
 0x458   : > { %v1606_v45 = vpop.f32.mrf.mxu2  ;;  %v1689_v30 = vadd.f32 %v4011_v46, %v1688_v4 }
 0x459   : > { %v1607_v19 = vadd.f32 %v1606_v45, %v1553_v10 }
 0x45a   : > { %v1556_v11 = vpop.f32.mrf.mxu1  ;;  %v4015_v29 = vadd.f32 %v1689_v30, %v3444_v22 }
 0x45b   : > { %v1632_v44 = vpack.c.bf16 %v1607_v19, %v1605_v42 }
 0x45c   : > { %v1413_v57 = vpop.xlane.xlu2 %1412  ;;  %v1749_v55 = vsel %vm757_vm3, %v4015_v29, 0.0 }
 0x45d   : > { %3119 = vrcp.f32 %v1413_v57  ;;  %2936 = vmatmul.msk.bf16.gmra.mxu0 %vm757_vm3, %v1632_v44  ;;  %1750 = vadd.xlane.f32.xlu0 %v1749_v55 }
 0x45f   : > { %v1690_v52 = vpop.f32.mrf.mxu0 }
 0x460   : > { %v1609_v63 = vpop.f32.mrf.mxu2  ;;  %v1691_v6 = vadd.f32 %v4011_v46, %v1690_v52 }
 0x462   : > { %v1558_v41 = vpop.f32.mrf.mxu1  ;;  %v4022_v13 = vadd.f32 %v1691_v6, %v3433_v14  ;;  %v1610_v14 = vadd.f32 %v1609_v63, %v1556_v11 }
 0x463   : > { %v3120_v21 = vpop.eup %3119 }
 0x464   : > { %v1464_v22 = vmul.f32 %v3120_v21, %v3989_v25  ;;  %v1752_v23 = vsel %vm757_vm3, %v4022_v13, 0.0  ;;  %v1463_v38 = vmul.f32 %v3120_v21, %v3987_v32 }
 0x465   : > { %1753 = vadd.xlane.f32.xlu1 %v1752_v23 }
 0x466   : > { %v1481_v20 = vpack.c.bf16 %v1463_v38, %v1463_v38  ;;  %v1482_v48 = vpack.c.bf16 %v1464_v22, %v1464_v22 }
 0x467   : > { %v1693_v27 = vpop.f32.mrf.mxu0 }
 0x468   : > { %1570 = vmatmul.bf16.gmra.mxu1 %v1481_v20  ;;  %2923 = vmatmul.msk.bf16.gmra.mxu2 %vm1172_vm5, %v1482_v48  ;;  %v1611_v47 = vpop.f32.mrf.mxu2  ;;  %v1694_v9 = vadd.f32 %v4011_v46, %v1693_v27 }
 0x469   : > { %v1612_v31 = vadd.f32 %v1611_v47, %v1558_v41 }
 0x46a   : > { %v1561_v8 = vpop.f32.mrf.mxu1  ;;  %v4031_v25 = vadd.f32 %v1694_v9, %v3454_v36 }
 0x46b   : > { %v1633_v28 = vpack.c.bf16 %v1612_v31, %v1610_v14 }
 0x46c   : > { %v1755_v32 = vsel %vm757_vm3, %v4031_v25, 0.0 }
 0x46d   : > { %2937 = vmatmul.msk.bf16.gmra.mxu0 %vm757_vm3, %v1633_v28  ;;  %1756 = vadd.xlane.f32.xlu2 %v1755_v32 }
 0x46f   : > { %v1695_v35 = vpop.f32.mrf.mxu0 }
 0x470   : > { %v1614_v0 = vpop.f32.mrf.mxu2  ;;  %v1696_v2 = vadd.f32 %v4011_v46, %v1695_v35 }
 0x471   : > { %v1615_v43 = vadd.f32 %v1614_v0, %v1561_v8 }
 0x472   : > { %v4038_v12 = vadd.f32 %v1696_v2, %v3457_v37  ;;  %v1563_v54 = vpop.f32.mrf.mxu1 }
 0x474   : > { %v1758_v3 = vsel %vm757_vm3, %v4038_v12, 0.0 }
 0x475   : > { %1759 = vadd.xlane.f32.xlu0 %v1758_v3 }
 0x477   : > { %v1698_v36 = vpop.f32.mrf.mxu0 }
 0x478   : > { %v1616_v5 = vpop.f32.mrf.mxu2  ;;  %v1699_v18 = vadd.f32 %v4011_v46, %v1698_v36 }
 0x479   : > { %v1617_v7 = vadd.f32 %v1616_v5, %v1563_v54 }
 0x47a   : > { %v4044_v15 = vadd.f32 %v1699_v18, %v3484_v58  ;;  %v1566_v37 = vpop.f32.mrf.mxu1 }
 0x47b   : > { %v1634_v24 = vpack.c.bf16 %v1617_v7, %v1615_v43 }
 0x47c   : > { %v1761_v53 = vsel %vm757_vm3, %v4044_v15, 0.0 }
 0x47d   : > { %2938 = vmatmul.msk.bf16.gmra.mxu0 %vm757_vm3, %v1634_v24  ;;  %1762 = vadd.xlane.f32.xlu1 %v1761_v53 }
 0x47f   : > { %v1700_v62 = vpop.f32.mrf.mxu0 }
 0x480   : > { %v1619_v51 = vpop.f32.mrf.mxu2  ;;  %v1701_v26 = vadd.f32 %v4011_v46, %v1700_v62 }
 0x481   : > { %v1620_v42 = vadd.f32 %v1619_v51, %v1566_v37 }
 0x482   : > { %v4051_v1 = vadd.f32 %v1701_v26, %v3489_v59  ;;  %v1568_v4 = vpop.f32.mrf.mxu1  ;;  %v3200_v59 = vmov 32.0  }
 0x483   : > { %3121 = vrcp.f32 %v3200_v59 }
 0x484   : > { %v1764_v10 = vsel %vm757_vm3, %v4051_v1, 0.0 }
 0x485   : > { %1765 = vadd.xlane.f32.xlu2 %v1764_v10 }
 0x487   : > { %v1703_v58 = vpop.f32.mrf.mxu0 }
 0x488   : > { %v1621_v45 = vpop.f32.mrf.mxu2  ;;  %v1704_v30 = vadd.f32 %v4011_v46, %v1703_v58 }
 0x489   : > { %v1622_v19 = vadd.f32 %v1621_v45, %v1568_v4  ;;  %v3122_v55 = vpop.eup %3121 }
 0x48a   : > { %v4057_v11 = vadd.f32 %v1704_v30, %v3353_v33  ;;  %v1802_v52 = vmul.f32 32.0, %v3122_v55  ;;  %vm1806_vm7 = vweird.f32 %v3122_v55 }
 0x48b   : > { %v1635_v44 = vpack.c.bf16 %v1622_v19, %v1620_v42 }
 0x48c   : > { %v1767_v57 = vsel %vm757_vm3, %v4057_v11, 0.0  ;;  %v1803_v63 = vsub.f32 1.0, %v1802_v52 }
 0x48d   : > { %2939 = vmatmul.msk.bf16.gmra.mxu0 %vm757_vm3, %v1635_v44  ;;  %1768 = vadd.xlane.f32.xlu2 %v1767_v57 }
 0x48e   : > { %v1804_v6 = vmul.f32 %v3122_v55, %v1803_v63 }
 0x48f   : > { %v1705_v23 = vpop.f32.mrf.mxu0 }
 0x490   : > { %v1805_v41 = vadd.f32 %v3122_v55, %v1804_v6  ;;  %v1706_v48 = vadd.f32 %v4011_v46, %v1705_v23 }
 0x492   : > { %v4062_v21 = vsel %vm1806_vm7, %v3122_v55, %v1805_v41  ;;  %v4077_v8 = vadd.f32 %v1706_v48, %v3356_v34 }
 0x494   : > { %v1770_v35 = vsel %vm757_vm3, %v4077_v8, 0.0 }
 0x4d0   : > { %v1751_v22 = vpop.xlane.xlu0 %1750 }
 0x4d1   : > { %v1808_v33 = vmul.f32 %v4062_v21, %v1751_v22 }
 0x4d3   : > { %v4066_v38 = vsub.f32 %v4015_v29, %v1808_v33 }
 0x4d5   : > { %v1842_v20 = vmul.f32 %v4066_v38, %v4066_v38 }
 0x4d7   : > { %v1859_v27 = vsel %vm757_vm3, %v1842_v20, 0.0 }
 0x4d8   : > { %v1754_v47 = vpop.xlane.xlu1 %1753  ;;  %1860 = vadd.xlane.f32.xlu0 %v1859_v27 }
 0x4d9   : > { %v1809_v9 = vmul.f32 %v4062_v21, %v1754_v47 }
 0x4da   : > { %v1708_v14 = vpop.f32.mrf.mxu0 }
 0x4db   : > { %v4074_v31 = vsub.f32 %v4022_v13, %v1809_v9  ;;  %v1709_v28 = vadd.f32 %v4011_v46, %v1708_v14 }
 0x4dd   : > { %v1843_v29 = vmul.f32 %v4074_v31, %v4074_v31  ;;  %v4090_v34 = vadd.f32 %v1709_v28, %v3383_v49 }
 0x4df   : > { %v1862_v32 = vsel %vm757_vm3, %v1843_v29, 0.0  ;;  %v1773_v43 = vsel %vm757_vm3, %v4090_v34, 0.0 }
 0x4e0   : > { %v1757_v0 = vpop.xlane.xlu2 %1756  ;;  %1863 = vadd.xlane.f32.xlu1 %v1862_v32  ;;  %1771 = vadd.xlane.f32.xlu0 %v1770_v35 }
 0x4e1   : > { %v1810_v2 = vmul.f32 %v4062_v21, %v1757_v0 }
 0x4e2   : > { %v1710_v13 = vpop.f32.mrf.mxu0 }
 0x4e3   : > { %v4087_v54 = vsub.f32 %v4031_v25, %v1810_v2  ;;  %v1711_v5 = vadd.f32 %v4011_v46, %v1710_v13  ;;  %v2993_v13 = vld [vmem:[%s4778_s12 + $0x8] sm:$0xff] }
 0x4e4   : > { %2188 = vmatpush.bf16.msrb.mxu3 %v2993_v13 }
 0x4e5   : > { %v1571_v3 = vpop.f32.mrf.mxu1  ;;  %v1844_v36 = vmul.f32 %v4087_v54, %v4087_v54  ;;  %v4103_v37 = vadd.f32 %v1711_v5, %v3386_v50 }
 0x4e7   : > { %v1865_v18 = vsel %vm757_vm3, %v1844_v36, 0.0  ;;  %v1776_v4 = vsel %vm757_vm3, %v4103_v37, 0.0 }
 0x4e8   : > { %1866 = vadd.xlane.f32.xlu1 %v1865_v18  ;;  %1774 = vadd.xlane.f32.xlu0 %v1773_v43  ;;  %v1760_v7 = vpop.xlane.xlu0 %1759 }
 0x4e9   : > { %v1811_v25 = vmul.f32 %v4062_v21, %v1760_v7 }
 0x4ea   : > { %v1713_v24 = vpop.f32.mrf.mxu0 }
 0x4eb   : > { %v4100_v49 = vsub.f32 %v4038_v12, %v1811_v25  ;;  %v1624_v53 = vpop.f32.mrf.mxu2  ;;  %v1714_v58 = vadd.f32 %v4011_v46, %v1713_v24 }
 0x4ec   : > { %v1625_v62 = vadd.f32 %v1624_v53, %v1571_v3  ;;  %v2992_v3 = vld [vmem:[%s4778_s12] sm:$0xff] }
 0x4ed   : > { %v1573_v51 = vpop.f32.mrf.mxu1  ;;  %v1845_v26 = vmul.f32 %v4100_v49, %v4100_v49  ;;  %v4117_v44 = vadd.f32 %v1714_v58, %v3328_v16  ;;  %2189 = vmatpush.bf16.msrb.mxu3 %v2992_v3 }
 0x4ee   : > { %v1636_v10 = vpack.c.bf16 %v1625_v62, %v1625_v62 }
 0x4ef   : > { %v1868_v45 = vsel %vm757_vm3, %v1845_v26, 0.0  ;;  %v1779_v59 = vsel %vm757_vm3, %v4117_v44, 0.0 }
 0x4f0   : > { %2940 = vmatmul.msk.bf16.gmra.mxu0 %vm757_vm3, %v1636_v10  ;;  %1777 = vadd.xlane.f32.xlu1 %v1776_v4  ;;  %v1763_v12 = vpop.xlane.xlu1 %1762 }
 0x4f1   : > { %v1812_v50 = vmul.f32 %v4062_v21, %v1763_v12  ;;  %1869 = vadd.xlane.f32.xlu2 %v1868_v45 }
 0x4f2   : > { %v1715_v30 = vpop.f32.mrf.mxu0 }
 0x4f3   : > { %v4114_v42 = vsub.f32 %v4044_v15, %v1812_v50  ;;  %v1626_v19 = vpop.f32.mrf.mxu2  ;;  %v1716_v52 = vadd.f32 %v4011_v46, %v1715_v30 }
 0x4f5   : > { %v1846_v57 = vmul.f32 %v4114_v42, %v4114_v42  ;;  %v4130_v16 = vadd.f32 %v1716_v52, %v3331_v17 }
 0x4f7   : > { %v1871_v55 = vsel %vm757_vm3, %v1846_v57, 0.0  ;;  %v1782_v48 = vsel %vm757_vm3, %v4130_v16, 0.0 }
 0x4f8   : > { %v1766_v63 = vpop.xlane.xlu2 %1765  ;;  %1780 = vadd.xlane.f32.xlu1 %v1779_v59 }
 0x4f9   : > { %v1813_v6 = vmul.f32 %v4062_v21, %v1766_v63  ;;  %1872 = vadd.xlane.f32.xlu2 %v1871_v55 }
 0x4fa   : > { %v1718_v15 = vpop.f32.mrf.mxu0 }
 0x4fb   : > { %v4127_v41 = vsub.f32 %v4051_v1, %v1813_v6  ;;  %v1719_v23 = vadd.f32 %v4011_v46, %v1718_v15 }
 0x4fd   : > { %v1847_v22 = vmul.f32 %v4127_v41, %v4127_v41  ;;  %v4143_v17 = vadd.f32 %v1719_v23, %v3367_v39 }
 0x4ff   : > { %v1874_v33 = vsel %vm757_vm3, %v1847_v22, 0.0  ;;  %v1785_v28 = vsel %vm757_vm3, %v4143_v17, 0.0 }
 0x500   : > { %v1769_v20 = vpop.xlane.xlu2 %1768  ;;  %1875 = vadd.xlane.f32.xlu0 %v1874_v33 }
 0x501   : > { %v1814_v27 = vmul.f32 %v4062_v21, %v1769_v20  ;;  %1783 = vadd.xlane.f32.xlu2 %v1782_v48 }
 0x502   : > { %v1720_v1 = vpop.f32.mrf.mxu0 }
 0x503   : > { %v4140_v47 = vsub.f32 %v4057_v11, %v1814_v27  ;;  %v1721_v14 = vadd.f32 %v4011_v46, %v1720_v1 }
 0x505   : > { %v1848_v9 = vmul.f32 %v4140_v47, %v4140_v47  ;;  %v4152_v32 = vadd.f32 %v1721_v14, %v3370_v40 }
 0x507   : > { %v1877_v29 = vsel %vm757_vm3, %v1848_v9, 0.0  ;;  %v1788_v39 = vsel %vm757_vm3, %v4152_v32, 0.0 }
 0x508   : > { %1878 = vadd.xlane.f32.xlu0 %v1877_v29 }
 0x509   : > { %1786 = vadd.xlane.f32.xlu2 %v1785_v28 }
 0x50a   : > { %v1723_v11 = vpop.f32.mrf.mxu0 }
 0x50b   : > { %v1724_v35 = vadd.f32 %v4011_v46, %v1723_v11 }
 0x50d   : > { %v4158_v0 = vadd.f32 %v1724_v35, %v3402_v60 }
 0x50f   : > { %v1791_v2 = vsel %vm757_vm3, %v4158_v0, 0.0 }
 0x510   : > { %1789 = vadd.xlane.f32.xlu0 %v1788_v39 }
 0x512   : > { %v1725_v57 = vpop.f32.mrf.mxu0 }
 0x513   : > { %v1726_v6 = vadd.f32 %v4011_v46, %v1725_v57 }
 0x515   : > { %v4197_v14 = vadd.f32 %v1726_v6, %v3406_v61 }
 0x517   : > { %v1794_v61 = vsel %vm757_vm3, %v4197_v14, 0.0 }
 0x518   : > { %1792 = vadd.xlane.f32.xlu0 %v1791_v2 }
 0x54b   : > { %v1861_v40 = vpop.xlane.xlu0 %1860 }
 0x54c   : > { %v1910_v36 = vmul.f32 %v1861_v40, %v4062_v21 }
 0x54e   : > { %v1927_v5 = vadd.f32 1e-05, %v1910_v36 }
 0x550   : > { %3123 = vrsqrt.f32 %v1927_v5  ;;  %vm1950_vm9 = vweird.f32 %v1927_v5 }
 0x553   : > { %v1864_v60 = vpop.xlane.xlu1 %1863  ;;  %v1772_v18 = vpop.xlane.xlu0 %1771 }
 0x554   : > { %v1911_v43 = vmul.f32 %v1864_v60, %v4062_v21  ;;  %v1815_v7 = vmul.f32 %v4062_v21, %v1772_v18 }
 0x556   : > { %v3124_v25 = vpop.eup %3123  ;;  %v1928_v24 = vadd.f32 1e-05, %v1911_v43  ;;  %v4172_v53 = vsub.f32 %v4077_v8, %v1815_v7 }
 0x557   : > { %v1945_v62 = vmul.f32 %v3124_v25, %v1927_v5  ;;  %vm1951_vm8 = vweird.f32 %v3124_v25 }
 0x558   : > { %3125 = vrsqrt.f32 %v1928_v24  ;;  %v1849_v51 = vmul.f32 %v4172_v53, %v4172_v53  ;;  %vm1952_vm11 = vmor %vm1950_vm9, %vm1951_vm8  ;;  %vm1960_vm12 = vweird.f32 %v1928_v24 }
 0x559   : > { %v1946_v26 = vmul.f32 %v3124_v25, %v1945_v62 }
 0x55a   : > { %v1880_v10 = vsel %vm757_vm3, %v1849_v51, 0.0 }
 0x55b   : > { %v1947_v58 = vmul.f32 0.5, %v1946_v26  ;;  %v1867_v4 = vpop.xlane.xlu1 %1866  ;;  %1881 = vadd.xlane.f32.xlu1 %v1880_v10  ;;  %v1775_v45 = vpop.xlane.xlu0 %1774 }
 0x55c   : > { %v1912_v12 = vmul.f32 %v1867_v4, %v4062_v21  ;;  %v1816_v50 = vmul.f32 %v4062_v21, %v1775_v45 }
 0x55d   : > { %v1948_v59 = vsub.f32 1.5, %v1947_v58 }
 0x55e   : > { %v3126_v30 = vpop.eup %3125  ;;  %v4179_v19 = vadd.f32 1e-05, %v1912_v12  ;;  %v4182_v8 = vsub.f32 %v4090_v34, %v1816_v50 }
 0x55f   : > { %v1955_v55 = vmul.f32 %v3126_v30, %v1928_v24  ;;  %v1949_v22 = vmul.f32 %v3124_v25, %v1948_v59  ;;  %vm1961_vm10 = vweird.f32 %v3126_v30 }
 0x560   : > { %3127 = vrsqrt.f32 %v4179_v19  ;;  %v1850_v52 = vmul.f32 %v4182_v8, %v4182_v8  ;;  %vm1962_vm13 = vmor %vm1960_vm12, %vm1961_vm10  ;;  %vm1970_vm0 = vweird.f32 %v4179_v19 }
 0x561   : > { %v1956_v63 = vmul.f32 %v3126_v30, %v1955_v55  ;;  %v1953_v29 = vsel %vm1952_vm11, %v3124_v25, %v1949_v22 }
 0x562   : > { %v1883_v15 = vsel %vm757_vm3, %v1850_v52, 0.0  ;;  %v4208_v40 = vmul.f32 %v1953_v29, %v4066_v38 }
 0x563   : > { %v1957_v33 = vmul.f32 0.5, %v1956_v63  ;;  %v1778_v23 = vpop.xlane.xlu1 %1777  ;;  %1884 = vadd.xlane.f32.xlu1 %v1883_v15 }
 0x564   : > { %v1817_v34 = vmul.f32 %v4062_v21, %v1778_v23  ;;  %v1870_v20 = vpop.xlane.xlu2 %1869 }
 0x565   : > { %v1958_v48 = vsub.f32 1.5, %v1957_v33  ;;  %v1913_v27 = vmul.f32 %v1870_v20, %v4062_v21 }
 0x566   : > { %v4191_v1 = vpop.eup %3127  ;;  %v4194_v9 = vsub.f32 %v4103_v37, %v1817_v34 }
 0x567   : > { %v1959_v28 = vmul.f32 %v3126_v30, %v1958_v48  ;;  %v1965_v11 = vmul.f32 %v4191_v1, %v4179_v19  ;;  %v1930_v35 = vadd.f32 1e-05, %v1913_v27  ;;  %vm1971_vm15 = vweird.f32 %v4191_v1 }
 0x568   : > { %v1851_v39 = vmul.f32 %v4194_v9, %v4194_v9  ;;  %vm1972_vm2 = vmor %vm1970_vm0, %vm1971_vm15 }
 0x569   : > { %v1963_v2 = vsel %vm1962_vm13, %v3126_v30, %v1959_v28  ;;  %v1966_v13 = vmul.f32 %v4191_v1, %v1965_v11  ;;  %3129 = vrsqrt.f32 %v1930_v35  ;;  %vm1980_vm4 = vweird.f32 %v1930_v35 }
 0x56a   : > { %v1886_v37 = vsel %vm757_vm3, %v1851_v39, 0.0  ;;  %v4211_v3 = vmul.f32 %v1963_v2, %v4074_v31 }
 0x56b   : > { %v1781_v36 = vpop.xlane.xlu1 %1780  ;;  %1887 = vadd.xlane.f32.xlu2 %v1886_v37  ;;  %1795 = vadd.xlane.f32.xlu1 %v1794_v61  ;;  %v1967_v5 = vmul.f32 0.5, %v1966_v13 }
 0x56c   : > { %v1818_v60 = vmul.f32 %v4062_v21, %v1781_v36  ;;  %v1873_v18 = vpop.xlane.xlu2 %1872  ;;  %v2131_v43 = vpack.c.bf16 %v4211_v3, %v4208_v40 }
 0x56d   : > { %v1728_v7 = vpop.f32.mrf.mxu0  ;;  %v1914_v25 = vmul.f32 %v1873_v18, %v4062_v21  ;;  %v1968_v51 = vsub.f32 1.5, %v1967_v5 }
 0x56e   : > { %v1729_v24 = vadd.f32 %v4011_v46, %v1728_v7  ;;  %v4219_v38 = vsub.f32 %v4117_v44, %v1818_v60  ;;  %2949 = vmatmul.msk.bf16.vlgmr.msrb.gmra.mxu3 %vm757_vm3, %v2131_v43 }
 0x56f   : > { %v3130_v31 = vpop.eup %3129  ;;  %v1931_v62 = vadd.f32 1e-05, %v1914_v25  ;;  %v1969_v12 = vmul.f32 %v4191_v1, %v1968_v51 }
 0x570   : > { %v1975_v26 = vmul.f32 %v3130_v31, %v1930_v35  ;;  %v1852_v10 = vmul.f32 %v4219_v38, %v4219_v38  ;;  %v4225_v58 = vadd.f32 %v1729_v24, %v3393_v56  ;;  %vm1981_vm1 = vweird.f32 %v3130_v31 }
 0x571   : > { %3131 = vrsqrt.f32 %v1931_v62  ;;  %v1973_v33 = vsel %vm1972_vm2, %v4191_v1, %v1969_v12  ;;  %vm1982_vm5 = vmor %vm1980_vm4, %vm1981_vm1  ;;  %vm1990_vm7 = vweird.f32 %v1931_v62 }
 0x572   : > { %v1976_v4 = vmul.f32 %v3130_v31, %v1975_v26  ;;  %v1889_v46 = vsel %vm757_vm3, %v1852_v10, 0.0  ;;  %v1798_v44 = vsel %vm1797_vm14, %v4225_v58, 0.0  ;;  %v4243_v27 = vmul.f32 %v1973_v33, %v4087_v54  ;;  %v2995_v33 = vld [vmem:[%s4780_s14 + $0x8] sm:$0xff] }
 0x573   : > { %1890 = vadd.xlane.f32.xlu2 %v1889_v46  ;;  %1799 = vadd.xlane.f32.xlu1 %v1798_v44  ;;  %v1876_v45 = vpop.xlane.xlu0 %1875 }
 0x574   : > { %v1977_v50 = vmul.f32 0.5, %v1976_v4  ;;  %v1784_v30 = vpop.xlane.xlu2 %1783  ;;  %v1915_v57 = vmul.f32 %v1876_v45, %v4062_v21 }
 0x575   : > { %v1730_v56 = vpop.f32.mrf.mxu0  ;;  %v1819_v59 = vmul.f32 %v4062_v21, %v1784_v30 }
 0x576   : > { %v1978_v55 = vsub.f32 1.5, %v1977_v50  ;;  %v1932_v52 = vadd.f32 1e-05, %v1915_v57 }
 0x577   : > { %v3132_v63 = vpop.eup %3131  ;;  %v4236_v6 = vsub.f32 %v4130_v16, %v1819_v59  ;;  %v2996_v59 = vld [vmem:[%s4780_s14 + $0x10] sm:$0xff] }
 0x578   : > { %v1979_v15 = vmul.f32 %v3130_v31, %v1978_v55  ;;  %v1985_v22 = vmul.f32 %v3132_v63, %v1931_v62  ;;  %3133 = vrsqrt.f32 %v1932_v52  ;;  %vm1991_vm6 = vweird.f32 %v3132_v63 }
 0x579   : > { %v1853_v23 = vmul.f32 %v4236_v6, %v4236_v6  ;;  %vm1992_vm9 = vmor %vm1990_vm7, %vm1991_vm6  ;;  %vm2000_vm10 = vweird.f32 %v1932_v52 }
 0x57a   : > { %v1986_v34 = vmul.f32 %v3132_v63, %v1985_v22  ;;  %v1983_v19 = vsel %vm1982_vm5, %v3130_v31, %v1979_v15 }
 0x57b   : > { %v1892_v20 = vsel %vm757_vm3, %v1853_v23, 0.0  ;;  %v1879_v48 = vpop.xlane.xlu0 %1878  ;;  %v4246_v16 = vmul.f32 %v1983_v19, %v4100_v49 }
 0x57c   : > { %v1987_v29 = vmul.f32 0.5, %v1986_v34  ;;  %1893 = vadd.xlane.f32.xlu0 %v1892_v20  ;;  %v1787_v28 = vpop.xlane.xlu2 %1786  ;;  %v2994_v20 = vld [vmem:[%s4780_s14] sm:$0xff] }
 0x57d   : > { %v1820_v1 = vmul.f32 %v4062_v21, %v1787_v28  ;;  %v2132_v11 = vpack.c.bf16 %v4246_v16, %v4243_v27 }
 0x57e   : > { %v3134_v35 = vpop.eup %3133  ;;  %v1988_v39 = vsub.f32 1.5, %v1987_v29 }
 0x57f   : > { %v1995_v2 = vmul.f32 %v3134_v35, %v1932_v52  ;;  %v4252_v13 = vsub.f32 %v4143_v17, %v1820_v1  ;;  %2950 = vmatmul.msk.bf16.gmra.mxu3 %vm757_vm3, %v2132_v11  ;;  %vm2001_vm8 = vweird.f32 %v3134_v35 }
 0x580   : > { %v1989_v37 = vmul.f32 %v3132_v63, %v1988_v39  ;;  %vm2002_vm11 = vmor %vm2000_vm10, %vm2001_vm8  ;;  %vm2288_vm10 = vcmask 523264  }
 0x581   : > { %v1996_v54 = vmul.f32 %v3134_v35, %v1995_v2  ;;  %v1854_v49 = vmul.f32 %v4252_v13, %v4252_v13 }
 0x582   : > { %v1993_v7 = vsel %vm1992_vm9, %v3132_v63, %v1989_v37 }
 0x583   : > { %v1997_v61 = vmul.f32 0.5, %v1996_v54  ;;  %v1895_v36 = vsel %vm757_vm3, %v1854_v49, 0.0  ;;  %v1790_v5 = vpop.xlane.xlu0 %1789  ;;  %v4266_v51 = vmul.f32 %v1993_v7, %v4114_v42 }
 0x584   : > { %1896 = vadd.xlane.f32.xlu2 %v1895_v36  ;;  %v1821_v60 = vmul.f32 %v4062_v21, %v1790_v5 }
 0x585   : > { %v1998_v18 = vsub.f32 1.5, %v1997_v61 }
 0x586   : > { %v4260_v17 = vsub.f32 %v4152_v32, %v1821_v60 }
 0x587   : > { %v1999_v43 = vmul.f32 %v3134_v35, %v1998_v18 }
 0x588   : > { %v1855_v25 = vmul.f32 %v4260_v17, %v4260_v17 }
 0x589   : > { %v2003_v24 = vsel %vm2002_vm11, %v3134_v35, %v1999_v43 }
 0x58a   : > { %v1898_v31 = vsel %vm757_vm3, %v1855_v25, 0.0  ;;  %v4269_v62 = vmul.f32 %v2003_v24, %v4127_v41  ;;  %v1916_v41 = vmul.f32 %v1879_v48, %v4062_v21 }
 0x58b   : > { %1899 = vadd.xlane.f32.xlu0 %v1898_v31  ;;  %v1793_v26 = vpop.xlane.xlu0 %1792 }
 0x58c   : > { %v1822_v32 = vmul.f32 %v4062_v21, %v1793_v26  ;;  %v2133_v10 = vpack.c.bf16 %v4269_v62, %v4266_v51  ;;  %v1933_v44 = vadd.f32 1e-05, %v1916_v41 }
 0x58e   : > { %v4275_v4 = vsub.f32 %v4158_v0, %v1822_v32  ;;  %3135 = vrsqrt.f32 %v1933_v44  ;;  %v2997_v0 = vld [vmem:[%s4780_s14 + $0x18] sm:$0xff]  ;;  %vm2010_vm13 = vweird.f32 %v1933_v44 }
 0x58f   : > { %2951 = vmatmul.msk.bf16.gmra.mxu3 %vm757_vm3, %v2133_v10  ;;  %2320 = vmatpush.bf16.msra.mxu1 %v2997_v0 }
 0x590   : > { %v1856_v46 = vmul.f32 %v4275_v4, %v4275_v4 }
 0x592   : > { %v1901_v42 = vsel %vm757_vm3, %v1856_v46, 0.0 }
 0x593   : > { %1902 = vadd.xlane.f32.xlu1 %v1901_v42  ;;  %2321 = vmatpush.bf16.msra.mxu1 %v2996_v59 }
 0x594   : > { %v3136_v45 = vpop.eup %3135 }
 0x595   : > { %v2005_v12 = vmul.f32 %v3136_v45, %v1933_v44  ;;  %vm2011_vm12 = vweird.f32 %v3136_v45 }
 0x596   : > { %vm2012_vm0 = vmor %vm2010_vm13, %vm2011_vm12 }
 0x597   : > { %v2006_v56 = vmul.f32 %v3136_v45, %v2005_v12  ;;  %2322 = vmatpush.bf16.msra.mxu1 %v2995_v33 }
 0x599   : > { %v2007_v55 = vmul.f32 0.5, %v2006_v56 }
 0x59b   : > { %v2008_v23 = vsub.f32 1.5, %v2007_v55  ;;  %2323 = vmatpush.bf16.msra.mxu1 %v2994_v20 }
 0x59d   : > { %v2009_v48 = vmul.f32 %v3136_v45, %v2008_v23 }
 0x59f   : > { %v2013_v37 = vsel %vm2012_vm0, %v3136_v45, %v2009_v48 }
 0x5a0   : > { %v4305_v7 = vmul.f32 %v2013_v37, %v4140_v47 }
 0x5ce   : > { %v1882_v50 = vpop.xlane.xlu1 %1881 }
 0x5cf   : > { %v1917_v30 = vmul.f32 %v1882_v50, %v4062_v21 }
 0x5d1   : > { %v1934_v57 = vadd.f32 1e-05, %v1917_v30 }
 0x5d3   : > { %3137 = vrsqrt.f32 %v1934_v57  ;;  %vm2020_vm1 = vweird.f32 %v1934_v57 }
 0x5d6   : > { %v1885_v52 = vpop.xlane.xlu1 %1884 }
 0x5d7   : > { %v1918_v63 = vmul.f32 %v1885_v52, %v4062_v21 }
 0x5d9   : > { %v3138_v15 = vpop.eup %3137  ;;  %v1935_v22 = vadd.f32 1e-05, %v1918_v63 }
 0x5da   : > { %v2015_v34 = vmul.f32 %v3138_v15, %v1934_v57  ;;  %vm2021_vm15 = vweird.f32 %v3138_v15 }
 0x5db   : > { %3139 = vrsqrt.f32 %v1935_v22  ;;  %vm2022_vm2 = vmor %vm2020_vm1, %vm2021_vm15  ;;  %vm2030_vm5 = vweird.f32 %v1935_v22 }
 0x5dc   : > { %v2016_v19 = vmul.f32 %v3138_v15, %v2015_v34 }
 0x5de   : > { %v2017_v29 = vmul.f32 0.5, %v2016_v19  ;;  %v1888_v28 = vpop.xlane.xlu2 %1887  ;;  %v1796_v1 = vpop.xlane.xlu1 %1795 }
 0x5df   : > { %v1919_v11 = vmul.f32 %v1888_v28, %v4062_v21  ;;  %v1823_v35 = vmul.f32 %v4062_v21, %v1796_v1 }
 0x5e0   : > { %v2018_v39 = vsub.f32 1.5, %v2017_v29 }
 0x5e1   : > { %v3140_v2 = vpop.eup %3139  ;;  %v1936_v54 = vadd.f32 1e-05, %v1919_v11  ;;  %v4299_v49 = vsub.f32 %v4197_v14, %v1823_v35 }
 0x5e2   : > { %v2019_v61 = vmul.f32 %v3138_v15, %v2018_v39  ;;  %v2025_v36 = vmul.f32 %v3140_v2, %v1935_v22  ;;  %vm2031_vm4 = vweird.f32 %v3140_v2  ;;  %v4325_v22 = vld [vmem:[%s4779_s13] ss:$0 sm:$0xff] }
 0x5e3   : > { %3141 = vrsqrt.f32 %v1936_v54  ;;  %v1857_v5 = vmul.f32 %v4299_v49, %v4299_v49  ;;  %vm2032_vm7 = vmor %vm2030_vm5, %vm2031_vm4  ;;  %vm2040_vm8 = vweird.f32 %v1936_v54 }
 0x5e4   : > { %v2023_v60 = vsel %vm2022_vm2, %v3138_v15, %v2019_v61  ;;  %v2026_v18 = vmul.f32 %v3140_v2, %v2025_v36 }
 0x5e5   : > { %v1904_v43 = vsel %vm757_vm3, %v1857_v5, 0.0  ;;  %v4308_v25 = vmul.f32 %v2023_v60, %v4172_v53 }
 0x5e6   : > { %v2027_v14 = vmul.f32 0.5, %v2026_v18  ;;  %v1891_v24 = vpop.xlane.xlu2 %1890  ;;  %1905 = vadd.xlane.f32.xlu2 %v1904_v43  ;;  %v1800_v31 = vpop.xlane.xlu1 %1799 }
 0x5e7   : > { %v1920_v26 = vmul.f32 %v1891_v24, %v4062_v21  ;;  %v1824_v32 = vmul.f32 %v4062_v21, %v1800_v31  ;;  %v2134_v10 = vpack.c.bf16 %v4308_v25, %v4305_v7 }
 0x5e8   : > { %v2028_v47 = vsub.f32 1.5, %v2027_v14 }
 0x5e9   : > { %v3142_v46 = vpop.eup %3141  ;;  %v1937_v42 = vadd.f32 1e-05, %v1920_v26  ;;  %v4315_v41 = vsub.f32 %v4225_v58, %v1824_v32  ;;  %2952 = vmatmul.msk.bf16.gmra.mxu3 %vm757_vm3, %v2134_v10 }
 0x5ea   : > { %v2035_v53 = vmul.f32 %v3142_v46, %v1936_v54  ;;  %v2029_v50 = vmul.f32 %v3140_v2, %v2028_v47  ;;  %vm2041_vm6 = vweird.f32 %v3142_v46 }
 0x5eb   : > { %3143 = vrsqrt.f32 %v1937_v42  ;;  %v1858_v44 = vmul.f32 %v4315_v41, %v4315_v41  ;;  %vm2042_vm9 = vmor %vm2040_vm8, %vm2041_vm6  ;;  %vm2050_vm12 = vweird.f32 %v1937_v42 }
 0x5ec   : > { %v2036_v45 = vmul.f32 %v3142_v46, %v2035_v53  ;;  %v2033_v55 = vsel %vm2032_vm7, %v3140_v2, %v2029_v50 }
 0x5ed   : > { %v1907_v12 = vsel %vm1797_vm14, %v1858_v44, 0.0  ;;  %v4328_v34 = vmul.f32 %v2033_v55, %v4182_v8 }
 0x5ee   : > { %v2037_v30 = vmul.f32 0.5, %v2036_v45  ;;  %1908 = vadd.xlane.f32.xlu0 %v1907_v12 }
 0x5ef   : > { %v1894_v57 = vpop.xlane.xlu0 %1893 }
 0x5f0   : > { %v2038_v0 = vsub.f32 1.5, %v2037_v30  ;;  %v1921_v58 = vmul.f32 %v1894_v57, %v4062_v21 }
 0x5f1   : > { %v3144_v56 = vpop.eup %3143  ;;  %v2191_v59 = vpop.f32.mrf.mxu3 }
 0x5f2   : > { %v2039_v52 = vmul.f32 %v3142_v46, %v2038_v0  ;;  %v2045_v63 = vmul.f32 %v3144_v56, %v1937_v42  ;;  %v1938_v15 = vadd.f32 1e-05, %v1921_v58  ;;  %v2192_v28 = vadd.f32 %v4325_v22, %v2191_v59 }
 0x5f3   : > { %vm2051_vm11 = vweird.f32 %v3144_v56 }
 0x5f4   : > { %v2043_v33 = vsel %vm2042_vm9, %v3142_v46, %v2039_v52  ;;  %v2046_v23 = vmul.f32 %v3144_v56, %v2045_v63  ;;  %3145 = vrsqrt.f32 %v1938_v15  ;;  %vm2052_vm15 = vmor %vm2050_vm12, %vm2051_vm11  ;;  %vm2060_vm0 = vweird.f32 %v1938_v15 }
 0x5f5   : > { %v4331_v19 = vmul.f32 %v2043_v33, %v4194_v9  ;;  %v2235_v9 = vmax.f32 %v2192_v28, 0.0 }
 0x5f6   : > { %v2047_v20 = vmul.f32 0.5, %v2046_v23 }
 0x5f7   : > { %v1897_v48 = vpop.xlane.xlu2 %1896  ;;  %v2135_v29 = vpack.c.bf16 %v4331_v19, %v4328_v34 }
 0x5f8   : > { %v1922_v1 = vmul.f32 %v1897_v48, %v4062_v21  ;;  %v2048_v2 = vsub.f32 1.5, %v2047_v20 }
 0x5f9   : > { %v2193_v11 = vpop.f32.mrf.mxu3  ;;  %2953 = vmatmul.msk.bf16.gmra.mxu3 %vm757_vm3, %v2135_v29 }
 0x5fa   : > { %v3146_v35 = vpop.eup %3145  ;;  %v1939_v39 = vadd.f32 1e-05, %v1922_v1  ;;  %v2194_v8 = vadd.f32 %v4325_v22, %v2193_v11  ;;  %v2049_v60 = vmul.f32 %v3144_v56, %v2048_v2 }
 0x5fb   : > { %v2055_v54 = vmul.f32 %v3146_v35, %v1938_v15  ;;  %vm2061_vm13 = vweird.f32 %v3146_v35 }
 0x5fc   : > { %3147 = vrsqrt.f32 %v1939_v39  ;;  %v2236_v37 = vmax.f32 %v2194_v8, 0.0  ;;  %v2053_v32 = vsel %vm2052_vm15, %v3144_v56, %v2049_v60  ;;  %vm2062_vm1 = vmor %vm2060_vm0, %vm2061_vm13  ;;  %vm2070_vm4 = vweird.f32 %v1939_v39 }
 0x5fd   : > { %v2056_v61 = vmul.f32 %v3146_v35, %v2055_v54  ;;  %v4342_v44 = vmul.f32 %v2053_v32, %v4219_v38 }
 0x5fe   : > { %v2252_v36 = vpack.c.bf16 %v2236_v37, %v2235_v9  ;;  %v1900_v5 = vpop.xlane.xlu0 %1899 }
 0x5ff   : > { %v2057_v18 = vmul.f32 0.5, %v2056_v61  ;;  %v1923_v43 = vmul.f32 %v1900_v5, %v4062_v21 }
 0x600   : > { %2974 = vmatmul.msk.bf16.vlgmr.msra.gmra.mxu1 %vm2288_vm10, %v2252_v36 }
 0x601   : > { %v2058_v14 = vsub.f32 1.5, %v2057_v18  ;;  %v1940_v24 = vadd.f32 1e-05, %v1923_v43 }
 0x602   : > { %v3148_v31 = vpop.eup %3147  ;;  %v2196_v26 = vpop.f32.mrf.mxu3 }
 0x603   : > { %v2059_v10 = vmul.f32 %v3146_v35, %v2058_v14  ;;  %v2065_v46 = vmul.f32 %v3148_v31, %v1939_v39  ;;  %3149 = vrsqrt.f32 %v1940_v24  ;;  %v2197_v30 = vadd.f32 %v4325_v22, %v2196_v26 }
 0x604   : > { %vm2071_vm2 = vweird.f32 %v3148_v31  ;;  %vm2080_vm7 = vweird.f32 %v1940_v24 }
 0x605   : > { %v2063_v47 = vsel %vm2062_vm1, %v3146_v35, %v2059_v10  ;;  %v2066_v53 = vmul.f32 %v3148_v31, %v2065_v46  ;;  %v2237_v38 = vmax.f32 %v2197_v30, 0.0  ;;  %vm2072_vm6 = vmor %vm2070_vm4, %vm2071_vm2 }
 0x606   : > { %v4345_v45 = vmul.f32 %v2063_v47, %v4236_v6 }
 0x607   : > { %v2067_v42 = vmul.f32 0.5, %v2066_v53 }
 0x608   : > { %v2136_v12 = vpack.c.bf16 %v4345_v45, %v4342_v44 }
 0x609   : > { %v3150_v50 = vpop.eup %3149  ;;  %v2068_v57 = vsub.f32 1.5, %v2067_v42 }
 0x60a   : > { %v2075_v0 = vmul.f32 %v3150_v50, %v1940_v24  ;;  %v2198_v58 = vpop.f32.mrf.mxu3  ;;  %2954 = vmatmul.msk.bf16.gmra.mxu3 %vm757_vm3, %v2136_v12  ;;  %vm2081_vm5 = vweird.f32 %v3150_v50 }
 0x60b   : > { %v2199_v56 = vadd.f32 %v4325_v22, %v2198_v58  ;;  %v2069_v52 = vmul.f32 %v3148_v31, %v2068_v57  ;;  %vm2082_vm8 = vmor %vm2080_vm7, %vm2081_vm5 }
 0x60c   : > { %v2076_v59 = vmul.f32 %v3150_v50, %v2075_v0 }
 0x60d   : > { %v2238_v55 = vmax.f32 %v2199_v56, 0.0  ;;  %v2073_v33 = vsel %vm2072_vm6, %v3148_v31, %v2069_v52 }
 0x60e   : > { %v2077_v6 = vmul.f32 0.5, %v2076_v59  ;;  %v4354_v29 = vmul.f32 %v2073_v33, %v4252_v13  ;;  %v1903_v13 = vpop.xlane.xlu1 %1902 }
 0x60f   : > { %v2253_v63 = vpack.c.bf16 %v2238_v55, %v2237_v38  ;;  %v1924_v9 = vmul.f32 %v1903_v13, %v4062_v21 }
 0x610   : > { %v2078_v15 = vsub.f32 1.5, %v2077_v6 }
 0x611   : > { %2975 = vmatmul.msk.bf16.gmra.mxu1 %vm2288_vm10, %v2253_v63 }
 0x612   : > { %v2079_v23 = vmul.f32 %v3150_v50, %v2078_v15  ;;  %v2201_v20 = vpop.f32.mrf.mxu3 }
 0x613   : > { %v2202_v11 = vadd.f32 %v4325_v22, %v2201_v20 }
 0x614   : > { %v2083_v48 = vsel %vm2082_vm8, %v3150_v50, %v2079_v23 }
 0x615   : > { %v4357_v28 = vmul.f32 %v2083_v48, %v4260_v17  ;;  %v2239_v8 = vmax.f32 %v2202_v11, 0.0  ;;  %v1941_v17 = vadd.f32 1e-05, %v1924_v9 }
 0x617   : > { %v2137_v1 = vpack.c.bf16 %v4357_v28, %v4354_v29  ;;  %3151 = vrsqrt.f32 %v1941_v17  ;;  %vm2090_vm11 = vweird.f32 %v1941_v17 }
 0x61a   : > { %v2203_v35 = vpop.f32.mrf.mxu3  ;;  %2955 = vmatmul.msk.bf16.gmra.mxu3 %vm757_vm3, %v2137_v1 }
 0x61b   : > { %v2204_v39 = vadd.f32 %v4325_v22, %v2203_v35 }
 0x61d   : > { %v2240_v2 = vmax.f32 %v2204_v39, 0.0  ;;  %v3152_v37 = vpop.eup %3151 }
 0x61e   : > { %v2085_v61 = vmul.f32 %v3152_v37, %v1941_v17  ;;  %vm2091_vm9 = vweird.f32 %v3152_v37 }
 0x61f   : > { %v2254_v54 = vpack.c.bf16 %v2240_v2, %v2239_v8  ;;  %vm2092_vm13 = vmor %vm2090_vm11, %vm2091_vm9 }
 0x620   : > { %v2086_v18 = vmul.f32 %v3152_v37, %v2085_v61 }
 0x621   : > { %2976 = vmatmul.msk.bf16.gmra.mxu1 %vm2288_vm10, %v2254_v54 }
 0x622   : > { %v2087_v43 = vmul.f32 0.5, %v2086_v18 }
 0x624   : > { %v2088_v32 = vsub.f32 1.5, %v2087_v43 }
 0x626   : > { %v2089_v47 = vmul.f32 %v3152_v37, %v2088_v32 }
 0x628   : > { %v2093_v30 = vsel %vm2092_vm13, %v3152_v37, %v2089_v47 }
 0x629   : > { %v4369_v59 = vmul.f32 %v2093_v30, %v4275_v4 }
 0x659   : > { %v1906_v36 = vpop.xlane.xlu2 %1905 }
 0x65a   : > { %v1925_v5 = vmul.f32 %v1906_v36, %v4062_v21 }
 0x65c   : > { %v1942_v60 = vadd.f32 1e-05, %v1925_v5 }
 0x65e   : > { %3153 = vrsqrt.f32 %v1942_v60  ;;  %vm2100_vm15 = vweird.f32 %v1942_v60 }
 0x661   : > { %v1909_v14 = vpop.xlane.xlu0 %1908 }
 0x662   : > { %v1926_v24 = vmul.f32 %v1909_v14, %v4062_v21 }
 0x664   : > { %v3154_v31 = vpop.eup %3153  ;;  %v1943_v26 = vadd.f32 1e-05, %v1926_v24 }
 0x665   : > { %v2095_v10 = vmul.f32 %v3154_v31, %v1942_v60  ;;  %vm2101_vm12 = vweird.f32 %v3154_v31 }
 0x666   : > { %3155 = vrsqrt.f32 %v1943_v26  ;;  %vm2102_vm0 = vmor %vm2100_vm15, %vm2101_vm12  ;;  %vm2110_vm2 = vweird.f32 %v1943_v26 }
 0x667   : > { %v2096_v46 = vmul.f32 %v3154_v31, %v2095_v10 }
 0x669   : > { %v2097_v53 = vmul.f32 0.5, %v2096_v46 }
 0x66b   : > { %v2098_v42 = vsub.f32 1.5, %v2097_v53 }
 0x66c   : > { %v3156_v12 = vpop.eup %3155  ;;  %v2206_v50 = vpop.f32.mrf.mxu3 }
 0x66d   : > { %v2099_v57 = vmul.f32 %v3154_v31, %v2098_v42  ;;  %v2105_v0 = vmul.f32 %v3156_v12, %v1943_v26  ;;  %v2207_v63 = vadd.f32 %v4325_v22, %v2206_v50  ;;  %vm2111_vm1 = vweird.f32 %v3156_v12 }
 0x66e   : > { %vm2112_vm4 = vmor %vm2110_vm2, %vm2111_vm1 }
 0x66f   : > { %v2103_v58 = vsel %vm2102_vm0, %v3154_v31, %v2099_v57  ;;  %v2106_v56 = vmul.f32 %v3156_v12, %v2105_v0  ;;  %v2241_v20 = vmax.f32 %v2207_v63, 0.0 }
 0x670   : > { %v4372_v38 = vmul.f32 %v2103_v58, %v4299_v49  ;;  %v4382_v49 = vld [vmem:[%s4781_s15] ss:$0 sm:$0xff] }
 0x671   : > { %v2107_v55 = vmul.f32 0.5, %v2106_v56 }
 0x672   : > { %v2138_v52 = vpack.c.bf16 %v4372_v38, %v4369_v59 }
 0x673   : > { %v2108_v6 = vsub.f32 1.5, %v2107_v55 }
 0x674   : > { %v2208_v15 = vpop.f32.mrf.mxu3  ;;  %2956 = vmatmul.msk.bf16.gmra.mxu3 %vm757_vm3, %v2138_v52 }
 0x675   : > { %v2209_v33 = vadd.f32 %v4325_v22, %v2208_v15  ;;  %v2109_v23 = vmul.f32 %v3156_v12, %v2108_v6 }
 0x677   : > { %v2242_v4 = vmax.f32 %v2209_v33, 0.0  ;;  %v2113_v1 = vsel %vm2112_vm4, %v3156_v12, %v2109_v23 }
 0x678   : > { %v4387_v8 = vmul.f32 %v2113_v1, %v4315_v41 }
 0x679   : > { %v2255_v48 = vpack.c.bf16 %v2242_v4, %v2241_v20 }
 0x67a   : > { %v2139_v13 = vpack.c.bf16 %v4387_v8, %v4387_v8 }
 0x67b   : > { %2977 = vmatmul.msk.bf16.gmra.mxu1 %vm2288_vm10, %v2255_v48 }
 0x67c   : > { %v2211_v11 = vpop.f32.mrf.mxu3 }
 0x67d   : > { %v2325_v35 = vpop.f32.mrf.mxu1  ;;  %v2212_v9 = vadd.f32 %v4325_v22, %v2211_v11 }
 0x67e   : > { %v2326_v39 = vadd.f32 %v4382_v49, %v2325_v35 }
 0x67f   : > { %v2243_v36 = vmax.f32 %v2212_v9, 0.0 }
 0x680   : > { %v4390_v2 = vadd.f32 %v2326_v39, %v4208_v40 }
 0x682   : > { %v2386_v54 = vsel %vm757_vm3, %v4390_v2, 0.0 }
 0x683   : > { %2387 = vadd.xlane.f32.xlu1 %v2386_v54 }
 0x684   : > { %v2213_v17 = vpop.f32.mrf.mxu3  ;;  %2957 = vmatmul.msk.bf16.gmra.mxu3 %vm757_vm3, %v2139_v13 }
 0x685   : > { %v2214_v37 = vadd.f32 %v4325_v22, %v2213_v17  ;;  %v2327_v61 = vpop.f32.mrf.mxu1 }
 0x686   : > { %v2328_v41 = vadd.f32 %v4382_v49, %v2327_v61 }
 0x687   : > { %v2244_v40 = vmax.f32 %v2214_v37, 0.0 }
 0x688   : > { %v4401_v5 = vadd.f32 %v2328_v41, %v4211_v3 }
 0x689   : > { %v2256_v60 = vpack.c.bf16 %v2244_v40, %v2243_v36 }
 0x68a   : > { %v2389_v18 = vsel %vm757_vm3, %v4401_v5, 0.0 }
 0x68b   : > { %2390 = vadd.xlane.f32.xlu2 %v2389_v18  ;;  %2978 = vmatmul.msk.bf16.gmra.mxu1 %vm2288_vm10, %v2256_v60 }
 0x68d   : > { %v2216_v43 = vpop.f32.mrf.mxu3 }
 0x68e   : > { %v2330_v14 = vpop.f32.mrf.mxu1  ;;  %v2217_v3 = vadd.f32 %v4325_v22, %v2216_v43 }
 0x68f   : > { %v2331_v24 = vadd.f32 %v4382_v49, %v2330_v14 }
 0x690   : > { %v2245_v53 = vmax.f32 %v2217_v3, 0.0 }
 0x691   : > { %v4408_v31 = vadd.f32 %v2331_v24, %v4243_v27 }
 0x693   : > { %v2392_v26 = vsel %vm757_vm3, %v4408_v31, 0.0 }
 0x694   : > { %2393 = vadd.xlane.f32.xlu0 %v2392_v26 }
 0x695   : > { %v2218_v32 = vpop.f32.mrf.mxu3 }
 0x696   : > { %v2219_v10 = vadd.f32 %v4325_v22, %v2218_v32  ;;  %v2332_v46 = vpop.f32.mrf.mxu1 }
 0x697   : > { %v2333_v47 = vadd.f32 %v4382_v49, %v2332_v46 }
 0x698   : > { %v2246_v42 = vmax.f32 %v2219_v10, 0.0 }
 0x699   : > { %v4416_v12 = vadd.f32 %v2333_v47, %v4246_v16 }
 0x69a   : > { %v2257_v50 = vpack.c.bf16 %v2246_v42, %v2245_v53 }
 0x69b   : > { %v2395_v27 = vsel %vm757_vm3, %v4416_v12, 0.0 }
 0x69c   : > { %2396 = vadd.xlane.f32.xlu1 %v2395_v27  ;;  %2979 = vmatmul.msk.bf16.gmra.mxu1 %vm2288_vm10, %v2257_v50 }
 0x69d   : > { %v2221_v30 = vpop.f32.mrf.mxu3 }
 0x69e   : > { %v2335_v57 = vpop.f32.mrf.mxu1  ;;  %v2222_v16 = vadd.f32 %v4325_v22, %v2221_v30 }
 0x69f   : > { %v2336_v0 = vadd.f32 %v4382_v49, %v2335_v57 }
 0x6a0   : > { %v2247_v15 = vmax.f32 %v2222_v16, 0.0 }
 0x6a1   : > { %v4423_v58 = vadd.f32 %v2336_v0, %v4266_v51 }
 0x6a3   : > { %v2398_v56 = vsel %vm757_vm3, %v4423_v58, 0.0 }
 0x6a4   : > { %2399 = vadd.xlane.f32.xlu2 %v2398_v56 }
 0x6a5   : > { %v2223_v55 = vpop.f32.mrf.mxu3 }
 0x6a6   : > { %v2224_v52 = vadd.f32 %v4325_v22, %v2223_v55  ;;  %v2337_v6 = vpop.f32.mrf.mxu1 }
 0x6a7   : > { %v2338_v63 = vadd.f32 %v4382_v49, %v2337_v6 }
 0x6a8   : > { %v2248_v33 = vmax.f32 %v2224_v52, 0.0 }
 0x6a9   : > { %v4431_v23 = vadd.f32 %v2338_v63, %v4269_v62 }
 0x6aa   : > { %v2258_v20 = vpack.c.bf16 %v2248_v33, %v2247_v15 }
 0x6ab   : > { %v2401_v51 = vsel %vm757_vm3, %v4431_v23, 0.0 }
 0x6ac   : > { %2402 = vadd.xlane.f32.xlu0 %v2401_v51  ;;  %2980 = vmatmul.msk.bf16.gmra.mxu1 %vm2288_vm10, %v2258_v20 }
 0x6f6   : > { %v2388_v52 = vpop.xlane.xlu1 %2387 }
 0x6f7   : > { %v2226_v4 = vpop.f32.mrf.mxu3  ;;  %v2437_v63 = vmul.f32 %v2388_v52, %v4062_v21 }
 0x6f8   : > { %v2340_v48 = vpop.f32.mrf.mxu1  ;;  %v2227_v62 = vadd.f32 %v4325_v22, %v2226_v4 }
 0x6f9   : > { %v2341_v1 = vadd.f32 %v4382_v49, %v2340_v48  ;;  %v4495_v33 = vsub.f32 %v4390_v2, %v2437_v63 }
 0x6fa   : > { %v2249_v17 = vmax.f32 %v2227_v62, 0.0 }
 0x6fb   : > { %v4438_v11 = vadd.f32 %v2341_v1, %v4305_v7 }
 0x6fd   : > { %v2404_v35 = vsel %vm757_vm3, %v4438_v11, 0.0 }
 0x6fe   : > { %2405 = vadd.xlane.f32.xlu1 %v2404_v35  ;;  %v2391_v20 = vpop.xlane.xlu2 %2390 }
 0x6ff   : > { %v2228_v39 = vpop.f32.mrf.mxu3  ;;  %v2438_v4 = vmul.f32 %v2391_v20, %v4062_v21 }
 0x700   : > { %v2229_v54 = vadd.f32 %v4325_v22, %v2228_v39  ;;  %v2342_v13 = vpop.f32.mrf.mxu1 }
 0x701   : > { %v2343_v9 = vadd.f32 %v4382_v49, %v2342_v13  ;;  %v4508_v2 = vsub.f32 %v4401_v5, %v2438_v4 }
 0x702   : > { %v2250_v37 = vmax.f32 %v2229_v54, 0.0 }
 0x703   : > { %v4446_v61 = vadd.f32 %v2343_v9, %v4308_v25 }
 0x704   : > { %v2259_v41 = vpack.c.bf16 %v2250_v37, %v2249_v17 }
 0x705   : > { %v2407_v7 = vsel %vm757_vm3, %v4446_v61, 0.0 }
 0x706   : > { %2408 = vadd.xlane.f32.xlu2 %v2407_v7  ;;  %2981 = vmatmul.msk.bf16.gmra.mxu1 %vm2288_vm10, %v2259_v41 }
 0x707   : > { %v2231_v36 = vpop.f32.mrf.mxu3  ;;  %v2394_v37 = vpop.xlane.xlu0 %2393 }
 0x708   : > { %v2345_v40 = vpop.f32.mrf.mxu1  ;;  %v2232_v43 = vadd.f32 %v4325_v22, %v2231_v36 }
 0x709   : > { %v2346_v60 = vadd.f32 %v4382_v49, %v2345_v40  ;;  %v2439_v40 = vmul.f32 %v2394_v37, %v4062_v21 }
 0x70a   : > { %v2251_v24 = vmax.f32 %v2232_v43, 0.0 }
 0x70b   : > { %v4453_v18 = vadd.f32 %v2346_v60, %v4328_v34 }
 0x70c   : > { %v2260_v10 = vpack.c.bf16 %v2251_v24, %v2251_v24 }
 0x70d   : > { %v2410_v25 = vsel %vm757_vm3, %v4453_v18, 0.0 }
 0x70e   : > { %2411 = vadd.xlane.f32.xlu0 %v2410_v25 }
 0x70f   : > { %v2233_v14 = vpop.f32.mrf.mxu3  ;;  %v2397_v51 = vpop.xlane.xlu1 %2396 }
 0x710   : > { %v2347_v26 = vpop.f32.mrf.mxu1  ;;  %v2440_v1 = vmul.f32 %v2397_v51, %v4062_v21 }
 0x711   : > { %v2348_v3 = vadd.f32 %v4382_v49, %v2347_v26  ;;  %v4538_v26 = vsub.f32 %v4408_v31, %v2439_v40 }
 0x712   : > { %v4511_v39 = vsub.f32 %v4416_v12, %v2440_v1 }
 0x713   : > { %v4460_v32 = vadd.f32 %v2348_v3, %v4331_v19 }
 0x714   : > { %v2474_v36 = vmul.f32 %v4511_v39, %v4511_v39 }
 0x715   : > { %v2413_v46 = vsel %vm757_vm3, %v4460_v32, 0.0 }
 0x716   : > { %2414 = vadd.xlane.f32.xlu1 %v2413_v46  ;;  %2982 = vmatmul.msk.bf16.gmra.mxu1 %vm2288_vm10, %v2260_v10  ;;  %v2497_v24 = vsel %vm757_vm3, %v2474_v36, 0.0 }
 0x717   : > { %v2400_v9 = vpop.xlane.xlu2 %2399 }
 0x718   : > { %v2441_v5 = vmul.f32 %v2400_v9, %v4062_v21 }
 0x719   : > { %v2350_v22 = vpop.f32.mrf.mxu1 }
 0x71a   : > { %v2351_v34 = vadd.f32 %v4382_v49, %v2350_v22  ;;  %v4529_v25 = vsub.f32 %v4423_v58, %v2441_v5 }
 0x71c   : > { %v4467_v47 = vadd.f32 %v2351_v34, %v4342_v44  ;;  %v2475_v34 = vmul.f32 %v4529_v25, %v4529_v25 }
 0x71e   : > { %v2416_v53 = vsel %vm757_vm3, %v4467_v47, 0.0 }
 0x71f   : > { %2417 = vadd.xlane.f32.xlu2 %v2416_v53  ;;  %v2473_v53 = vmul.f32 %v4538_v26, %v4538_v26 }
 0x721   : > { %v2352_v42 = vpop.f32.mrf.mxu1 }
 0x722   : > { %v2353_v19 = vadd.f32 %v4382_v49, %v2352_v42 }
 0x724   : > { %v4473_v50 = vadd.f32 %v2353_v19, %v4345_v45 }
 0x726   : > { %v2419_v27 = vsel %vm757_vm3, %v4473_v50, 0.0 }
 0x727   : > { %2420 = vadd.xlane.f32.xlu0 %v2419_v27 }
 0x729   : > { %v2355_v30 = vpop.f32.mrf.mxu1 }
 0x72a   : > { %v2356_v57 = vadd.f32 %v4382_v49, %v2355_v30  ;;  %v2500_v30 = vsel %vm757_vm3, %v2475_v34, 0.0 }
 0x72c   : > { %v4479_v44 = vadd.f32 %v2356_v57, %v4354_v29 }
 0x72e   : > { %v2422_v0 = vsel %vm757_vm3, %v4479_v44, 0.0 }
 0x72f   : > { %2423 = vadd.xlane.f32.xlu1 %v2422_v0 }
 0x731   : > { %v2357_v56 = vpop.f32.mrf.mxu1 }
 0x732   : > { %v2358_v16 = vadd.f32 %v4382_v49, %v2357_v56  ;;  %v2494_v56 = vsel %vm757_vm3, %v2473_v53, 0.0 }
 0x734   : > { %v4485_v45 = vadd.f32 %v2358_v16, %v4357_v28 }
 0x736   : > { %v2425_v55 = vsel %vm757_vm3, %v4485_v45, 0.0 }
 0x737   : > { %2426 = vadd.xlane.f32.xlu2 %v2425_v55 }
 0x771   : > { %v2406_v17 = vpop.xlane.xlu1 %2405 }
 0x772   : > { %v2443_v7 = vmul.f32 %v2406_v17, %v4062_v21 }
 0x774   : > { %v4532_v14 = vsub.f32 %v4438_v11, %v2443_v7 }
 0x776   : > { %v2477_v22 = vmul.f32 %v4532_v14, %v4532_v14 }
 0x778   : > { %v2506_v27 = vsel %vm757_vm3, %v2477_v22, 0.0 }
 0x779   : > { %v2409_v3 = vpop.xlane.xlu2 %2408 }
 0x77a   : > { %v2444_v58 = vmul.f32 %v2409_v3, %v4062_v21 }
 0x77c   : > { %v4550_v42 = vsub.f32 %v4446_v61, %v2444_v58 }
 0x783   : > { %v2360_v6 = vpop.f32.mrf.mxu1 }
 0x784   : > { %v2361_v29 = vadd.f32 %v4382_v49, %v2360_v6  ;;  %v2478_v6 = vmul.f32 %v4550_v42, %v4550_v42 }
 0x786   : > { %v4492_v15 = vadd.f32 %v2361_v29, %v4369_v59  ;;  %v2471_v59 = vmul.f32 %v4495_v33, %v4495_v33  ;;  %v2509_v51 = vsel %vm757_vm3, %v2478_v6, 0.0 }
 0x788   : > { %v2428_v28 = vsel %vm757_vm3, %v4492_v15, 0.0  ;;  %v2488_v54 = vsel %vm757_vm3, %v2471_v59, 0.0 }
 0x789   : > { %2429 = vadd.xlane.f32.xlu0 %v2428_v28  ;;  %v2415_v10 = vpop.xlane.xlu1 %2414 }
 0x78a   : > { %v2446_v11 = vmul.f32 %v2415_v10, %v4062_v21 }
 0x78b   : > { %v2362_v48 = vpop.f32.mrf.mxu1 }
 0x78c   : > { %v2363_v35 = vadd.f32 %v4382_v49, %v2362_v48  ;;  %v4553_v19 = vsub.f32 %v4460_v32, %v2446_v11 }
 0x78e   : > { %v4505_v62 = vadd.f32 %v2363_v35, %v4372_v38  ;;  %v2472_v38 = vmul.f32 %v4508_v2, %v4508_v2  ;;  %v2480_v52 = vmul.f32 %v4553_v19, %v4553_v19 }
 0x790   : > { %v2431_v13 = vsel %vm757_vm3, %v4505_v62, 0.0  ;;  %v2491_v43 = vsel %vm757_vm3, %v2472_v38, 0.0  ;;  %v2515_v28 = vsel %vm757_vm3, %v2480_v52, 0.0 }
 0x791   : > { %2489 = vadd.xlane.f32.xlu0 %v2488_v54  ;;  %2432 = vadd.xlane.f32.xlu1 %v2431_v13 }
 0x792   : > { %v2418_v0 = vpop.xlane.xlu2 %2417 }
 0x793   : > { %v2365_v41 = vpop.f32.mrf.mxu1  ;;  %v2447_v61 = vmul.f32 %v2418_v0, %v4062_v21 }
 0x794   : > { %v2366_v12 = vadd.f32 %v4382_v49, %v2365_v41 }
 0x795   : > { %v4571_v29 = vsub.f32 %v4467_v47, %v2447_v61 }
 0x796   : > { %v4525_v60 = vadd.f32 %v2366_v12, %v4387_v8  ;;  %v2403_v8 = vpop.xlane.xlu0 %2402 }
 0x797   : > { %v2442_v31 = vmul.f32 %v2403_v8, %v4062_v21 }
 0x798   : > { %v2434_v49 = vsel %vm1797_vm14, %v4525_v60, 0.0 }
 0x799   : > { %2498 = vadd.xlane.f32.xlu0 %v2497_v24  ;;  %2492 = vadd.xlane.f32.xlu1 %v2491_v43  ;;  %v4558_v57 = vsub.f32 %v4431_v23, %v2442_v31 }
 0x79a   : > { %2435 = vadd.xlane.f32.xlu2 %v2434_v49 }
 0x79b   : > { %v2367_v46 = vpop.f32.mrf.mxu1  ;;  %v2476_v63 = vmul.f32 %v4558_v57, %v4558_v57 }
 0x79d   : > { %v2503_v48 = vsel %vm757_vm3, %v2476_v63, 0.0 }
 0x79e   : > { %v2412_v16 = vpop.xlane.xlu0 %2411 }
 0x79f   : > { %v2445_v23 = vmul.f32 %v2412_v16, %v4062_v21 }
 0x7a1   : > { %2507 = vadd.xlane.f32.xlu0 %v2506_v27  ;;  %2501 = vadd.xlane.f32.xlu1 %v2500_v30  ;;  %v4579_v4 = vsub.f32 %v4453_v18, %v2445_v23 }
 0x7a2   : > { %v2424_v55 = vpop.xlane.xlu1 %2423  ;;  %2495 = vadd.xlane.f32.xlu2 %v2494_v56 }
 0x7a3   : > { %v2449_v32 = vmul.f32 %v2424_v55, %v4062_v21  ;;  %v2479_v18 = vmul.f32 %v4579_v4, %v4579_v4 }
 0x7a5   : > { %v4574_v20 = vsub.f32 %v4479_v44, %v2449_v32  ;;  %v2481_v44 = vmul.f32 %v4571_v29, %v4571_v29  ;;  %v2512_v41 = vsel %vm757_vm3, %v2479_v18, 0.0 }
 0x7a6   : > { %v2421_v1 = vpop.xlane.xlu0 %2420 }
 0x7a7   : > { %v2483_v59 = vmul.f32 %v4574_v20, %v4574_v20  ;;  %v2448_v54 = vmul.f32 %v2421_v1, %v4062_v21  ;;  %v2518_v9 = vsel %vm757_vm3, %v2481_v44, 0.0 }
 0x7a9   : > { %2516 = vadd.xlane.f32.xlu0 %v2515_v28  ;;  %2510 = vadd.xlane.f32.xlu1 %v2509_v51  ;;  %v2524_v17 = vsel %vm757_vm3, %v2483_v59, 0.0  ;;  %v4596_v37 = vsub.f32 %v4473_v50, %v2448_v54 }
 0x7aa   : > { %v2427_v35 = vpop.xlane.xlu2 %2426  ;;  %2504 = vadd.xlane.f32.xlu2 %v2503_v48 }
 0x7ab   : > { %v2450_v47 = vmul.f32 %v2427_v35, %v4062_v21  ;;  %v2482_v5 = vmul.f32 %v4596_v37, %v4596_v37 }
 0x7ad   : > { %v4591_v13 = vsub.f32 %v4485_v45, %v2450_v47  ;;  %v2521_v7 = vsel %vm757_vm3, %v2482_v5, 0.0 }
 0x7af   : > { %v2484_v38 = vmul.f32 %v4591_v13, %v4591_v13 }
 0x7b1   : > { %2519 = vadd.xlane.f32.xlu1 %v2518_v9  ;;  %2525 = vadd.xlane.f32.xlu0 %v2524_v17  ;;  %v2527_v45 = vsel %vm757_vm3, %v2484_v38, 0.0 }
 0x7b2   : > { %2513 = vadd.xlane.f32.xlu2 %v2512_v41 }
 0x7b9   : > { %2528 = vadd.xlane.f32.xlu1 %v2527_v45 }
 0x7ba   : > { %2522 = vadd.xlane.f32.xlu2 %v2521_v7 }
 0x7fc   : > { %v2430_v12 = vpop.xlane.xlu0 %2429 }
 0x7fd   : > { %v2451_v50 = vmul.f32 %v2430_v12, %v4062_v21 }
 0x7ff   : > { %v4607_v36 = vsub.f32 %v4492_v15, %v2451_v50 }
 0x801   : > { %v2485_v40 = vmul.f32 %v4607_v36, %v4607_v36 }
 0x803   : > { %v2530_v43 = vsel %vm757_vm3, %v2485_v40, 0.0 }
 0x804   : > { %v2433_v24 = vpop.xlane.xlu1 %2432  ;;  %2531 = vadd.xlane.f32.xlu2 %v2530_v43  ;;  %v2490_v49 = vpop.xlane.xlu0 %2489 }
 0x805   : > { %v2452_v3 = vmul.f32 %v2433_v24, %v4062_v21  ;;  %v2539_v10 = vmul.f32 %v2490_v49, %v4062_v21 }
 0x807   : > { %v4615_v8 = vsub.f32 %v4505_v62, %v2452_v3  ;;  %v2556_v46 = vadd.f32 1e-05, %v2539_v10 }
 0x809   : > { %3157 = vrsqrt.f32 %v2556_v46  ;;  %v2486_v15 = vmul.f32 %v4615_v8, %v4615_v8  ;;  %vm2579_vm5 = vweird.f32 %v2556_v46 }
 0x80b   : > { %v2533_v58 = vsel %vm757_vm3, %v2486_v15, 0.0 }
 0x80c   : > { %2534 = vadd.xlane.f32.xlu0 %v2533_v58  ;;  %v2493_v11 = vpop.xlane.xlu1 %2492  ;;  %v2499_v22 = vpop.xlane.xlu0 %2498 }
 0x80d   : > { %v2540_v34 = vmul.f32 %v2493_v11, %v4062_v21  ;;  %v2436_v31 = vpop.xlane.xlu2 %2435  ;;  %v2542_v53 = vmul.f32 %v2499_v22, %v4062_v21 }
 0x80e   : > { %v2453_v27 = vmul.f32 %v2436_v31, %v4062_v21 }
 0x80f   : > { %v3158_v30 = vpop.eup %3157  ;;  %v2557_v62 = vadd.f32 1e-05, %v2540_v34  ;;  %v4623_v0 = vadd.f32 1e-05, %v2542_v53 }
 0x810   : > { %v2574_v56 = vmul.f32 %v3158_v30, %v2556_v46  ;;  %v4626_v16 = vsub.f32 %v4525_v60, %v2453_v27  ;;  %vm2580_vm10 = vweird.f32 %v3158_v30 }
 0x811   : > { %3159 = vrsqrt.f32 %v2557_v62  ;;  %vm2581_vm6 = vmor %vm2579_vm5, %vm2580_vm10  ;;  %vm2589_vm8 = vweird.f32 %v2557_v62  ;;  %vm2609_vm11 = vweird.f32 %v4623_v0 }
 0x812   : > { %v2575_v55 = vmul.f32 %v3158_v30, %v2574_v56  ;;  %3161 = vrsqrt.f32 %v4623_v0  ;;  %v2487_v61 = vmul.f32 %v4626_v16, %v4626_v16 }
 0x814   : > { %v2576_v32 = vmul.f32 0.5, %v2575_v55  ;;  %v2502_v52 = vpop.xlane.xlu1 %2501  ;;  %v2536_v6 = vsel %vm1797_vm14, %v2487_v61, 0.0  ;;  %v2508_v23 = vpop.xlane.xlu0 %2507 }
 0x815   : > { %v2543_v63 = vmul.f32 %v2502_v52, %v4062_v21  ;;  %2537 = vadd.xlane.f32.xlu1 %v2536_v6  ;;  %v2496_v28 = vpop.xlane.xlu2 %2495  ;;  %v2545_v51 = vmul.f32 %v2508_v23, %v4062_v21 }
 0x816   : > { %v2577_v60 = vsub.f32 1.5, %v2576_v32  ;;  %v2541_v48 = vmul.f32 %v2496_v28, %v4062_v21 }
 0x817   : > { %v3160_v1 = vpop.eup %3159  ;;  %v4636_v35 = vadd.f32 1e-05, %v2543_v63  ;;  %v4638_v47 = vadd.f32 1e-05, %v2545_v51 }
 0x818   : > { %v3162_v44 = vpop.eup %3161  ;;  %v2578_v59 = vmul.f32 %v3158_v30, %v2577_v60  ;;  %v2584_v54 = vmul.f32 %v3160_v1, %v2557_v62  ;;  %v4640_v18 = vadd.f32 1e-05, %v2541_v48  ;;  %vm2590_vm7 = vweird.f32 %v3160_v1 }
 0x819   : > { %v2604_v9 = vmul.f32 %v3162_v44, %v4623_v0  ;;  %3163 = vrsqrt.f32 %v4636_v35  ;;  %vm2610_vm9 = vweird.f32 %v3162_v44  ;;  %vm2591_vm12 = vmor %vm2589_vm8, %vm2590_vm7  ;;  %vm2619_vm0 = vweird.f32 %v4636_v35 }
 0x81a   : > { %v2582_v17 = vsel %vm2581_vm6, %v3158_v30, %v2578_v59  ;;  %v2585_v41 = vmul.f32 %v3160_v1, %v2584_v54  ;;  %3165 = vrsqrt.f32 %v4640_v18  ;;  %vm2611_vm13 = vmor %vm2609_vm11, %vm2610_vm9  ;;  %vm2599_vm10 = vweird.f32 %v4640_v18 }
 0x81b   : > { %v2743_v38 = vmul.f32 %v2582_v17, %v4495_v33  ;;  %v2605_v5 = vmul.f32 %v3162_v44, %v2604_v9  ;;  %3167 = vrsqrt.f32 %v4638_v47  ;;  %vm2639_vm5 = vweird.f32 %v4638_v47 }
 0x81c   : > { %v2586_v45 = vmul.f32 0.5, %v2585_v41  ;;  %v2511_v7 = vpop.xlane.xlu1 %2510  ;;  %v2517_v12 = vpop.xlane.xlu0 %2516 }
 0x81d   : > { %2760 = vst.msk [vmem:[%s4647_s20] sm:$0xff] %vm757_vm3, %v2743_v38  ;;  %v2606_v50 = vmul.f32 0.5, %v2605_v5  ;;  %v2546_v40 = vmul.f32 %v2511_v7, %v4062_v21  ;;  %v2505_v43 = vpop.xlane.xlu2 %2504  ;;  %v2548_v24 = vmul.f32 %v2517_v12, %v4062_v21 }
 0x81e   : > { %v2587_v49 = vsub.f32 1.5, %v2586_v45  ;;  %v2544_v3 = vmul.f32 %v2505_v43, %v4062_v21 }
 0x81f   : > { %v3164_v10 = vpop.eup %3163  ;;  %v2607_v33 = vsub.f32 1.5, %v2606_v50  ;;  %v4657_v46 = vadd.f32 1e-05, %v2546_v40  ;;  %v4665_v27 = vadd.f32 1e-05, %v2548_v24 }
 0x820   : > { %v3166_v15 = vpop.eup %3165  ;;  %v2588_v58 = vmul.f32 %v3160_v1, %v2587_v49  ;;  %v2614_v11 = vmul.f32 %v3164_v10, %v4636_v35  ;;  %v4661_v22 = vadd.f32 1e-05, %v2544_v3  ;;  %vm2620_vm15 = vweird.f32 %v3164_v10 }
 0x821   : > { %v3168_v34 = vpop.eup %3167  ;;  %v2608_v31 = vmul.f32 %v3162_v44, %v2607_v33  ;;  %v2594_v53 = vmul.f32 %v3166_v15, %v4640_v18  ;;  %3169 = vrsqrt.f32 %v4657_v46  ;;  %vm2600_vm1 = vweird.f32 %v3166_v15  ;;  %vm2621_vm4 = vmor %vm2619_vm0, %vm2620_vm15 }
 0x822   : > { %v2592_v30 = vsel %vm2591_vm12, %v3160_v1, %v2588_v58  ;;  %v2615_v62 = vmul.f32 %v3164_v10, %v2614_v11  ;;  %v2634_v0 = vmul.f32 %v3168_v34, %v4638_v47  ;;  %3171 = vrsqrt.f32 %v4661_v22  ;;  %vm2601_vm6 = vmor %vm2599_vm10, %vm2600_vm1 }
 0x823   : > { %v2744_v56 = vmul.f32 %v2592_v30, %v4508_v2  ;;  %v2612_v55 = vsel %vm2611_vm13, %v3162_v44, %v2608_v31  ;;  %v2595_v61 = vmul.f32 %v3166_v15, %v2594_v53  ;;  %3173 = vrsqrt.f32 %v4665_v27 }
 0x824   : > { %v2746_v32 = vmul.f32 %v2612_v55, %v4511_v39  ;;  %v2616_v52 = vmul.f32 0.5, %v2615_v62  ;;  %v2635_v6 = vmul.f32 %v3168_v34, %v2634_v0  ;;  %v2520_v23 = vpop.xlane.xlu1 %2519  ;;  %v2526_v63 = vpop.xlane.xlu0 %2525  ;;  %vm2640_vm2 = vweird.f32 %v3168_v34 }
 0x825   : > { %2761 = vst.msk [vmem:[%s4647_s20 + $0x8] sm:$0xff] %vm757_vm3, %v2744_v56  ;;  %v2596_v28 = vmul.f32 0.5, %v2595_v61  ;;  %v2514_v51 = vpop.xlane.xlu2 %2513  ;;  %v2549_v48 = vmul.f32 %v2520_v23, %v4062_v21  ;;  %v2551_v59 = vmul.f32 %v2526_v63, %v4062_v21  ;;  %vm2641_vm7 = vmor %vm2639_vm5, %vm2640_vm2  ;;  %vm2649_vm9 = vweird.f32 %v4657_v46 }
 0x826   : > { %2763 = vst.msk [vmem:[%s4647_s20 + $0x18] sm:$0xff] %vm757_vm3, %v2746_v32  ;;  %v2617_v2 = vsub.f32 1.5, %v2616_v52  ;;  %v2636_v60 = vmul.f32 0.5, %v2635_v6  ;;  %v2547_v39 = vmul.f32 %v2514_v51, %v4062_v21  ;;  %vm2629_vm15 = vweird.f32 %v4661_v22 }
 0x827   : > { %v3170_v1 = vpop.eup %3169  ;;  %v2597_v44 = vsub.f32 1.5, %v2596_v28  ;;  %v4684_v38 = vadd.f32 1e-05, %v2549_v48  ;;  %v4691_v47 = vadd.f32 1e-05, %v2551_v59  ;;  %vm2669_vm1 = vweird.f32 %v4665_v27 }
 0x828   : > { %v2618_v54 = vmul.f32 %v3164_v10, %v2617_v2  ;;  %v2637_v9 = vsub.f32 1.5, %v2636_v60  ;;  %v2644_v17 = vmul.f32 %v3170_v1, %v4657_v46  ;;  %v3172_v5 = vpop.eup %3171  ;;  %v4686_v12 = vadd.f32 1e-05, %v2547_v39 }
 0x829   : > { %v2598_v41 = vmul.f32 %v3166_v15, %v2597_v44  ;;  %v3174_v50 = vpop.eup %3173  ;;  %v2624_v18 = vmul.f32 %v3172_v5, %v4661_v22  ;;  %3175 = vrsqrt.f32 %v4684_v38  ;;  %vm2650_vm8 = vweird.f32 %v3170_v1 }
 0x82a   : > { %v2622_v35 = vsel %vm2621_vm4, %v3164_v10, %v2618_v54  ;;  %v2638_v45 = vmul.f32 %v3168_v34, %v2637_v9  ;;  %v2645_v7 = vmul.f32 %v3170_v1, %v2644_v17  ;;  %v2664_v10 = vmul.f32 %v3174_v50, %v4665_v27  ;;  %vm2651_vm11 = vmor %vm2649_vm9, %vm2650_vm8 }
 0x82b   : > { %v2747_v40 = vmul.f32 %v2622_v35, %v4529_v25  ;;  %v2602_v43 = vsel %vm2601_vm6, %v3166_v15, %v2598_v41  ;;  %v2625_v58 = vmul.f32 %v3172_v5, %v2624_v18  ;;  %3177 = vrsqrt.f32 %v4686_v12 }
 0x82c   : > { %v2745_v24 = vmul.f32 %v2602_v43, %v4538_v26  ;;  %v2642_v49 = vsel %vm2641_vm7, %v3168_v34, %v2638_v45  ;;  %v2646_v3 = vmul.f32 0.5, %v2645_v7  ;;  %v2529_v25 = vpop.xlane.xlu1 %2528  ;;  %v2665_v31 = vmul.f32 %v3174_v50, %v2664_v10 }
 0x82d   : > { %2764 = vst.msk [vmem:[%s4647_s20 + $0x20] sm:$0xff] %vm757_vm3, %v2747_v40  ;;  %v2749_v33 = vmul.f32 %v2642_v49, %v4532_v14  ;;  %v2523_v15 = vpop.xlane.xlu2 %2522  ;;  %v2626_v26 = vmul.f32 0.5, %v2625_v58  ;;  %3179 = vrsqrt.f32 %v4691_v47  ;;  %v2552_v53 = vmul.f32 %v2529_v25, %v4062_v21 }
 0x82e   : > { %2762 = vst.msk [vmem:[%s4647_s20 + $0x10] sm:$0xff] %vm757_vm3, %v2745_v24  ;;  %v2647_v11 = vsub.f32 1.5, %v2646_v3  ;;  %v2666_v34 = vmul.f32 0.5, %v2665_v31  ;;  %v2550_v30 = vmul.f32 %v2523_v15, %v4062_v21  ;;  %vm2630_vm12 = vweird.f32 %v3172_v5 }
 0x82f   : > { %2766 = vst.msk [vmem:[%s4647_s20 + $0x30] sm:$0xff] %vm757_vm3, %v2749_v33  ;;  %v2627_v62 = vsub.f32 1.5, %v2626_v26  ;;  %vm2670_vm13 = vweird.f32 %v3174_v50  ;;  %v4708_v55 = vadd.f32 1e-05, %v2552_v53  ;;  %v3176_v61 = vpop.eup %3175  ;;  %vm2631_vm0 = vmor %vm2629_vm15, %vm2630_vm12  ;;  %vm2679_vm5 = vweird.f32 %v4684_v38 }
 0x830   : > { %v2648_v14 = vmul.f32 %v3170_v1, %v2647_v11  ;;  %v2667_v56 = vsub.f32 1.5, %v2666_v34  ;;  %v4712_v52 = vadd.f32 1e-05, %v2550_v30  ;;  %v2674_v63 = vmul.f32 %v3176_v61, %v4684_v38  ;;  %vm2671_vm2 = vmor %vm2669_vm1, %vm2670_vm13 }
 0x831   : > { %v2628_v32 = vmul.f32 %v3172_v5, %v2627_v62  ;;  %v3178_v6 = vpop.eup %3177  ;;  %3181 = vrsqrt.f32 %v4708_v55  ;;  %vm2680_vm4 = vweird.f32 %v3176_v61  ;;  %vm2659_vm8 = vweird.f32 %v4686_v12 }
 0x832   : > { %v2652_v0 = vsel %vm2651_vm11, %v3170_v1, %v2648_v14  ;;  %v2668_v23 = vmul.f32 %v3174_v50, %v2667_v56  ;;  %v2654_v22 = vmul.f32 %v3178_v6, %v4686_v12  ;;  %v2675_v60 = vmul.f32 %v3176_v61, %v2674_v63  ;;  %vm2681_vm7 = vmor %vm2679_vm5, %vm2680_vm4 }
 0x833   : > { %v2750_v46 = vmul.f32 %v2652_v0, %v4550_v42  ;;  %v3180_v28 = vpop.eup %3179  ;;  %v2632_v42 = vsel %vm2631_vm0, %v3172_v5, %v2628_v32  ;;  %3183 = vrsqrt.f32 %v4712_v52  ;;  %vm2660_vm10 = vweird.f32 %v3178_v6 }
 0x834   : > { %v2748_v51 = vmul.f32 %v2632_v42, %v4558_v57  ;;  %v2672_v2 = vsel %vm2671_vm2, %v3174_v50, %v2668_v23  ;;  %v2694_v48 = vmul.f32 %v3180_v28, %v4691_v47  ;;  %v2655_v39 = vmul.f32 %v3178_v6, %v2654_v22  ;;  %vm2661_vm9 = vmor %vm2659_vm8, %vm2660_vm10 }
 0x835   : > { %2767 = vst.msk [vmem:[%s4647_s20 + $0x38] sm:$0xff] %vm757_vm3, %v2750_v46  ;;  %v2752_v27 = vmul.f32 %v2672_v2, %v4553_v19  ;;  %v2676_v1 = vmul.f32 0.5, %v2675_v60  ;;  %vm2700_vm6 = vweird.f32 %v3180_v28  ;;  %vm2699_vm11 = vweird.f32 %v4691_v47 }
 0x836   : > { %2765 = vst.msk [vmem:[%s4647_s20 + $0x28] sm:$0xff] %vm757_vm3, %v2748_v51  ;;  %v2695_v44 = vmul.f32 %v3180_v28, %v2694_v48  ;;  %v2656_v59 = vmul.f32 0.5, %v2655_v39  ;;  %vm2701_vm12 = vmor %vm2699_vm11, %vm2700_vm6  ;;  %vm2709_vm15 = vweird.f32 %v4708_v55  ;;  %vm2689_vm2 = vweird.f32 %v4712_v52 }
 0x837   : > { %2769 = vst.msk [vmem:[%s4647_s20 + $0x48] sm:$0xff] %vm757_vm3, %v2752_v27  ;;  %v3182_v54 = vpop.eup %3181  ;;  %v2677_v9 = vsub.f32 1.5, %v2676_v1 }
 0x838   : > { %v2696_v57 = vmul.f32 0.5, %v2695_v44  ;;  %v2657_v17 = vsub.f32 1.5, %v2656_v59  ;;  %v2704_v41 = vmul.f32 %v3182_v54, %v4708_v55  ;;  %vm2710_vm13 = vweird.f32 %v3182_v54 }
 0x839   : > { %v2678_v5 = vmul.f32 %v3176_v61, %v2677_v9  ;;  %v3184_v35 = vpop.eup %3183  ;;  %vm2711_vm0 = vmor %vm2709_vm15, %vm2710_vm13 }
 0x83a   : > { %v2697_v19 = vsub.f32 1.5, %v2696_v57  ;;  %v2658_v45 = vmul.f32 %v3178_v6, %v2657_v17  ;;  %v2705_v7 = vmul.f32 %v3182_v54, %v2704_v41  ;;  %v2684_v43 = vmul.f32 %v3184_v35, %v4712_v52 }
 0x83b   : > { %v2682_v50 = vsel %vm2681_vm7, %v3176_v61, %v2678_v5  ;;  %vm2690_vm1 = vweird.f32 %v3184_v35 }
 0x83c   : > { %v2698_v40 = vmul.f32 %v3180_v28, %v2697_v19  ;;  %v2753_v38 = vmul.f32 %v2682_v50, %v4571_v29  ;;  %v2662_v18 = vsel %vm2661_vm9, %v3178_v6, %v2658_v45  ;;  %v2706_v24 = vmul.f32 0.5, %v2705_v7  ;;  %vm2691_vm4 = vmor %vm2689_vm2, %vm2690_vm1 }
 0x83d   : > { %v2751_v49 = vmul.f32 %v2662_v18, %v4579_v4  ;;  %v2685_v10 = vmul.f32 %v3184_v35, %v2684_v43 }
 0x83e   : > { %v2702_v3 = vsel %vm2701_vm12, %v3180_v28, %v2698_v40  ;;  %2770 = vst.msk [vmem:[%s4647_s20 + $0x50] sm:$0xff] %vm757_vm3, %v2753_v38  ;;  %v2707_v33 = vsub.f32 1.5, %v2706_v24 }
 0x83f   : > { %v2755_v12 = vmul.f32 %v2702_v3, %v4574_v20  ;;  %2768 = vst.msk [vmem:[%s4647_s20 + $0x40] sm:$0xff] %vm757_vm3, %v2751_v49  ;;  %v2686_v47 = vmul.f32 0.5, %v2685_v10 }
 0x840   : > { %v2708_v29 = vmul.f32 %v3182_v54, %v2707_v33 }
 0x841   : > { %2772 = vst.msk [vmem:[%s4647_s20 + $0x60] sm:$0xff] %vm757_vm3, %v2755_v12  ;;  %v2687_v4 = vsub.f32 1.5, %v2686_v47 }
 0x842   : > { %v2712_v58 = vsel %vm2711_vm0, %v3182_v54, %v2708_v29 }
 0x843   : > { %v2756_v25 = vmul.f32 %v2712_v58, %v4591_v13  ;;  %v2688_v15 = vmul.f32 %v3184_v35, %v2687_v4 }
 0x845   : > { %2773 = vst.msk [vmem:[%s4647_s20 + $0x68] sm:$0xff] %vm757_vm3, %v2756_v25  ;;  %v2692_v20 = vsel %vm2691_vm4, %v3184_v35, %v2688_v15 }
 0x846   : > { %v2754_v11 = vmul.f32 %v2692_v20, %v4596_v37 }
 0x848   : > { %2771 = vst.msk [vmem:[%s4647_s20 + $0x58] sm:$0xff] %vm757_vm3, %v2754_v11 }
 0x877   : > { %v2532_v31 = vpop.xlane.xlu2 %2531 }
 0x878   : > { %v2553_v26 = vmul.f32 %v2532_v31, %v4062_v21 }
 0x87a   : > { %v2570_v14 = vadd.f32 1e-05, %v2553_v26 }
 0x87c   : > { %3185 = vrsqrt.f32 %v2570_v14  ;;  %vm2719_vm5 = vweird.f32 %v2570_v14 }
 0x87f   : > { %v2535_v34 = vpop.xlane.xlu0 %2534 }
 0x880   : > { %v2554_v53 = vmul.f32 %v2535_v34, %v4062_v21 }
 0x882   : > { %v3186_v13 = vpop.eup %3185  ;;  %v2571_v30 = vadd.f32 1e-05, %v2554_v53 }
 0x883   : > { %v2714_v62 = vmul.f32 %v3186_v13, %v2570_v14  ;;  %vm2720_vm10 = vweird.f32 %v3186_v13 }
 0x884   : > { %3187 = vrsqrt.f32 %v2571_v30  ;;  %vm2721_vm6 = vmor %vm2719_vm5, %vm2720_vm10  ;;  %vm2729_vm8 = vweird.f32 %v2571_v30 }
 0x885   : > { %v2715_v0 = vmul.f32 %v3186_v13, %v2714_v62 }
 0x887   : > { %v2716_v56 = vmul.f32 0.5, %v2715_v0 }
 0x888   : > { %v2538_v55 = vpop.xlane.xlu1 %2537 }
 0x889   : > { %v2717_v61 = vsub.f32 1.5, %v2716_v56  ;;  %v2555_v37 = vmul.f32 %v2538_v55, %v4062_v21 }
 0x88a   : > { %v3188_v46 = vpop.eup %3187 }
 0x88b   : > { %v2718_v32 = vmul.f32 %v3186_v13, %v2717_v61  ;;  %v2724_v52 = vmul.f32 %v3188_v46, %v2571_v30  ;;  %v2572_v6 = vadd.f32 1e-05, %v2555_v37  ;;  %vm2730_vm7 = vweird.f32 %v3188_v46 }
 0x88c   : > { %vm2731_vm9 = vmor %vm2729_vm8, %vm2730_vm7 }
 0x88d   : > { %v2722_v23 = vsel %vm2721_vm6, %v3186_v13, %v2718_v32  ;;  %v2725_v63 = vmul.f32 %v3188_v46, %v2724_v52  ;;  %3189 = vrsqrt.f32 %v2572_v6  ;;  %vm2739_vm12 = vweird.f32 %v2572_v6 }
 0x88e   : > { %v2757_v28 = vmul.f32 %v2722_v23, %v4607_v36 }
 0x88f   : > { %v2726_v42 = vmul.f32 0.5, %v2725_v63 }
 0x890   : > { %2774 = vst.msk [vmem:[%s4647_s20 + $0x70] sm:$0xff] %vm757_vm3, %v2757_v28 }
 0x891   : > { %v2727_v22 = vsub.f32 1.5, %v2726_v42 }
 0x893   : > { %v3190_v51 = vpop.eup %3189  ;;  %v2728_v2 = vmul.f32 %v3188_v46, %v2727_v22 }
 0x894   : > { %v2734_v21 = vmul.f32 %v3190_v51, %v2572_v6  ;;  %vm2740_vm11 = vweird.f32 %v3190_v51 }
 0x895   : > { %v2732_v60 = vsel %vm2731_vm9, %v3188_v46, %v2728_v2  ;;  %vm2741_vm13 = vmor %vm2739_vm12, %vm2740_vm11 }
 0x896   : > { %v2758_v48 = vmul.f32 %v2732_v60, %v4615_v8  ;;  %v2735_v27 = vmul.f32 %v3190_v51, %v2734_v21 }
 0x898   : > { %2775 = vst.msk [vmem:[%s4647_s20 + $0x78] sm:$0xff] %vm757_vm3, %v2758_v48  ;;  %v2736_v39 = vmul.f32 0.5, %v2735_v27 }
 0x89a   : > { %v2737_v1 = vsub.f32 1.5, %v2736_v39 }
 0x89c   : > { %v2738_v36 = vmul.f32 %v3190_v51, %v2737_v1 }
 0x89e   : > { %v2742_v44 = vsel %vm2741_vm13, %v3190_v51, %v2738_v36 }
 0x89f   : > { %v2759_v59 = vmul.f32 %v2742_v44, %v4626_v16 }
 0x8a1   : > { %2776 = vst.msk [vmem:[%s4647_s20 + $0x80] sm:$0x3] %vm1797_vm14, %v2759_v59 }
 0x8a2 PF: > { %s26_s21 = sadd.s32 1, %s3197_s21  }
 0x8a3   : > { %p23_p4 = scmp.ge.s32.totalorder %s26_s21, 4  }
 0x8a5   :  { %25 = sbr.rel (!%p23_p4) target bundleno = 2 (0x2), region = 120 }

</bundles_post_ra>
